<compile_context>
chip_gen: v7x
topology: tpu7x:2x2x1
jax: 0.10.0
libtpu: 0.0.40
codegen_flags: <defaults>
</compile_context>

<pallas_src>
import functools

import jax
import jax.numpy as jnp
from jax import lax
from jax.experimental import pallas as pl
from jax.experimental.pallas import tpu as pltpu


_PALLAS_MIN_M = 256                   # below this a pallas_call is launch-bound
_VMEM_TILE_BUDGET = 40 * 1024 * 1024  # tile-choice budget (v7x: 64 MiB physical)
_VMEM_LIMIT = 48 * 1024 * 1024        # scoped VMEM limit handed to Mosaic
_ALIGN_CORNERS = False                # modern F.upsample(mode='bilinear') default


# ---------------------------------------------------------------------------
# Small helpers
# ---------------------------------------------------------------------------
def _round_up(v, m):
    return (v + m - 1) // m * m


def _fit_2d(a, rows, cols):
    """Slice/zero-pad a 2-D array to exactly (rows, cols)."""
    r, c = a.shape
    if c > cols:
        a = a[:, :cols]
    elif c < cols:
        a = jnp.pad(a, ((0, 0), (0, cols - c)))
    if r < rows:
        a = jnp.pad(a, ((0, rows - r), (0, 0)))
    return a


def _tile_vmem_bytes(tm, tk, tn, has_res):
    """Double-buffered bf16 x/w tiles + bf16 out (+res) + f32 acc scratch."""
    b = 2 * tm * tk * 2 + 2 * tk * tn * 2 + 2 * tm * tn * 2
    if has_res:
        b += 2 * tm * tn * 2
    b += tm * tn * 4
    return b


# ---------------------------------------------------------------------------
# Pallas kernels: bf16 matmul + folded-BN epilogue (+ residual) (+ masked ReLU)
# ---------------------------------------------------------------------------
def _apply_relu(y, relu_start, tn):
    """ReLU on output columns >= relu_start.  None: no ReLU; 0: all columns."""
    if relu_start is None:
        return y
    if relu_start <= 0:
        return jnp.maximum(y, 0.0)
    col = pl.program_id(1) * tn + lax.broadcasted_iota(jnp.int32, y.shape, 1)
    return jnp.where(col >= relu_start, jnp.maximum(y, 0.0), y)


def _mm_bn_kernel(x_ref, w_ref, s_ref, b_ref, o_ref, *, relu_start, tn):
    # Single K step: no scratch accumulator, direct epilogue + single store.
    y = jnp.dot(x_ref[...], w_ref[...], preferred_element_type=jnp.float32)
    y = y * s_ref[...] + b_ref[...]
    o_ref[...] = _apply_relu(y, relu_start, tn).astype(o_ref.dtype)


def _mm_bn_res_kernel(x_ref, w_ref, s_ref, b_ref, r_ref, o_ref, *,
                      relu_start, tn):
    y = jnp.dot(x_ref[...], w_ref[...], preferred_element_type=jnp.float32)
    y = y * s_ref[...] + b_ref[...] + r_ref[...].astype(jnp.float32)
    o_ref[...] = _apply_relu(y, relu_start, tn).astype(o_ref.dtype)


def _mm_bn_kernel_ksplit(x_ref, w_ref, s_ref, b_ref, o_ref, acc_ref, *,
                         relu_start, tn):
    k = pl.program_id(2)

    @pl.when(k == 0)
    def _init():
        acc_ref[...] = jnp.zeros_like(acc_ref)

    acc_ref[...] += jnp.dot(x_ref[...], w_ref[...],
                            preferred_element_type=jnp.float32)

    @pl.when(k == pl.num_programs(2) - 1)
    def _epilogue():
        y = acc_ref[...] * s_ref[...] + b_ref[...]
        o_ref[...] = _apply_relu(y, relu_start, tn).astype(o_ref.dtype)


def _mm_bn_res_kernel_ksplit(x_ref, w_ref, s_ref, b_ref, r_ref, o_ref, acc_ref,
                             *, relu_start, tn):
    k = pl.program_id(2)

    @pl.when(k == 0)
    def _init():
        acc_ref[...] = jnp.zeros_like(acc_ref)

    acc_ref[...] += jnp.dot(x_ref[...], w_ref[...],
                            preferred_element_type=jnp.float32)

    @pl.when(k == pl.num_programs(2) - 1)
    def _epilogue():
        y = acc_ref[...] * s_ref[...] + b_ref[...] + r_ref[...].astype(jnp.float32)
        o_ref[...] = _apply_relu(y, relu_start, tn).astype(o_ref.dtype)


# ---------------------------------------------------------------------------
# Fused matmul + BN dispatch (Pallas for large M, plain XLA for tiny layers)
# ---------------------------------------------------------------------------
def _matmul_bn_pallas(x2d, w2d, scale, bias, *, relu_start, residual=None):
    """(M,K) @ (K,Np) -> (M,Np) bf16 with fused scale*y+bias [+res] [+ReLU]."""
    M, K = x2d.shape
    Np = w2d.shape[1]                       # weights are pre-padded to 128-mult
    has_res = residual is not None

    # ---- tiles: lane-dense N, big M tile, K collapsed to one step if it fits -
    TN = 256 if (Np % 256 == 0) else 128
    TM = 1024 if M >= 4096 else 512
    TM = min(TM, _round_up(M, 8))
    Mp = _round_up(M, TM)
    # v7x has 2 TensorCores fed by sharding parallel grid axes: keep >= 2 blocks
    # on a parallel axis whenever possible.
    if Np // TN == 1 and Mp // TM < 2 and TM > 8:
        TM = max(8, _round_up(TM // 2, 8))
        Mp = _round_up(M, TM)

    if _tile_vmem_bytes(TM, K, TN, has_res) <= _VMEM_TILE_BUDGET:
        Kp, TK = K, K                       # single K step, no accumulator
    else:
        Kp = _round_up(K, 128)
        TK = 128
        for cand in range(Kp, 127, -128):   # largest 128-mult divisor that fits
            if Kp % cand == 0 and _tile_vmem_bytes(TM, cand, TN, has_res) <= _VMEM_TILE_BUDGET:
                TK = cand
                break
    ksteps = Kp // TK

    # ---- operands: bf16 on the MXU, f32 scale/bias, bf16 residual ------------
    xb = x2d.astype(jnp.bfloat16)
    if (Mp, Kp) != (M, K):
        xb = jnp.pad(xb, ((0, Mp - M), (0, Kp - K)))
    wb = w2d.astype(jnp.bfloat16)
    if Kp != K:
        wb = jnp.pad(wb, ((0, Kp - K), (0, 0)))
    sp = scale.astype(jnp.float32).reshape(1, Np)
    bp = bias.astype(jnp.float32).reshape(1, Np)

    args = [xb, wb, sp, bp]
    if has_res:
        args.append(_fit_2d(residual.astype(jnp.bfloat16), Mp, Np))

    flops = 2 * Mp * Kp * Np
    bytes_accessed = (xb.size * 2 * (Np // TN) + wb.size * 2 * (Mp // TM)
                      + Mp * Np * 2 * (2 if has_res else 1) + 2 * Np * 4)

    if ksteps == 1:
        kernel = functools.partial(
            _mm_bn_res_kernel if has_res else _mm_bn_kernel,
            relu_start=relu_start, tn=TN)
        grid = (Mp // TM, Np // TN)
        in_specs = [
            pl.BlockSpec((TM, TK), lambda i, j: (i, 0)),
            pl.BlockSpec((TK, TN), lambda i, j: (0, j)),
            pl.BlockSpec((1, TN), lambda i, j: (0, j)),
            pl.BlockSpec((1, TN), lambda i, j: (0, j)),
        ]
        if has_res:
            in_specs.append(pl.BlockSpec((TM, TN), lambda i, j: (i, j)))
        out_specs = pl.BlockSpec((TM, TN), lambda i, j: (i, j))
        scratch_shapes = []
        dims = ("parallel", "parallel")
    else:
        kernel = functools.partial(
            _mm_bn_res_kernel_ksplit if has_res else _mm_bn_kernel_ksplit,
            relu_start=relu_start, tn=TN)
        grid = (Mp // TM, Np // TN, ksteps)
        in_specs = [
            pl.BlockSpec((TM, TK), lambda i, j, k: (i, k)),
            pl.BlockSpec((TK, TN), lambda i, j, k: (k, j)),
            pl.BlockSpec((1, TN), lambda i, j, k: (0, j)),
            pl.BlockSpec((1, TN), lambda i, j, k: (0, j)),
        ]
        if has_res:
            in_specs.append(pl.BlockSpec((TM, TN), lambda i, j, k: (i, j)))
        out_specs = pl.BlockSpec((TM, TN), lambda i, j, k: (i, j))
        scratch_shapes = [pltpu.VMEM((TM, TN), jnp.float32)]
        dims = ("parallel", "parallel", "arbitrary")

    out = pl.pallas_call(
        kernel,
        grid=grid,
        in_specs=in_specs,
        out_specs=out_specs,
        out_shape=jax.ShapeDtypeStruct((Mp, Np), jnp.bfloat16),
        scratch_shapes=scratch_shapes,
        compiler_params=pltpu.CompilerParams(
            dimension_semantics=dims,
            vmem_limit_bytes=_VMEM_LIMIT),
        cost_estimate=pl.CostEstimate(flops=int(flops), transcendentals=0,
                                      bytes_accessed=int(bytes_accessed)),
    )(*args)
    if Mp != M:
        out = out[:M]
    return out


def _matmul_bn_xla(x2d, w2d, scale, bias, *, relu_start, residual=None):
    """Same math on XLA for launch-overhead-dominated tiny layers."""
    Np = w2d.shape[1]
    y = jnp.dot(x2d.astype(jnp.bfloat16), w2d,
                preferred_element_type=jnp.float32)
    y = y * scale.reshape(1, Np).astype(jnp.float32) \
          + bias.reshape(1, Np).astype(jnp.float32)
    if residual is not None:
        y = y + _fit_2d(residual, x2d.shape[0], Np).astype(jnp.float32)
    if relu_start is not None:
        if relu_start <= 0:
            y = jnp.maximum(y, 0.0)
        else:
            col = jnp.arange(Np)[None, :]
            y = jnp.where(col >= relu_start, jnp.maximum(y, 0.0), y)
    return y.astype(jnp.bfloat16)


def _matmul_bn(x2d, w2d, scale, bias, *, relu_start, residual=None):
    if x2d.shape[0] < _PALLAS_MIN_M:
        return _matmul_bn_xla(x2d, w2d, scale, bias,
                              relu_start=relu_start, residual=residual)
    return _matmul_bn_pallas(x2d, w2d, scale, bias,
                             relu_start=relu_start, residual=residual)


# ---------------------------------------------------------------------------
# im2col and bilinear upsampling (XLA side)
# ---------------------------------------------------------------------------
def _im2col_same(x, kh, kw):
    """Stride-1 'same' patches: (N,H,W,C) -> (N*H*W, kh*kw*C), tap-major K."""
    n, h, w, c = x.shape
    ph, pw = (kh - 1) // 2, (kw - 1) // 2
    xp = jnp.pad(x, ((0, 0), (ph, ph), (pw, pw), (0, 0)))
    taps = [xp[:, i:i + h, j:j + w, :] for i in range(kh) for j in range(kw)]
    return jnp.concatenate(taps, axis=-1).reshape(n * h * w, kh * kw * c)


def _linear_resize_coeffs(in_size, out_size, dtype):
    o = jnp.arange(out_size, dtype=jnp.float32)
    if _ALIGN_CORNERS and out_size > 1:
        src = o * ((in_size - 1) / (out_size - 1))
    else:
        src = (o + 0.5) * (in_size / out_size) - 0.5
    src = jnp.clip(src, 0.0, float(in_size - 1))
    i0 = jnp.floor(src).astype(jnp.int32)
    i1 = jnp.minimum(i0 + 1, in_size - 1)
    frac = src - i0.astype(jnp.float32)
    return i0, i1, (1.0 - frac).astype(dtype), frac.astype(dtype)


def bilinear_resize_nhwc(x, out_h, out_w):
    n, h, w, c = x.shape
    if (h, w) == (out_h, out_w):
        return x
    i0, i1, wh0, wh1 = _linear_resize_coeffs(h, out_h, x.dtype)
    xh = (x[:, i0] * wh0[None, :, None, None]
          + x[:, i1] * wh1[None, :, None, None])
    j0, j1, ww0, ww1 = _linear_resize_coeffs(w, out_w, x.dtype)
    return (xh[:, :, j0] * ww0[None, None, :, None]
            + xh[:, :, j1] * ww1[None, None, :, None])


# ---------------------------------------------------------------------------
# Parameter construction (deterministic synthetic weights; BN folded; weights
# pre-reshaped / lane-padded / fused at init so the forward does no weight prep)
# ---------------------------------------------------------------------------
class _KeyGen:
    def __init__(self, key):
        self._key = key
        self._i = 0

    def __call__(self):
        self._i += 1
        return jax.random.fold_in(self._key, self._i)


def _conv_w(key, kh, kw, cin, cout):
    fan_in = kh * kw * cin
    return (jax.random.normal(key, (kh, kw, cin, cout), dtype=jnp.float32)
            * (2.0 / fan_in) ** 0.5)


def _bn_params(key, c, eps=1e-5):
    k1, k2, k3, k4 = jax.random.split(key, 4)
    gamma = 1.0 + 0.1 * jax.random.normal(k1, (c,), dtype=jnp.float32)
    beta = 0.1 * jax.random.normal(k2, (c,), dtype=jnp.float32)
    mean = 0.1 * jax.random.normal(k3, (c,), dtype=jnp.float32)
    var = 0.5 + jax.random.uniform(k4, (c,), dtype=jnp.float32)
    scale = gamma / jnp.sqrt(var + eps)      # folded eval-mode BatchNorm
    bias = beta - mean * scale
    return scale, bias


def _pack_conv(w, scale, bias):
    """(kh,kw,cin,cout) conv + folded BN -> padded 2-D matmul operands."""
    kh, kw, cin, cout = w.shape
    np_ = _round_up(cout, 128)
    w2d = jnp.pad(w.reshape(kh * kw * cin, cout), ((0, 0), (0, np_ - cout)))
    return {
        "w": w2d.astype(jnp.bfloat16),
        "s": jnp.pad(scale, (0, np_ - cout)).astype(jnp.float32).reshape(1, np_),
        "b": jnp.pad(bias, (0, np_ - cout)).astype(jnp.float32).reshape(1, np_),
        "cout": cout,
    }


def init_d_mask_params(key, num_features):
    kg = _KeyGen(key)
    nf = num_features
    w = _conv_w(kg(), 1, 1, nf, nf // 2)
    s, b = _bn_params(kg(), nf // 2)
    params = {"conv": _pack_conv(w, s, b)}
    nf //= 2
    ups = []
    for _ in range(4):                       # up1 .. up4
        cin, cout = nf, nf // 2
        w1 = _conv_w(kg(), 5, 5, cin, cout)
        s1, b1 = _bn_params(kg(), cout)
        w12 = _conv_w(kg(), 3, 3, cout, cout)
        s12, b12 = _bn_params(kg(), cout)
        w2 = _conv_w(kg(), 5, 5, cin, cout)
        s2, b2 = _bn_params(kg(), cout)
        # Fuse conv2|conv1 along Cout: cols [0,cout) -> bran2 (no ReLU),
        # cols [cout,2cout) -> x_conv1 (ReLU in the epilogue).
        fused_w = jnp.concatenate([w2, w1], axis=3)
        fused_s = jnp.concatenate([s2, s1])
        fused_b = jnp.concatenate([b2, b1])
        ups.append({"fused55": _pack_conv(fused_w, fused_s, fused_b),
                    "conv33": _pack_conv(w12, s12, b12),
                    "cout": cout})
        nf //= 2
    params["ups"] = ups
    return params


# ---------------------------------------------------------------------------
# Forward pass (mirrors D_MASK.forward / _UpProjection.forward)
# ---------------------------------------------------------------------------
def _up_projection(x, size, p):
    cout = p["cout"]
    xu = bilinear_resize_nhwc(x, size[0], size[1])
    n, H, W, _ = xu.shape
    # One fused matmul for both 5x5 convs over xu:
    #   cols [0,cout)      = bn2(conv2(xu))            (bran2, no ReLU)
    #   cols [cout,2cout)  = relu(bn1(conv1(xu)))      (x_conv1)
    f = p["fused55"]
    x2d = _im2col_same(xu, 5, 5)
    fused = _matmul_bn(x2d, f["w"], f["s"], f["b"], relu_start=cout)
    x_conv1 = fused[:, cout:2 * cout].reshape(n, H, W, cout)
    # out = relu(bn1_2(conv1_2(x_conv1)) + bran2): bran2 rides along as the
    # first `cout` residual columns of `fused`; the remaining residual columns
    # only touch padded output lanes and are sliced away below.
    g = p["conv33"]
    x2d12 = _im2col_same(x_conv1, 3, 3)
    out = _matmul_bn(x2d12, g["w"], g["s"], g["b"], relu_start=0, residual=fused)
    return out[:, :cout].reshape(n, H, W, cout)


def d_mask_forward(x_block1, x_block2, x_block3, x_block4, params):
    n, c4, h4, w4 = x_block4.shape
    x = jnp.transpose(x_block4, (0, 2, 3, 1)).astype(jnp.bfloat16)  # NCHW->NHWC
    # x_d0 = relu(bn(conv1x1(x_block4)))
    p = params["conv"]
    y2d = _matmul_bn(x.reshape(-1, c4), p["w"], p["s"], p["b"], relu_start=0)
    x = y2d[:, :p["cout"]].reshape(n, h4, w4, p["cout"])
    sizes = [
        (x_block3.shape[2], x_block3.shape[3]),
        (x_block2.shape[2], x_block2.shape[3]),
        (x_block1.shape[2], x_block1.shape[3]),
        (x_block1.shape[2] * 2, x_block1.shape[3] * 2),
    ]
    for up, size in zip(params["ups"], sizes):
        x = _up_projection(x, size, up)
    return jnp.transpose(x, (0, 3, 1, 2)).astype(jnp.float32)       # NHWC->NCHW


# ---------------------------------------------------------------------------
if __name__ == "__main__":
    key = jax.random.PRNGKey(0)
    kp, k1, k2, k3, k4 = jax.random.split(key, 5)

    # Toy ResNet-style feature pyramid (NCHW); num_features = C of x_block4.
    x_block1 = jax.random.normal(k1, (2, 32, 16, 16), dtype=jnp.float32)
    x_block2 = jax.random.normal(k2, (2, 64, 8, 8), dtype=jnp.float32)
    x_block3 = jax.random.normal(k3, (2, 128, 4, 4), dtype=jnp.float32)
    x_block4 = jax.random.normal(k4, (2, 256, 2, 2), dtype=jnp.float32)

    params = init_d_mask_params(kp, num_features=256)

    fwd = jax.jit(functools.partial(d_mask_forward, params=params))
    out = fwd(x_block1, x_block2, x_block3, x_block4)
    jax.block_until_ready(out)

    # 256 -> 128 -> 64 -> 32 -> 16 -> 8 channels; spatial 2x at each up stage.
    assert out.shape == (2, 8, 32, 32)
    assert bool(jnp.all(jnp.isfinite(out)))

    print("KERNEL_OK")
</pallas_src>

<mosaic_0001>
module attributes {stable_mosaic.version = 11 : i64} {
  func.func @_mm_bn_kernel(%arg0: i32, %arg1: i32, %arg2: memref<256x800xbf16, #tpu.memory_space<vmem>>, %arg3: memref<800x128xbf16, #tpu.memory_space<vmem>>, %arg4: memref<1x128xf32, #tpu.memory_space<vmem>>, %arg5: memref<1x128xf32, #tpu.memory_space<vmem>>, %arg6: memref<256x128xbf16, #tpu.memory_space<vmem>>) attributes {dimension_semantics = [#tpu.dimension_semantics<parallel>, #tpu.dimension_semantics<parallel>], iteration_bounds = array<i64: 2, 1>, scalar_prefetch = 0 : i64, scratch_operands = 0 : i64, tpu.core_type = #tpu.core_type<tc>, window_params = [{transform_indices = @transform_0, window_bounds = array<i64: 256, 800>}, {transform_indices = @transform_1, window_bounds = array<i64: 800, 128>}, {transform_indices = @transform_2, window_bounds = array<i64: 1, 128>}, {transform_indices = @transform_3, window_bounds = array<i64: 1, 128>}, {transform_indices = @transform_4, window_bounds = array<i64: 256, 128>}]} {
    %c0 = arith.constant 0 : index
    %c0_0 = arith.constant 0 : index
    %0 = vector.load %arg2[%c0, %c0_0] : memref<256x800xbf16, #tpu.memory_space<vmem>>, vector<256x800xbf16>
    %c0_1 = arith.constant 0 : index
    %c0_2 = arith.constant 0 : index
    %1 = vector.load %arg3[%c0_1, %c0_2] : memref<800x128xbf16, #tpu.memory_space<vmem>>, vector<800x128xbf16>
    %cst = arith.constant dense<0.000000e+00> : vector<256x128xf32>
    %2 = tpu.matmul %0, %1, %cst {dimension_numbers = #tpu.dot_dimension_numbers<[1], [0], [0], [1], [0, 0, 1, 1], [], []>} : vector<256x800xbf16>, vector<800x128xbf16>, vector<256x128xf32> -> vector<256x128xf32>
    %c0_3 = arith.constant 0 : index
    %c0_4 = arith.constant 0 : index
    %3 = vector.load %arg4[%c0_3, %c0_4] : memref<1x128xf32, #tpu.memory_space<vmem>>, vector<1x128xf32>
    %4 = vector.broadcast %3 : vector<1x128xf32> to vector<256x128xf32>
    %5 = arith.mulf %2, %4 : vector<256x128xf32>
    %c0_5 = arith.constant 0 : index
    %c0_6 = arith.constant 0 : index
    %6 = vector.load %arg5[%c0_5, %c0_6] : memref<1x128xf32, #tpu.memory_space<vmem>>, vector<1x128xf32>
    %7 = vector.broadcast %6 : vector<1x128xf32> to vector<256x128xf32>
    %8 = arith.addf %5, %7 : vector<256x128xf32>
    %c128_i32 = arith.constant 128 : i32
    %9 = arith.muli %arg1, %c128_i32 : i32
    %10 = tpu.iota {dimensions = array<i32: 1>} : vector<256x128xi32>
    %11 = vector.broadcast %9 : i32 to vector<256x128xi32>
    %12 = arith.addi %11, %10 : vector<256x128xi32>
    %c16_i32 = arith.constant 16 : i32
    %13 = vector.broadcast %c16_i32 : i32 to vector<256x128xi32>
    %14 = arith.cmpi sge, %12, %13 : vector<256x128xi32>
    %cst_7 = arith.constant 0.000000e+00 : f32
    %15 = vector.broadcast %cst_7 : f32 to vector<256x128xf32>
    %16 = arith.maximumf %8, %15 : vector<256x128xf32>
    %17 = arith.select %14, %16, %8 : vector<256x128xi1>, vector<256x128xf32>
    %18 = arith.truncf %17 : vector<256x128xf32> to vector<256x128xbf16>
    %c0_8 = arith.constant 0 : index
    %c0_9 = arith.constant 0 : index
    %19 = vector.load %arg6[%c0_8, %c0_9] : memref<256x128xbf16, #tpu.memory_space<vmem>>, vector<256x128xbf16>
    tpu.vector_store %arg6[%c0_8, %c0_9], %18 {strides = array<i32>} : memref<256x128xbf16, #tpu.memory_space<vmem>>, vector<256x128xbf16>,
    return
  }
  func.func @transform_0(%arg0: i32, %arg1: i32) -> (i32, i32) {
    %c0_i32 = arith.constant 0 : i32
    %c0_i32_0 = arith.constant 0 : i32
    return %arg0, %c0_i32 : i32, i32
  }
  func.func @transform_1(%arg0: i32, %arg1: i32) -> (i32, i32) {
    %c0_i32 = arith.constant 0 : i32
    %c0_i32_0 = arith.constant 0 : i32
    return %c0_i32, %arg1 : i32, i32
  }
  func.func @transform_2(%arg0: i32, %arg1: i32) -> (i32, i32) {
    %c0_i32 = arith.constant 0 : i32
    %c0_i32_0 = arith.constant 0 : i32
    return %c0_i32, %arg1 : i32, i32
  }
  func.func @transform_3(%arg0: i32, %arg1: i32) -> (i32, i32) {
    %c0_i32 = arith.constant 0 : i32
    %c0_i32_0 = arith.constant 0 : i32
    return %c0_i32, %arg1 : i32, i32
  }
  func.func @transform_4(%arg0: i32, %arg1: i32) -> (i32, i32) {
    %c0_i32 = arith.constant 0 : i32
    return %arg0, %arg1 : i32, i32
  }
}

module attributes {stable_mosaic.version = 11 : i64} {
  func.func @_mm_bn_res_kernel(%arg0: i32, %arg1: i32, %arg2: memref<256x144xbf16, #tpu.memory_space<vmem>>, %arg3: memref<144x128xbf16, #tpu.memory_space<vmem>>, %arg4: memref<1x128xf32, #tpu.memory_space<vmem>>, %arg5: memref<1x128xf32, #tpu.memory_space<vmem>>, %arg6: memref<256x128xbf16, #tpu.memory_space<vmem>>, %arg7: memref<256x128xbf16, #tpu.memory_space<vmem>>) attributes {dimension_semantics = [#tpu.dimension_semantics<parallel>, #tpu.dimension_semantics<parallel>], iteration_bounds = array<i64: 2, 1>, scalar_prefetch = 0 : i64, scratch_operands = 0 : i64, tpu.core_type = #tpu.core_type<tc>, window_params = [{transform_indices = @transform_0, window_bounds = array<i64: 256, 144>}, {transform_indices = @transform_1, window_bounds = array<i64: 144, 128>}, {transform_indices = @transform_2, window_bounds = array<i64: 1, 128>}, {transform_indices = @transform_3, window_bounds = array<i64: 1, 128>}, {transform_indices = @transform_4, window_bounds = array<i64: 256, 128>}, {transform_indices = @transform_5, window_bounds = array<i64: 256, 128>}]} {
    %c0 = arith.constant 0 : index
    %c0_0 = arith.constant 0 : index
    %0 = vector.load %arg2[%c0, %c0_0] : memref<256x144xbf16, #tpu.memory_space<vmem>>, vector<256x144xbf16>
    %c0_1 = arith.constant 0 : index
    %c0_2 = arith.constant 0 : index
    %1 = vector.load %arg3[%c0_1, %c0_2] : memref<144x128xbf16, #tpu.memory_space<vmem>>, vector<144x128xbf16>
    %cst = arith.constant dense<0.000000e+00> : vector<256x128xf32>
    %2 = tpu.matmul %0, %1, %cst {dimension_numbers = #tpu.dot_dimension_numbers<[1], [0], [0], [1], [0, 0, 1, 1], [], []>} : vector<256x144xbf16>, vector<144x128xbf16>, vector<256x128xf32> -> vector<256x128xf32>
    %c0_3 = arith.constant 0 : index
    %c0_4 = arith.constant 0 : index
    %3 = vector.load %arg4[%c0_3, %c0_4] : memref<1x128xf32, #tpu.memory_space<vmem>>, vector<1x128xf32>
    %4 = vector.broadcast %3 : vector<1x128xf32> to vector<256x128xf32>
    %5 = arith.mulf %2, %4 : vector<256x128xf32>
    %c0_5 = arith.constant 0 : index
    %c0_6 = arith.constant 0 : index
    %6 = vector.load %arg5[%c0_5, %c0_6] : memref<1x128xf32, #tpu.memory_space<vmem>>, vector<1x128xf32>
    %7 = vector.broadcast %6 : vector<1x128xf32> to vector<256x128xf32>
    %8 = arith.addf %5, %7 : vector<256x128xf32>
    %c0_7 = arith.constant 0 : index
    %c0_8 = arith.constant 0 : index
    %9 = vector.load %arg6[%c0_7, %c0_8] : memref<256x128xbf16, #tpu.memory_space<vmem>>, vector<256x128xbf16>
    %10 = arith.extf %9 : vector<256x128xbf16> to vector<256x128xf32>
    %11 = arith.addf %8, %10 : vector<256x128xf32>
    %cst_9 = arith.constant 0.000000e+00 : f32
    %12 = vector.broadcast %cst_9 : f32 to vector<256x128xf32>
    %13 = arith.maximumf %11, %12 : vector<256x128xf32>
    %14 = arith.truncf %13 : vector<256x128xf32> to vector<256x128xbf16>
    %c0_10 = arith.constant 0 : index
    %c0_11 = arith.constant 0 : index
    %15 = vector.load %arg7[%c0_10, %c0_11] : memref<256x128xbf16, #tpu.memory_space<vmem>>, vector<256x128xbf16>
    tpu.vector_store %arg7[%c0_10, %c0_11], %14 {strides = array<i32>} : memref<256x128xbf16, #tpu.memory_space<vmem>>, vector<256x128xbf16>,
    return
  }
  func.func @transform_0(%arg0: i32, %arg1: i32) -> (i32, i32) {
    %c0_i32 = arith.constant 0 : i32
    %c0_i32_0 = arith.constant 0 : i32
    return %arg0, %c0_i32 : i32, i32
  }
  func.func @transform_1(%arg0: i32, %arg1: i32) -> (i32, i32) {
    %c0_i32 = arith.constant 0 : i32
    %c0_i32_0 = arith.constant 0 : i32
    return %c0_i32, %arg1 : i32, i32
  }
  func.func @transform_2(%arg0: i32, %arg1: i32) -> (i32, i32) {
    %c0_i32 = arith.constant 0 : i32
    %c0_i32_0 = arith.constant 0 : i32
    return %c0_i32, %arg1 : i32, i32
  }
  func.func @transform_3(%arg0: i32, %arg1: i32) -> (i32, i32) {
    %c0_i32 = arith.constant 0 : i32
    %c0_i32_0 = arith.constant 0 : i32
    return %c0_i32, %arg1 : i32, i32
  }
  func.func @transform_4(%arg0: i32, %arg1: i32) -> (i32, i32) {
    %c0_i32 = arith.constant 0 : i32
    return %arg0, %arg1 : i32, i32
  }
  func.func @transform_5(%arg0: i32, %arg1: i32) -> (i32, i32) {
    %c0_i32 = arith.constant 0 : i32
    return %arg0, %arg1 : i32, i32
  }
}

module attributes {stable_mosaic.version = 11 : i64} {
  func.func @_mm_bn_kernel(%arg0: i32, %arg1: i32, %arg2: memref<512x400xbf16, #tpu.memory_space<vmem>>, %arg3: memref<400x128xbf16, #tpu.memory_space<vmem>>, %arg4: memref<1x128xf32, #tpu.memory_space<vmem>>, %arg5: memref<1x128xf32, #tpu.memory_space<vmem>>, %arg6: memref<512x128xbf16, #tpu.memory_space<vmem>>) attributes {dimension_semantics = [#tpu.dimension_semantics<parallel>, #tpu.dimension_semantics<parallel>], iteration_bounds = array<i64: 4, 1>, scalar_prefetch = 0 : i64, scratch_operands = 0 : i64, tpu.core_type = #tpu.core_type<tc>, window_params = [{transform_indices = @transform_0, window_bounds = array<i64: 512, 400>}, {transform_indices = @transform_1, window_bounds = array<i64: 400, 128>}, {transform_indices = @transform_2, window_bounds = array<i64: 1, 128>}, {transform_indices = @transform_3, window_bounds = array<i64: 1, 128>}, {transform_indices = @transform_4, window_bounds = array<i64: 512, 128>}]} {
    %c0 = arith.constant 0 : index
    %c0_0 = arith.constant 0 : index
    %0 = vector.load %arg2[%c0, %c0_0] : memref<512x400xbf16, #tpu.memory_space<vmem>>, vector<512x400xbf16>
    %c0_1 = arith.constant 0 : index
    %c0_2 = arith.constant 0 : index
    %1 = vector.load %arg3[%c0_1, %c0_2] : memref<400x128xbf16, #tpu.memory_space<vmem>>, vector<400x128xbf16>
    %cst = arith.constant dense<0.000000e+00> : vector<512x128xf32>
    %2 = tpu.matmul %0, %1, %cst {dimension_numbers = #tpu.dot_dimension_numbers<[1], [0], [0], [1], [0, 0, 1, 1], [], []>} : vector<512x400xbf16>, vector<400x128xbf16>, vector<512x128xf32> -> vector<512x128xf32>
    %c0_3 = arith.constant 0 : index
    %c0_4 = arith.constant 0 : index
    %3 = vector.load %arg4[%c0_3, %c0_4] : memref<1x128xf32, #tpu.memory_space<vmem>>, vector<1x128xf32>
    %4 = vector.broadcast %3 : vector<1x128xf32> to vector<512x128xf32>
    %5 = arith.mulf %2, %4 : vector<512x128xf32>
    %c0_5 = arith.constant 0 : index
    %c0_6 = arith.constant 0 : index
    %6 = vector.load %arg5[%c0_5, %c0_6] : memref<1x128xf32, #tpu.memory_space<vmem>>, vector<1x128xf32>
    %7 = vector.broadcast %6 : vector<1x128xf32> to vector<512x128xf32>
    %8 = arith.addf %5, %7 : vector<512x128xf32>
    %c128_i32 = arith.constant 128 : i32
    %9 = arith.muli %arg1, %c128_i32 : i32
    %10 = tpu.iota {dimensions = array<i32: 1>} : vector<512x128xi32>
    %11 = vector.broadcast %9 : i32 to vector<512x128xi32>
    %12 = arith.addi %11, %10 : vector<512x128xi32>
    %c8_i32 = arith.constant 8 : i32
    %13 = vector.broadcast %c8_i32 : i32 to vector<512x128xi32>
    %14 = arith.cmpi sge, %12, %13 : vector<512x128xi32>
    %cst_7 = arith.constant 0.000000e+00 : f32
    %15 = vector.broadcast %cst_7 : f32 to vector<512x128xf32>
    %16 = arith.maximumf %8, %15 : vector<512x128xf32>
    %17 = arith.select %14, %16, %8 : vector<512x128xi1>, vector<512x128xf32>
    %18 = arith.truncf %17 : vector<512x128xf32> to vector<512x128xbf16>
    %c0_8 = arith.constant 0 : index
    %c0_9 = arith.constant 0 : index
    %19 = vector.load %arg6[%c0_8, %c0_9] : memref<512x128xbf16, #tpu.memory_space<vmem>>, vector<512x128xbf16>
    tpu.vector_store %arg6[%c0_8, %c0_9], %18 {strides = array<i32>} : memref<512x128xbf16, #tpu.memory_space<vmem>>, vector<512x128xbf16>,
    return
  }
  func.func @transform_0(%arg0: i32, %arg1: i32) -> (i32, i32) {
    %c0_i32 = arith.constant 0 : i32
    %c0_i32_0 = arith.constant 0 : i32
    return %arg0, %c0_i32 : i32, i32
  }
  func.func @transform_1(%arg0: i32, %arg1: i32) -> (i32, i32) {
    %c0_i32 = arith.constant 0 : i32
    %c0_i32_0 = arith.constant 0 : i32
    return %c0_i32, %arg1 : i32, i32
  }
  func.func @transform_2(%arg0: i32, %arg1: i32) -> (i32, i32) {
    %c0_i32 = arith.constant 0 : i32
    %c0_i32_0 = arith.constant 0 : i32
    return %c0_i32, %arg1 : i32, i32
  }
  func.func @transform_3(%arg0: i32, %arg1: i32) -> (i32, i32) {
    %c0_i32 = arith.constant 0 : i32
    %c0_i32_0 = arith.constant 0 : i32
    return %c0_i32, %arg1 : i32, i32
  }
  func.func @transform_4(%arg0: i32, %arg1: i32) -> (i32, i32) {
    %c0_i32 = arith.constant 0 : i32
    return %arg0, %arg1 : i32, i32
  }
}

module attributes {stable_mosaic.version = 11 : i64} {
  func.func @_mm_bn_res_kernel(%arg0: i32, %arg1: i32, %arg2: memref<512x72xbf16, #tpu.memory_space<vmem>>, %arg3: memref<72x128xbf16, #tpu.memory_space<vmem>>, %arg4: memref<1x128xf32, #tpu.memory_space<vmem>>, %arg5: memref<1x128xf32, #tpu.memory_space<vmem>>, %arg6: memref<512x128xbf16, #tpu.memory_space<vmem>>, %arg7: memref<512x128xbf16, #tpu.memory_space<vmem>>) attributes {dimension_semantics = [#tpu.dimension_semantics<parallel>, #tpu.dimension_semantics<parallel>], iteration_bounds = array<i64: 4, 1>, scalar_prefetch = 0 : i64, scratch_operands = 0 : i64, tpu.core_type = #tpu.core_type<tc>, window_params = [{transform_indices = @transform_0, window_bounds = array<i64: 512, 72>}, {transform_indices = @transform_1, window_bounds = array<i64: 72, 128>}, {transform_indices = @transform_2, window_bounds = array<i64: 1, 128>}, {transform_indices = @transform_3, window_bounds = array<i64: 1, 128>}, {transform_indices = @transform_4, window_bounds = array<i64: 512, 128>}, {transform_indices = @transform_5, window_bounds = array<i64: 512, 128>}]} {
    %c0 = arith.constant 0 : index
    %c0_0 = arith.constant 0 : index
    %0 = vector.load %arg2[%c0, %c0_0] : memref<512x72xbf16, #tpu.memory_space<vmem>>, vector<512x72xbf16>
    %c0_1 = arith.constant 0 : index
    %c0_2 = arith.constant 0 : index
    %1 = vector.load %arg3[%c0_1, %c0_2] : memref<72x128xbf16, #tpu.memory_space<vmem>>, vector<72x128xbf16>
    %cst = arith.constant dense<0.000000e+00> : vector<512x128xf32>
    %2 = tpu.matmul %0, %1, %cst {dimension_numbers = #tpu.dot_dimension_numbers<[1], [0], [0], [1], [0, 0, 1, 1], [], []>} : vector<512x72xbf16>, vector<72x128xbf16>, vector<512x128xf32> -> vector<512x128xf32>
    %c0_3 = arith.constant 0 : index
    %c0_4 = arith.constant 0 : index
    %3 = vector.load %arg4[%c0_3, %c0_4] : memref<1x128xf32, #tpu.memory_space<vmem>>, vector<1x128xf32>
    %4 = vector.broadcast %3 : vector<1x128xf32> to vector<512x128xf32>
    %5 = arith.mulf %2, %4 : vector<512x128xf32>
    %c0_5 = arith.constant 0 : index
    %c0_6 = arith.constant 0 : index
    %6 = vector.load %arg5[%c0_5, %c0_6] : memref<1x128xf32, #tpu.memory_space<vmem>>, vector<1x128xf32>
    %7 = vector.broadcast %6 : vector<1x128xf32> to vector<512x128xf32>
    %8 = arith.addf %5, %7 : vector<512x128xf32>
    %c0_7 = arith.constant 0 : index
    %c0_8 = arith.constant 0 : index
    %9 = vector.load %arg6[%c0_7, %c0_8] : memref<512x128xbf16, #tpu.memory_space<vmem>>, vector<512x128xbf16>
    %10 = arith.extf %9 : vector<512x128xbf16> to vector<512x128xf32>
    %11 = arith.addf %8, %10 : vector<512x128xf32>
    %cst_9 = arith.constant 0.000000e+00 : f32
    %12 = vector.broadcast %cst_9 : f32 to vector<512x128xf32>
    %13 = arith.maximumf %11, %12 : vector<512x128xf32>
    %14 = arith.truncf %13 : vector<512x128xf32> to vector<512x128xbf16>
    %c0_10 = arith.constant 0 : index
    %c0_11 = arith.constant 0 : index
    %15 = vector.load %arg7[%c0_10, %c0_11] : memref<512x128xbf16, #tpu.memory_space<vmem>>, vector<512x128xbf16>
    tpu.vector_store %arg7[%c0_10, %c0_11], %14 {strides = array<i32>} : memref<512x128xbf16, #tpu.memory_space<vmem>>, vector<512x128xbf16>,
    return
  }
  func.func @transform_0(%arg0: i32, %arg1: i32) -> (i32, i32) {
    %c0_i32 = arith.constant 0 : i32
    %c0_i32_0 = arith.constant 0 : i32
    return %arg0, %c0_i32 : i32, i32
  }
  func.func @transform_1(%arg0: i32, %arg1: i32) -> (i32, i32) {
    %c0_i32 = arith.constant 0 : i32
    %c0_i32_0 = arith.constant 0 : i32
    return %c0_i32, %arg1 : i32, i32
  }
  func.func @transform_2(%arg0: i32, %arg1: i32) -> (i32, i32) {
    %c0_i32 = arith.constant 0 : i32
    %c0_i32_0 = arith.constant 0 : i32
    return %c0_i32, %arg1 : i32, i32
  }
  func.func @transform_3(%arg0: i32, %arg1: i32) -> (i32, i32) {
    %c0_i32 = arith.constant 0 : i32
    %c0_i32_0 = arith.constant 0 : i32
    return %c0_i32, %arg1 : i32, i32
  }
  func.func @transform_4(%arg0: i32, %arg1: i32) -> (i32, i32) {
    %c0_i32 = arith.constant 0 : i32
    return %arg0, %arg1 : i32, i32
  }
  func.func @transform_5(%arg0: i32, %arg1: i32) -> (i32, i32) {
    %c0_i32 = arith.constant 0 : i32
    return %arg0, %arg1 : i32, i32
  }
}

</mosaic_0001>

<bundles_post_ra>
// kernel: d_mask_forward.4
= control target key start
LH: loop header
LB: loop body
LE: loop exit
PB: predicated region body
PF: predicated region fallthrough
CT: control target
= control target key end

     0   :  { %s3516_s15 = smov 0   ;;  %s3518_s16 = smov 0   ;;  %s4196_s0 = inlined_call_operand.vmem [shape: bf16[512,800], index: 0, kind: input, shape index: {}]   ;;  %s4197_s1 = inlined_call_operand.vmem [shape: bf16[800,128], index: 1, kind: input, shape index: {}]   ;;  %s4198_s2 = inlined_call_operand.vmem [shape: f32[1,128], index: 2, kind: input, shape index: {}]   ;;  %s4199_s3 = inlined_call_operand.vmem [shape: f32[1,128], index: 3, kind: input, shape index: {}]   ;;  %s4200_s4 = inlined_call_operand.vmem [shape: bf16[512,128], index: 4, kind: output, shape index: {}]  }
   0x1   :  { %s3520_s17 = smov 0  }
   0x2 LB: > { %s26_s18 = sadd.s32 1, %s3485_s16  ;;  %p2480_p0 = scmp.ge.s32.totalorder %s3489_s17, 1  ;;  %s3489_s17 = sphi %s3520_s17, %s14_s17   ;;  %s3485_s16 = sphi %s3518_s16, %s4202_s16   ;;  %s3481_s15 = sphi %s3516_s15, %s4201_s15  }
   0x3   : > { %p28_p1 = scmp.ge.s32.totalorder %s26_s18, 2  ;;  %p203_p2 = scmp.lt.s32.totalorder %s3489_s17, 3 }
   0x5   : > { %s4204_s18 = smov (%p28_p1, %s26_s18), 0  ;;  %p204_p3 = pnand %p2480_p0, %p203_p2 }
   0x6   : > { %v3257_v0 = vld [vmem:[%s4197_s1 + $0x40] sm:$0xff] (!%p204_p3)   ;;  %s2481_s21 = sshll.u32 (!%p204_p3), %s3481_s15, 5  ;;  %v3259_v2 = vld [vmem:[%s4197_s1 + $0x48] sm:$0xff] (!%p204_p3)   ;;  %v3261_v4 = vld [vmem:[%s4197_s1 + $0x50] sm:$0xff] (!%p204_p3)   ;;  %vm1358_vm0 = vcmask (!%p204_p3), 261120  }
   0x7   : > { %207 = sbr.rel (%p204_p3) target bundleno = 487 (0x1e7), region = 36  ;;  %v3258_v1 = vld [vmem:[%s4197_s1] sm:$0xff] (!%p204_p3)   ;;  %2826 = vmatprep.subr.bf16.mxu0 (!%p204_p3), %v3257_v0  ;;  %3216 = vmatprep.subr.bf16.mxu1 (!%p204_p3), %v3257_v0  ;;  %p244_p4 = scmp.lt.s32.totalorder (!%p204_p3), %s2481_s21, 63  ;;  %v3260_v3 = vld [vmem:[%s4197_s1 + $0x8] sm:$0xff] (!%p204_p3)   ;;  %v3262_v5 = vld [vmem:[%s4197_s1 + $0x10] sm:$0xff] (!%p204_p3)  }
   0x8   : > { %2827 = vmatpush3.bf16.msra.mxu0 (!%p204_p3), %v3258_v1  ;;  %3224 = vmatpush3.bf16.msra.mxu1 (!%p204_p3), %v3258_v1  ;;  %v3263_v6 = vld [vmem:[%s4197_s1 + $0x58] sm:$0xff] (!%p204_p3)   ;;  %v3265_v8 = vld [vmem:[%s4197_s1 + $0x60] sm:$0xff] (!%p204_p3)   ;;  %v3267_v10 = vld [vmem:[%s4197_s1 + $0x68] sm:$0xff] (!%p204_p3)  }
   0x9   : > { %2828 = vmatprep.subr.bf16.mxu0 (!%p204_p3), %v3259_v2  ;;  %3217 = vmatprep.subr.bf16.mxu1 (!%p204_p3), %v3259_v2  ;;  %v3264_v7 = vld [vmem:[%s4197_s1 + $0x18] sm:$0xff] (!%p204_p3)   ;;  %v3266_v9 = vld [vmem:[%s4197_s1 + $0x20] sm:$0xff] (!%p204_p3)   ;;  %v3268_v13 = vld [vmem:[%s4197_s1 + $0x28] sm:$0xff] (!%p204_p3)  }
   0xa   : > { %v3269_v14 = vld [vmem:[%s4197_s1 + $0x70] sm:$0xff] (!%p204_p3)   ;;  %v3271_v16 = vld [vmem:[%s4197_s1 + $0x78] sm:$0xff] (!%p204_p3)   ;;  %v3279_v18 = vld [vmem:[%s4197_s1 + $0xc0] sm:$0xff] (!%p204_p3)  }
   0xb   : > { %v3270_v15 = vld [vmem:[%s4197_s1 + $0x30] sm:$0xff] (!%p204_p3)   ;;  %v3272_v17 = vld [vmem:[%s4197_s1 + $0x38] sm:$0xff] (!%p204_p3)   ;;  %v3280_v21 = vld [vmem:[%s4197_s1 + $0x140] sm:$0xff] (!%p204_p3)  }
   0xc   : > { %2829 = vmatpush3.bf16.msra.mxu0 (!%p204_p3), %v3260_v3  ;;  %3225 = vmatpush3.bf16.msra.mxu1 (!%p204_p3), %v3260_v3  ;;  %v3281_v22 = vld [vmem:[%s4197_s1 + $0x80] sm:$0xff] (!%p204_p3)   ;;  %v3283_v24 = vld [vmem:[%s4197_s1 + $0xc8] sm:$0xff] (!%p204_p3)   ;;  %v3291_v32 = vld [vmem:[%s4197_s1 + $0xd0] sm:$0xff] (!%p204_p3)  }
   0xd   : > { %2830 = vmatprep.subr.bf16.mxu0 (!%p204_p3), %v3261_v4  ;;  %3218 = vmatprep.subr.bf16.mxu1 (!%p204_p3), %v3261_v4  ;;  %v3282_v23 = vld [vmem:[%s4197_s1 + $0x100] sm:$0xff] (!%p204_p3)   ;;  %v3294_v27 = vld [vmem:[%s4197_s1 + $0x148] sm:$0xff] (!%p204_p3)   ;;  %v3292_v33 = vld [vmem:[%s4197_s1 + $0x90] sm:$0xff] (!%p204_p3)  }
   0xe   : > { %s4206_s21 = smov (!%p244_p4, %s2481_s21), 63  ;;  %v3284_v28 = vld [vmem:[%s4197_s1 + $0x88] sm:$0xff]   ;;  %v3293_v34 = vld [vmem:[%s4197_s1 + $0xd8] sm:$0xff]   ;;  %v3303_v38 = vld [vmem:[%s4197_s1 + $0xe0] sm:$0xff]  }
   0xf   : > { %s3232_s8 = smul.u32 28, %s4206_s21  ;;  %v3296_v29 = vld [vmem:[%s4197_s1 + $0x108] sm:$0xff]   ;;  %v3295_v37 = vld [vmem:[%s4197_s1 + $0x98] sm:$0xff]   ;;  %v3314_v41 = vld [vmem:[%s4197_s1 + $0x150] sm:$0xff]   ;;  %s2484_s20 = sshll.u32 %s4206_s21, 2 }
  0x10   : > { %2831 = vmatpush3.bf16.msra.mxu0 %v3262_v5  ;;  %3226 = vmatpush3.bf16.msra.mxu1 %v3262_v5  ;;  %v3304_v42 = vld [vmem:[%s4197_s1 + $0xa0] sm:$0xff]   ;;  %v3305_v43 = vld [vmem:[%s4197_s1 + $0xe8] sm:$0xff]   ;;  %v3316_v44 = vld [vmem:[%s4197_s1 + $0x110] sm:$0xff]   ;;  %s4012_s23 = scalar_lea.vmem %s4200_s4, %s2484_s20 }
  0x11   : > { %2832 = vmatprep.subr.bf16.mxu0 %v3263_v6  ;;  %3219 = vmatprep.subr.bf16.mxu1 %v3263_v6  ;;  %s3567_s15 = scalar_lea.vmem %s4196_s0, %s3232_s8  ;;  %v3306_v47 = vld [vmem:[%s4197_s1 + $0xa8] sm:$0xff]   ;;  %v3313_v48 = vld [vmem:[%s4197_s1 + $0xf0] sm:$0xff]   ;;  %v3325_v51 = vld [vmem:[%s4197_s1 + $0x158] sm:$0xff]  }
  0x12   : > { %v3275_v11 = vld [vmem:[%s3567_s15 + $0x4] ss:$28 sps:$4 sm:$0xff]   ;;  %v3285_v25 = vld [vmem:[%s3567_s15 + $0x3c] ss:$28 sps:$4 sm:$0xff]   ;;  %v3297_v35 = vld [vmem:[%s3567_s15 + $0x74] ss:$28 sps:$4 sm:$0xff]  }
  0x13   : > { %v3278_v12 = vld [vmem:[%s3567_s15 + $0x2a4] ss:$28 sps:$4 sm:$0xff]   ;;  %1439 = vmatprep.mubr.bf16.mxu0 %v3275_v11  ;;  %v3287_v26 = vld [vmem:[%s3567_s15 + $0x2dc] ss:$28 sps:$4 sm:$0xff]   ;;  %v3299_v36 = vld [vmem:[%s3567_s15 + $0x314] ss:$28 sps:$4 sm:$0xff]  }
  0x14   : > { %2833 = vmatpush3.bf16.msra.mxu0 %v3264_v7  ;;  %3227 = vmatpush3.bf16.msra.mxu1 %v3264_v7  ;;  %v3273_v19 = vld [vmem:[%s3567_s15] ss:$28 sps:$4 sm:$0xff]   ;;  %v3289_v30 = vld [vmem:[%s3567_s15 + $0x38] ss:$28 sps:$4 sm:$0xff]   ;;  %v3301_v39 = vld [vmem:[%s3567_s15 + $0x70] ss:$28 sps:$4 sm:$0xff]  }
  0x15   : > { %2834 = vmatprep.subr.bf16.mxu0 %v3265_v8  ;;  %3220 = vmatprep.subr.bf16.mxu1 %v3265_v8  ;;  %v3276_v20 = vld [vmem:[%s3567_s15 + $0x2a0] ss:$28 sps:$4 sm:$0xff]   ;;  %v3290_v31 = vld [vmem:[%s3567_s15 + $0x2d8] ss:$28 sps:$4 sm:$0xff]   ;;  %v3302_v40 = vld [vmem:[%s3567_s15 + $0x310] ss:$28 sps:$4 sm:$0xff]  }
  0x16   : > { %1535 = vmatprep.mubr.bf16.mxu1 %v3278_v12  ;;  %v3307_v45 = vld [vmem:[%s3567_s15 + $0xac] ss:$28 sps:$4 sm:$0xff]   ;;  %v3315_v52 = vld [vmem:[%s4197_s1 + $0xb0] sm:$0xff]   ;;  %v3327_v53 = vld [vmem:[%s4197_s1 + $0x118] sm:$0xff]  }
  0x17   : > { %v3309_v46 = vld [vmem:[%s3567_s15 + $0x34c] ss:$28 sps:$4 sm:$0xff]   ;;  %v3319_v54 = vld [vmem:[%s3567_s15 + $0xe4] ss:$28 sps:$4 sm:$0xff]   ;;  %v3317_v55 = vld [vmem:[%s4197_s1 + $0xf8] sm:$0xff]  }
  0x18   : > { %2835 = vmatpush3.bf16.msra.mxu0 %v3266_v9  ;;  %3228 = vmatpush3.bf16.msra.mxu1 %v3266_v9  ;;  %v3311_v49 = vld [vmem:[%s3567_s15 + $0xa8] ss:$28 sps:$4 sm:$0xff]   ;;  %v3318_v57 = vld [vmem:[%s4197_s1 + $0xb8] sm:$0xff]   ;;  %v3334_v5 = vld [vmem:[%s3567_s15 + $0x154] ss:$28 sps:$4 sm:$0xff]  }
  0x19   : > { %2836 = vmatprep.subr.bf16.mxu0 %v3267_v10  ;;  %3221 = vmatprep.subr.bf16.mxu1 %v3267_v10  ;;  %v3312_v50 = vld [vmem:[%s3567_s15 + $0x348] ss:$28 sps:$4 sm:$0xff]   ;;  %v3324_v62 = vld [vmem:[%s3567_s15 + $0xe0] ss:$28 sps:$4 sm:$0xff]   ;;  %v3332_v3 = vld [vmem:[%s3567_s15 + $0x118] ss:$28 sps:$4 sm:$0xff]  }
  0x1a   : > { %v3323_v56 = vld [vmem:[%s3567_s15 + $0xc] ss:$28 sps:$4 sm:$0xff]   ;;  %v3326_v58 = vld [vmem:[%s4197_s1 + $0x180] sm:$0xff]   ;;  %v3328_v63 = vld [vmem:[%s3567_s15 + $0x11c] ss:$28 sps:$4 sm:$0xff]  }
  0x1b   : > { %v3321_v59 = vld [vmem:[%s3567_s15 + $0x8] ss:$28 sps:$4 sm:$0xff]   ;;  %v3333_v4 = vld [vmem:[%s3567_s15 + $0x40] ss:$28 sps:$4 sm:$0xff]   ;;  %v3362_v7 = vld [vmem:[%s4197_s1 + $0x170] sm:$0xff]  }
  0x1c   : > { %2837 = vmatpush3.bf16.msra.mxu0 %v3268_v13  ;;  %3229 = vmatpush3.bf16.msra.mxu1 %v3268_v13  ;;  %v3340_v60 = vld [vmem:[%s4197_s1 + $0x160] sm:$0xff]   ;;  %v3348_v1 = vld [vmem:[%s4197_s1 + $0x168] sm:$0xff]   ;;  %v3336_v6 = vld [vmem:[%s3567_s15 + $0x7c] ss:$28 sps:$4 sm:$0xff]  }
  0x1d   : > { %2838 = vmatprep.subr.bf16.mxu0 %v3269_v14  ;;  %3222 = vmatprep.subr.bf16.mxu1 %v3269_v14  ;;  %v3341_v61 = vld [vmem:[%s4197_s1 + $0x120] sm:$0xff]   ;;  %v3349_v2 = vld [vmem:[%s4197_s1 + $0x128] sm:$0xff]   ;;  %v3363_v8 = vld [vmem:[%s4197_s1 + $0x130] sm:$0xff]  }
  0x1e   : > { %v3330_v0 = vld [vmem:[%s3567_s15 + $0x44] ss:$28 sps:$4 sm:$0xff]   ;;  %v3338_v9 = vld [vmem:[%s3567_s15 + $0x150] ss:$28 sps:$4 sm:$0xff]   ;;  %v3339_v10 = vld [vmem:[%s3567_s15 + $0x78] ss:$28 sps:$4 sm:$0xff]  }
  0x1f   : > { %v3342_v11 = vld [vmem:[%s3567_s15 + $0x18c] ss:$28 sps:$4 sm:$0xff]   ;;  %v3370_v12 = vld [vmem:[%s4197_s1 + $0x178] sm:$0xff]   ;;  %v3344_v14 = vld [vmem:[%s3567_s15 + $0xb4] ss:$28 sps:$4 sm:$0xff]  }
  0x20   : > { %2839 = vmatpush3.bf16.msra.mxu0 %v3270_v15  ;;  %3230 = vmatpush3.bf16.msra.mxu1 %v3270_v15  ;;  %v3371_v13 = vld [vmem:[%s4197_s1 + $0x138] sm:$0xff]   ;;  %v3384_v15 = vld [vmem:[%s4197_s1 + $0x188] sm:$0xff]  }
  0x21   : > { %2840 = vmatprep.subr.bf16.mxu0 %v3271_v16  ;;  %3223 = vmatprep.subr.bf16.mxu1 %v3271_v16  ;;  %v3346_v16 = vld [vmem:[%s3567_s15 + $0x188] ss:$28 sps:$4 sm:$0xff]  }
  0x24   : > { %2841 = vmatpush3.bf16.msra.mxu0 %v3272_v17  ;;  %3231 = vmatpush3.bf16.msra.mxu1 %v3272_v17  ;;  %v3347_v17 = vld [vmem:[%s3567_s15 + $0xb0] ss:$28 sps:$4 sm:$0xff]  }
  0x25   : > { %2938 = vmatprep.subr.bf16.mxu1 %v3279_v18  ;;  %3050 = vmatprep.subr.bf16.mxu0 %v3280_v21  ;;  %v3350_v18 = vld [vmem:[%s3567_s15 + $0x1c4] ss:$28 sps:$4 sm:$0xff]  }
  0x26   : > { %v3355_v21 = vld [vmem:[%s3567_s15 + $0xe8] ss:$28 sps:$4 sm:$0xff]  }
  0x27   : > { %1440 = vmatmul.mubr.bf16.vlgmr.msra.gmra.mrb[0].mxu0 %v3273_v19  ;;  %1536 = vmatmul.mubr.bf16.vlgmr.msra.gmra.mrb[0].mxu1 %v3276_v20  ;;  %v3352_v19 = vld [vmem:[%s3567_s15 + $0xec] ss:$28 sps:$4 sm:$0xff]   ;;  %v3354_v20 = vld [vmem:[%s3567_s15 + $0x1c0] ss:$28 sps:$4 sm:$0xff]  }
  0x28   : > { %2939 = vmatpush3.bf16.msra.mxu1 %v3281_v22  ;;  %3051 = vmatpush3.bf16.msra.mxu0 %v3282_v23  ;;  %v3356_v22 = vld [vmem:[%s3567_s15 + $0x1fc] ss:$28 sps:$4 sm:$0xff]   ;;  %v3358_v23 = vld [vmem:[%s3567_s15 + $0x124] ss:$28 sps:$4 sm:$0xff]  }
  0x29   : > { %2940 = vmatprep.subr.bf16.mxu1 %v3283_v24  ;;  %1447 = vmatprep.mubr.bf16.mxu0 %v3285_v25  ;;  %v3360_v24 = vld [vmem:[%s3567_s15 + $0x1f8] ss:$28 sps:$4 sm:$0xff]   ;;  %v3361_v25 = vld [vmem:[%s3567_s15 + $0x120] ss:$28 sps:$4 sm:$0xff]  }
  0x2a   : > { %1543 = vmatprep.mubr.bf16.mxu1 %v3287_v26  ;;  %3052 = vmatprep.subr.bf16.mxu0 %v3294_v27  ;;  %v3364_v26 = vld [vmem:[%s3567_s15 + $0x234] ss:$28 sps:$4 sm:$0xff]   ;;  %v3366_v27 = vld [vmem:[%s3567_s15 + $0x15c] ss:$28 sps:$4 sm:$0xff]  }
  0x2c   : > { %2941 = vmatpush3.bf16.msra.mxu1 %v3284_v28  ;;  %3053 = vmatpush3.bf16.msra.mxu0 %v3296_v29  ;;  %v3368_v28 = vld [vmem:[%s3567_s15 + $0x230] ss:$28 sps:$4 sm:$0xff]   ;;  %v3369_v29 = vld [vmem:[%s3567_s15 + $0x158] ss:$28 sps:$4 sm:$0xff]  }
  0x2d   : > { %2942 = vmatprep.subr.bf16.mxu1 %v3291_v32  ;;  %3054 = vmatprep.subr.bf16.mxu0 %v3314_v41  ;;  %v3376_v32 = vld [vmem:[%s3567_s15 + $0x268] ss:$28 sps:$4 sm:$0xff]  }
  0x2e   : > { %v3390_v41 = vld [vmem:[%s3567_s15 + $0x48] ss:$28 sps:$4 sm:$0xff]  }
  0x2f   : > { %1448 = vmatmul.mubr.bf16.gmra.mrb[4].mxu0 %v3289_v30  ;;  %1544 = vmatmul.mubr.bf16.gmra.mrb[4].mxu1 %v3290_v31  ;;  %v3372_v30 = vld [vmem:[%s3567_s15 + $0x26c] ss:$28 sps:$4 sm:$0xff]   ;;  %v3374_v31 = vld [vmem:[%s3567_s15 + $0x194] ss:$28 sps:$4 sm:$0xff]  }
  0x30   : > { %2943 = vmatpush3.bf16.msra.mxu1 %v3292_v33  ;;  %1455 = vmatprep.mubr.bf16.mxu0 %v3297_v35  ;;  %v3377_v33 = vld [vmem:[%s3567_s15 + $0x190] ss:$28 sps:$4 sm:$0xff]  }
  0x31   : > { %2944 = vmatprep.subr.bf16.mxu1 %v3293_v34  ;;  %1551 = vmatprep.mubr.bf16.mxu1 %v3299_v36  ;;  %v3378_v34 = vld [vmem:[%s3567_s15 + $0x1cc] ss:$28 sps:$4 sm:$0xff]   ;;  %v3382_v35 = vld [vmem:[%s3567_s15 + $0x14] ss:$28 sps:$4 sm:$0xff]  }
  0x32   : > { %3055 = vmatpush3.bf16.msra.mxu0 %v3316_v44  ;;  %v3380_v36 = vld [vmem:[%s3567_s15 + $0x10] ss:$28 sps:$4 sm:$0xff]   ;;  %v3395_v44 = vld [vmem:[%s3567_s15 + $0x238] ss:$28 sps:$4 sm:$0xff]  }
  0x33   : > { %3056 = vmatprep.subr.bf16.mxu0 %v3325_v51  ;;  %v3405_v51 = vld [vmem:[%s3567_s15 + $0xf4] ss:$28 sps:$4 sm:$0xff]  }
  0x34   : > { %2945 = vmatpush3.bf16.msra.mxu1 %v3295_v37  ;;  %v3383_v37 = vld [vmem:[%s3567_s15 + $0x1c8] ss:$28 sps:$4 sm:$0xff]  }
  0x35   : > { %2946 = vmatprep.subr.bf16.mxu1 %v3303_v38  ;;  %v3385_v38 = vld [vmem:[%s3567_s15 + $0x204] ss:$28 sps:$4 sm:$0xff]  }
  0x36   : > { %3057 = vmatpush3.bf16.msra.mxu0 %v3327_v53  ;;  %v3408_v53 = vld [vmem:[%s3567_s15 + $0xf0] ss:$28 sps:$4 sm:$0xff]  }
  0x37   : > { %1456 = vmatmul.mubr.bf16.gmra.mrb[8].mxu0 %v3301_v39  ;;  %1552 = vmatmul.mubr.bf16.gmra.mrb[8].mxu1 %v3302_v40  ;;  %v3387_v39 = vld [vmem:[%s3567_s15 + $0x4c] ss:$28 sps:$4 sm:$0xff]   ;;  %v3389_v40 = vld [vmem:[%s3567_s15 + $0x200] ss:$28 sps:$4 sm:$0xff]  }
  0x38   : > { %2947 = vmatpush3.bf16.msra.mxu1 %v3304_v42  ;;  %1463 = vmatprep.mubr.bf16.mxu0 %v3307_v45  ;;  %v3391_v42 = vld [vmem:[%s3567_s15 + $0x23c] ss:$28 sps:$4 sm:$0xff]  }
  0x39   : > { %2948 = vmatprep.subr.bf16.mxu1 %v3305_v43  ;;  %1559 = vmatprep.mubr.bf16.mxu1 %v3309_v46  ;;  %v3393_v43 = vld [vmem:[%s3567_s15 + $0x84] ss:$28 sps:$4 sm:$0xff]   ;;  %v3397_v46 = vld [vmem:[%s3567_s15 + $0x274] ss:$28 sps:$4 sm:$0xff]  }
  0x3a   : > { %3058 = vmatprep.subr.bf16.mxu0 %v3340_v60  ;;  %v3396_v45 = vld [vmem:[%s3567_s15 + $0x80] ss:$28 sps:$4 sm:$0xff]   ;;  %v3419_v60 = vld [vmem:[%s3567_s15 + $0x318] ss:$28 sps:$4 sm:$0xff]  }
  0x3b   : > { %3059 = vmatpush3.bf16.msra.mxu0 %v3341_v61  ;;  %v3420_v61 = vld [vmem:[%s3567_s15 + $0x160] ss:$28 sps:$4 sm:$0xff]  }
  0x3c   : > { %2949 = vmatpush3.bf16.msra.mxu1 %v3306_v47  ;;  %3060 = vmatprep.subr.bf16.mxu0 %v3348_v1  ;;  %v3399_v47 = vld [vmem:[%s3567_s15 + $0xbc] ss:$28 sps:$4 sm:$0xff]  }
  0x3d   : > { %2950 = vmatprep.subr.bf16.mxu1 %v3313_v48  ;;  %v3401_v48 = vld [vmem:[%s3567_s15 + $0x270] ss:$28 sps:$4 sm:$0xff]   ;;  %v3426_v1 = vld [vmem:[%s3567_s15 + $0x198] ss:$28 sps:$4 sm:$0xff]  }
  0x3f   : > { %1464 = vmatmul.mubr.bf16.gmra.mrb[12].mxu0 %v3311_v49  ;;  %1560 = vmatmul.mubr.bf16.gmra.mrb[12].mxu1 %v3312_v50  ;;  %v3402_v49 = vld [vmem:[%s3567_s15 + $0xb8] ss:$28 sps:$4 sm:$0xff]   ;;  %v3403_v50 = vld [vmem:[%s3567_s15 + $0x2ac] ss:$28 sps:$4 sm:$0xff]  }
  0x40   : > { %2951 = vmatpush3.bf16.msra.mxu1 %v3315_v52  ;;  %1471 = vmatprep.mubr.bf16.mxu0 %v3319_v54  ;;  %v3407_v52 = vld [vmem:[%s3567_s15 + $0x2a8] ss:$28 sps:$4 sm:$0xff]  }
  0x41   : > { %2952 = vmatprep.subr.bf16.mxu1 %v3317_v55  ;;  %1600 = vmatprep.mubr.bf16.mxu1 %v3323_v56  ;;  %v3409_v54 = vld [vmem:[%s3567_s15 + $0x2e4] ss:$28 sps:$4 sm:$0xff]   ;;  %v3411_v55 = vld [vmem:[%s3567_s15 + $0x12c] ss:$28 sps:$4 sm:$0xff]  }
  0x42   : > { %3061 = vmatpush3.bf16.msra.mxu0 %v3349_v2  ;;  %v3413_v56 = vld [vmem:[%s3567_s15 + $0x2e0] ss:$28 sps:$4 sm:$0xff]   ;;  %v3427_v2 = vld [vmem:[%s3567_s15 + $0x1d4] ss:$28 sps:$4 sm:$0xff]  }
  0x43   : > { %3062 = vmatprep.subr.bf16.mxu0 %v3362_v7  ;;  %v3434_v7 = vld [vmem:[%s3567_s15 + $0x88] ss:$28 sps:$4 sm:$0xff]  }
  0x44   : > { %2953 = vmatpush3.bf16.msra.mxu1 %v3318_v57  ;;  %v3414_v57 = vld [vmem:[%s3567_s15 + $0x128] ss:$28 sps:$4 sm:$0xff]  }
  0x45   : > { %3180 = vmatprep.subr.bf16.mxu1 %v3326_v58 }
  0x46   : > { %3063 = vmatpush3.bf16.msra.mxu0 %v3363_v8  ;;  %v3435_v8 = vld [vmem:[%s3567_s15 + $0x208] ss:$28 sps:$4 sm:$0xff]  }
  0x47   : > { %1472 = vmatmul.mubr.bf16.gmra.mrb[16].mxu0 %v3324_v62  ;;  %1601 = vmatmul.mubr.bf16.vlgmr.msra.gmra.mrb[16].mxu1 %v3321_v59  ;;  %v3417_v59 = vld [vmem:[%s3567_s15 + $0x164] ss:$28 sps:$4 sm:$0xff]   ;;  %v3421_v62 = vld [vmem:[%s3567_s15 + $0x354] ss:$28 sps:$4 sm:$0xff]  }
  0x48   : > { %3181 = vmatpush3.bf16.msra.mxu1 %v3326_v58  ;;  %1479 = vmatprep.mubr.bf16.mxu0 %v3328_v63  ;;  %v3415_v58 = vld [vmem:[%s3567_s15 + $0x31c] ss:$28 sps:$4 sm:$0xff]  }
  0x49   : > { %1608 = vmatprep.mubr.bf16.mxu1 %v3330_v0  ;;  %3064 = vmatprep.subr.bf16.mxu0 %v3370_v12  ;;  %v3423_v63 = vld [vmem:[%s3567_s15 + $0x19c] ss:$28 sps:$4 sm:$0xff]   ;;  %v3425_v0 = vld [vmem:[%s3567_s15 + $0x350] ss:$28 sps:$4 sm:$0xff]  }
  0x4a   : > { %3065 = vmatpush3.bf16.msra.mxu0 %v3371_v13  ;;  %3182 = vmatprep.subr.bf16.mxu1 %v3384_v15  ;;  %v3440_v12 = vld [vmem:[%s3567_s15 + $0x240] ss:$28 sps:$4 sm:$0xff]   ;;  %v3441_v13 = vld [vmem:[%s3567_s15 + $0x130] ss:$28 sps:$4 sm:$0xff]  }
  0x4c   : > { %3183 = vmatpush3.bf16.msra.mxu1 %v3384_v15  ;;  %v3444_v15 = vld [vmem:[%s3567_s15 + $0x168] ss:$28 sps:$4 sm:$0xff]  }
  0x4f   : > { %1480 = vmatmul.mubr.bf16.gmra.mrb[20].mxu0 %v3332_v3  ;;  %1609 = vmatmul.mubr.bf16.gmra.mrb[20].mxu1 %v3333_v4  ;;  %v3429_v3 = vld [vmem:[%s3567_s15 + $0x18] ss:$28 sps:$4 sm:$0xff]   ;;  %v3430_v4 = vld [vmem:[%s3567_s15 + $0x1d0] ss:$28 sps:$4 sm:$0xff]  }
  0x50   : > { %1487 = vmatprep.mubr.bf16.mxu0 %v3334_v5  ;;  %1616 = vmatprep.mubr.bf16.mxu1 %v3336_v6  ;;  %v3431_v5 = vld [vmem:[%s3567_s15 + $0x50] ss:$28 sps:$4 sm:$0xff]  }
  0x51   : > { %v3432_v6 = vld [vmem:[%s3567_s15 + $0x20c] ss:$28 sps:$4 sm:$0xff]  }
  0x57   : > { %1488 = vmatmul.mubr.bf16.gmra.mrb[24].mxu0 %v3338_v9  ;;  %1617 = vmatmul.mubr.bf16.gmra.mrb[24].mxu1 %v3339_v10  ;;  %v3436_v9 = vld [vmem:[%s3567_s15 + $0xc0] ss:$28 sps:$4 sm:$0xff]  }
  0x58   : > { %1495 = vmatprep.mubr.bf16.mxu0 %v3342_v11  ;;  %1624 = vmatprep.mubr.bf16.mxu1 %v3344_v14  ;;  %v3437_v10 = vld [vmem:[%s3567_s15 + $0x244] ss:$28 sps:$4 sm:$0xff]   ;;  %v3439_v11 = vld [vmem:[%s3567_s15 + $0xf8] ss:$28 sps:$4 sm:$0xff]  }
  0x59   : > { %v3442_v14 = vld [vmem:[%s3567_s15 + $0x27c] ss:$28 sps:$4 sm:$0xff]  }
  0x5f   : > { %1496 = vmatmul.mubr.bf16.gmra.mrb[28].mxu0 %v3346_v16  ;;  %1625 = vmatmul.mubr.bf16.gmra.mrb[28].mxu1 %v3347_v17  ;;  %v3445_v16 = vld [vmem:[%s3567_s15 + $0x278] ss:$28 sps:$4 sm:$0xff]   ;;  %v3446_v17 = vld [vmem:[%s3567_s15 + $0x1a0] ss:$28 sps:$4 sm:$0xff]  }
  0x60   : > { %1503 = vmatprep.mubr.bf16.mxu0 %v3350_v18  ;;  %1632 = vmatprep.mubr.bf16.mxu1 %v3352_v19  ;;  %v3447_v18 = vld [vmem:[%s3567_s15 + $0x2b4] ss:$28 sps:$4 sm:$0xff]  }
  0x61   : > { %v3449_v19 = vld [vmem:[%s3567_s15 + $0x1d8] ss:$28 sps:$4 sm:$0xff]  }
  0x67   : > { %1504 = vmatmul.mubr.bf16.gmra.mrb[32].mxu0 %v3354_v20  ;;  %1633 = vmatmul.mubr.bf16.gmra.mrb[32].mxu1 %v3355_v21  ;;  %v3450_v20 = vld [vmem:[%s3567_s15 + $0x2b0] ss:$28 sps:$4 sm:$0xff]  }
  0x68   : > { %1511 = vmatprep.mubr.bf16.mxu0 %v3356_v22  ;;  %1640 = vmatprep.mubr.bf16.mxu1 %v3358_v23  ;;  %v3451_v21 = vld [vmem:[%s3567_s15 + $0x210] ss:$28 sps:$4 sm:$0xff]   ;;  %v3454_v23 = vld [vmem:[%s3567_s15 + $0x248] ss:$28 sps:$4 sm:$0xff]  }
  0x69   : > { %v3452_v22 = vld [vmem:[%s3567_s15 + $0x2ec] ss:$28 sps:$4 sm:$0xff]  }
  0x6f   : > { %1512 = vmatmul.mubr.bf16.gmra.mrb[36].mxu0 %v3360_v24  ;;  %1641 = vmatmul.mubr.bf16.gmra.mrb[36].mxu1 %v3361_v25  ;;  %v3455_v24 = vld [vmem:[%s3567_s15 + $0x2e8] ss:$28 sps:$4 sm:$0xff]   ;;  %v3456_v25 = vld [vmem:[%s3567_s15 + $0x280] ss:$28 sps:$4 sm:$0xff]  }
  0x70   : > { %1519 = vmatprep.mubr.bf16.mxu0 %v3364_v26  ;;  %1648 = vmatprep.mubr.bf16.mxu1 %v3366_v27  ;;  %v3457_v26 = vld [vmem:[%s3567_s15 + $0x324] ss:$28 sps:$4 sm:$0xff]   ;;  %v3459_v27 = vld [vmem:[%s3567_s15 + $0x2b8] ss:$28 sps:$4 sm:$0xff]  }
  0x77   : > { %1520 = vmatmul.mubr.bf16.gmra.mrb[40].mxu0 %v3368_v28  ;;  %1649 = vmatmul.mubr.bf16.gmra.mrb[40].mxu1 %v3369_v29  ;;  %v3460_v28 = vld [vmem:[%s3567_s15 + $0x320] ss:$28 sps:$4 sm:$0xff]   ;;  %v3461_v29 = vld [vmem:[%s3567_s15 + $0x2f0] ss:$28 sps:$4 sm:$0xff]  }
  0x78   : > { %1527 = vmatprep.mubr.bf16.mxu0 %v3372_v30  ;;  %1656 = vmatprep.mubr.bf16.mxu1 %v3374_v31  ;;  %v3462_v30 = vld [vmem:[%s3567_s15 + $0x35c] ss:$28 sps:$4 sm:$0xff]   ;;  %v3464_v31 = vld [vmem:[%s3567_s15 + $0x328] ss:$28 sps:$4 sm:$0xff]  }
  0x7f   : > { %1528 = vmatmul.mubr.bf16.gmra.mrb[44].mxu0 %v3376_v32  ;;  %1657 = vmatmul.mubr.bf16.gmra.mrb[44].mxu1 %v3377_v33 }
  0x80   : > { %1664 = vmatprep.mubr.bf16.mxu1 %v3378_v34  ;;  %1761 = vmatprep.mubr.bf16.mxu0 %v3382_v35 }
  0x87   : > { %1665 = vmatmul.mubr.bf16.gmra.mrb[48].mxu1 %v3383_v37  ;;  %1762 = vmatmul.mubr.bf16.vlgmr.msra.gmra.mrb[48].mxu0 %v3380_v36  ;;  %v3465_v36 = vld [vmem:[%s3567_s15 + $0x358] ss:$28 sps:$4 sm:$0xff]   ;;  %v3466_v37 = vld [vmem:[%s3567_s15 + $0x360] ss:$28 sps:$4 sm:$0xff]  }
  0x88   : > { %1672 = vmatprep.mubr.bf16.mxu1 %v3385_v38  ;;  %1769 = vmatprep.mubr.bf16.mxu0 %v3387_v39 }
  0x8f   : > { %1673 = vmatmul.mubr.bf16.gmra.mrb[52].mxu1 %v3389_v40  ;;  %1770 = vmatmul.mubr.bf16.gmra.mrb[52].mxu0 %v3390_v41 }
  0x90   : > { %1680 = vmatprep.mubr.bf16.mxu1 %v3391_v42  ;;  %1777 = vmatprep.mubr.bf16.mxu0 %v3393_v43 }
  0x97   : > { %1681 = vmatmul.mubr.bf16.gmra.mrb[56].mxu1 %v3395_v44  ;;  %1778 = vmatmul.mubr.bf16.gmra.mrb[56].mxu0 %v3396_v45 }
  0x98   : > { %1688 = vmatprep.mubr.bf16.mxu1 %v3397_v46  ;;  %1785 = vmatprep.mubr.bf16.mxu0 %v3399_v47 }
  0x9f   : > { %1689 = vmatmul.mubr.bf16.gmra.mrb[60].mxu1 %v3401_v48  ;;  %1786 = vmatmul.mubr.bf16.gmra.mrb[60].mxu0 %v3402_v49 }
  0xa0   : > { %1696 = vmatprep.mubr.bf16.mxu1 %v3403_v50  ;;  %1793 = vmatprep.mubr.bf16.mxu0 %v3405_v51 }
  0xa7   : > { %1697 = vmatmul.mubr.bf16.gmra.mrb[64].mxu1 %v3407_v52  ;;  %1794 = vmatmul.mubr.bf16.gmra.mrb[64].mxu0 %v3408_v53 }
  0xa8   : > { %1704 = vmatprep.mubr.bf16.mxu1 %v3409_v54  ;;  %1801 = vmatprep.mubr.bf16.mxu0 %v3411_v55 }
  0xaf   : > { %1705 = vmatmul.mubr.bf16.gmra.mrb[68].mxu1 %v3413_v56  ;;  %1802 = vmatmul.mubr.bf16.gmra.mrb[68].mxu0 %v3414_v57 }
  0xb0   : > { %1712 = vmatprep.mubr.bf16.mxu1 %v3415_v58  ;;  %1809 = vmatprep.mubr.bf16.mxu0 %v3417_v59 }
  0xb7   : > { %1713 = vmatmul.mubr.bf16.gmra.mrb[72].mxu1 %v3419_v60  ;;  %1810 = vmatmul.mubr.bf16.gmra.mrb[72].mxu0 %v3420_v61 }
  0xb8   : > { %1720 = vmatprep.mubr.bf16.mxu1 %v3421_v62  ;;  %1817 = vmatprep.mubr.bf16.mxu0 %v3423_v63 }
  0xbf   : > { %1721 = vmatmul.mubr.bf16.gmra.mrb[76].mxu1 %v3425_v0  ;;  %1818 = vmatmul.mubr.bf16.gmra.mrb[76].mxu0 %v3426_v1 }
  0xc0   : > { %1825 = vmatprep.mubr.bf16.mxu0 %v3427_v2  ;;  %3184 = vmatprep.mubr.msk.bf16.mxu1 %vm1358_vm0, %v3429_v3 }
  0xc7   : > { %1826 = vmatmul.mubr.bf16.gmra.mrb[80].mxu0 %v3430_v4  ;;  %3185 = vmatmul.mubr.msk.bf16.vlgmr.msra.gmra.mrb[80].mxu1 %vm1358_vm0, %v3431_v5 }
  0xc8   : > { %1833 = vmatprep.mubr.bf16.mxu0 %v3432_v6  ;;  %3188 = vmatprep.mubr.msk.bf16.mxu1 %vm1358_vm0, %v3434_v7 }
  0xcf   : > { %1834 = vmatmul.mubr.bf16.gmra.mrb[84].mxu0 %v3435_v8  ;;  %3189 = vmatmul.mubr.msk.bf16.gmra.mrb[84].mxu1 %vm1358_vm0, %v3436_v9 }
  0xd0   : > { %1841 = vmatprep.mubr.bf16.mxu0 %v3437_v10  ;;  %3192 = vmatprep.mubr.msk.bf16.mxu1 %vm1358_vm0, %v3439_v11 }
  0xd7   : > { %1842 = vmatmul.mubr.bf16.gmra.mrb[88].mxu0 %v3440_v12  ;;  %3193 = vmatmul.mubr.msk.bf16.gmra.mrb[88].mxu1 %vm1358_vm0, %v3441_v13 }
  0xd8   : > { %1849 = vmatprep.mubr.bf16.mxu0 %v3442_v14  ;;  %3196 = vmatprep.mubr.msk.bf16.mxu1 %vm1358_vm0, %v3444_v15 }
  0xdf   : > { %1850 = vmatmul.mubr.bf16.gmra.mrb[92].mxu0 %v3445_v16  ;;  %3197 = vmatmul.mubr.msk.bf16.gmra.mrb[92].mxu1 %vm1358_vm0, %v3446_v17 }
  0xe0   : > { %1857 = vmatprep.mubr.bf16.mxu0 %v3447_v18  ;;  %3200 = vmatprep.mubr.msk.bf16.mxu1 %vm1358_vm0, %v3449_v19 }
  0xe7   : > { %1858 = vmatmul.mubr.bf16.gmra.mrb[96].mxu0 %v3450_v20  ;;  %3201 = vmatmul.mubr.msk.bf16.gmra.mrb[96].mxu1 %vm1358_vm0, %v3451_v21 }
  0xe8   : > { %1865 = vmatprep.mubr.bf16.mxu0 %v3452_v22  ;;  %3204 = vmatprep.mubr.msk.bf16.mxu1 %vm1358_vm0, %v3454_v23 }
  0xef   : > { %1866 = vmatmul.mubr.bf16.gmra.mrb[100].mxu0 %v3455_v24  ;;  %3205 = vmatmul.mubr.msk.bf16.gmra.mrb[100].mxu1 %vm1358_vm0, %v3456_v25 }
  0xf0   : > { %1873 = vmatprep.mubr.bf16.mxu0 %v3457_v26  ;;  %3208 = vmatprep.mubr.msk.bf16.mxu1 %vm1358_vm0, %v3459_v27 }
  0xf7   : > { %1874 = vmatmul.mubr.bf16.gmra.mrb[104].mxu0 %v3460_v28  ;;  %3209 = vmatmul.mubr.msk.bf16.gmra.mrb[104].mxu1 %vm1358_vm0, %v3461_v29 }
  0xf8   : > { %1881 = vmatprep.mubr.bf16.mxu0 %v3462_v30  ;;  %3212 = vmatprep.mubr.msk.bf16.mxu1 %vm1358_vm0, %v3464_v31 }
  0xfa   : > { %v2842_v32 = vpop.f32.mrb[0].mxu0  ;;  %v2914_v33 = vpop.f32.mrb[0].mxu1 }
  0xfb   : > { %v2843_v34 = vpop.f32.mrb[1].mxu0  ;;  %v2915_v35 = vpop.f32.mrb[1].mxu1 }
  0xfc   : > { %v2844_v38 = vadd.f32 %v2843_v34, %v2842_v32  ;;  %v2845_v39 = vpop.f32.mrb[2].mxu0  ;;  %v3819_v40 = vadd.f32 %v2915_v35, %v2914_v33  ;;  %v2917_v41 = vpop.f32.mrb[2].mxu1 }
  0xfd   : > { %v2846_v42 = vpop.f32.mrb[3].mxu0  ;;  %v2918_v43 = vpop.f32.mrb[3].mxu1 }
  0xfe   : > { %v2847_v44 = vadd.f32 %v2846_v42, %v2845_v39  ;;  %v3821_v45 = vadd.f32 %v2918_v43, %v2917_v41 }
  0xff   : > { %1882 = vmatmul.mubr.bf16.gmra.mrb[108].mxu0 %v3465_v36  ;;  %3213 = vmatmul.mubr.msk.bf16.gmra.mrb[108].mxu1 %vm1358_vm0, %v3466_v37 }
 0x102   : > { %v2848_v46 = vpop.f32.mrb[4].mxu0  ;;  %v2920_v47 = vpop.f32.mrb[4].mxu1 }
 0x103   : > { %v2849_v48 = vpop.f32.mrb[5].mxu0  ;;  %v2921_v49 = vpop.f32.mrb[5].mxu1 }
 0x104   : > { %v2850_v50 = vadd.f32 %v2849_v48, %v2848_v46  ;;  %v2851_v51 = vpop.f32.mrb[6].mxu0  ;;  %v3824_v52 = vadd.f32 %v2921_v49, %v2920_v47  ;;  %v2923_v53 = vpop.f32.mrb[6].mxu1 }
 0x105   : > { %v2852_v54 = vpop.f32.mrb[7].mxu0  ;;  %v2924_v55 = vpop.f32.mrb[7].mxu1 }
 0x106   : > { %v2853_v56 = vadd.f32 %v2852_v54, %v2851_v51  ;;  %v3826_v57 = vadd.f32 %v2924_v55, %v2923_v53 }
 0x10a   : > { %v2854_v58 = vpop.f32.mrb[8].mxu0  ;;  %v2926_v59 = vpop.f32.mrb[8].mxu1 }
 0x10b   : > { %v2855_v60 = vpop.f32.mrb[9].mxu0  ;;  %v2927_v61 = vpop.f32.mrb[9].mxu1 }
 0x10c   : > { %v2856_v62 = vadd.f32 %v2855_v60, %v2854_v58  ;;  %v2857_v63 = vpop.f32.mrb[10].mxu0  ;;  %v3828_v0 = vadd.f32 %v2927_v61, %v2926_v59  ;;  %v2929_v1 = vpop.f32.mrb[10].mxu1 }
 0x10d   : > { %v2858_v2 = vpop.f32.mrb[11].mxu0  ;;  %v2930_v3 = vpop.f32.mrb[11].mxu1 }
 0x10e   : > { %v2859_v4 = vadd.f32 %v2858_v2, %v2857_v63  ;;  %v3830_v5 = vadd.f32 %v2930_v3, %v2929_v1 }
 0x112   : > { %v2860_v6 = vpop.f32.mrb[12].mxu0  ;;  %v2932_v7 = vpop.f32.mrb[12].mxu1 }
 0x113   : > { %v2861_v8 = vpop.f32.mrb[13].mxu0  ;;  %v2933_v9 = vpop.f32.mrb[13].mxu1 }
 0x114   : > { %v2862_v10 = vadd.f32 %v2861_v8, %v2860_v6  ;;  %v2863_v11 = vpop.f32.mrb[14].mxu0  ;;  %v3832_v12 = vadd.f32 %v2933_v9, %v2932_v7  ;;  %v2935_v13 = vpop.f32.mrb[14].mxu1 }
 0x115   : > { %v2864_v14 = vpop.f32.mrb[15].mxu0  ;;  %v2936_v15 = vpop.f32.mrb[15].mxu1 }
 0x116   : > { %v2865_v16 = vadd.f32 %v2864_v14, %v2863_v11  ;;  %v3834_v17 = vadd.f32 %v2936_v15, %v2935_v13 }
 0x11a   : > { %v2866_v18 = vpop.f32.mrb[16].mxu0  ;;  %v2954_v19 = vpop.f32.mrb[16].mxu1 }
 0x11b   : > { %v2867_v20 = vpop.f32.mrb[17].mxu0  ;;  %v2955_v21 = vpop.f32.mrb[17].mxu1 }
 0x11c   : > { %v2868_v22 = vadd.f32 %v2867_v20, %v2866_v18  ;;  %v2956_v23 = vadd.f32 %v2955_v21, %v2954_v19  ;;  %v2869_v24 = vpop.f32.mrb[18].mxu0  ;;  %v2957_v25 = vpop.f32.mrb[18].mxu1 }
 0x11d   : > { %v2870_v26 = vpop.f32.mrb[19].mxu0  ;;  %v2958_v27 = vpop.f32.mrb[19].mxu1 }
 0x11e   : > { %v3836_v28 = vadd.f32 %v2956_v23, %v2844_v38  ;;  %v2871_v29 = vadd.f32 %v2870_v26, %v2869_v24  ;;  %v2959_v30 = vadd.f32 %v2958_v27, %v2957_v25 }
 0x120   : > { %v3838_v31 = vadd.f32 %v2959_v30, %v2847_v44 }
 0x122   : > { %v2872_v32 = vpop.f32.mrb[20].mxu0  ;;  %v2960_v33 = vpop.f32.mrb[20].mxu1 }
 0x123   : > { %v2873_v34 = vpop.f32.mrb[21].mxu0  ;;  %v2961_v35 = vpop.f32.mrb[21].mxu1 }
 0x124   : > { %v2874_v36 = vadd.f32 %v2873_v34, %v2872_v32  ;;  %v2962_v37 = vadd.f32 %v2961_v35, %v2960_v33  ;;  %v2875_v39 = vpop.f32.mrb[22].mxu0  ;;  %v2963_v41 = vpop.f32.mrb[22].mxu1 }
 0x125   : > { %v2876_v42 = vpop.f32.mrb[23].mxu0  ;;  %v2964_v43 = vpop.f32.mrb[23].mxu1 }
 0x126   : > { %v3840_v46 = vadd.f32 %v2962_v37, %v2850_v50  ;;  %v2877_v47 = vadd.f32 %v2876_v42, %v2875_v39  ;;  %v2965_v48 = vadd.f32 %v2964_v43, %v2963_v41 }
 0x128   : > { %v3842_v38 = vadd.f32 %v2965_v48, %v2853_v56 }
 0x12a   : > { %v2878_v49 = vpop.f32.mrb[24].mxu0  ;;  %v2966_v51 = vpop.f32.mrb[24].mxu1 }
 0x12b   : > { %v2879_v44 = vpop.f32.mrb[25].mxu0  ;;  %v2967_v53 = vpop.f32.mrb[25].mxu1 }
 0x12c   : > { %v2880_v54 = vadd.f32 %v2879_v44, %v2878_v49  ;;  %v2968_v55 = vadd.f32 %v2967_v53, %v2966_v51  ;;  %v2881_v58 = vpop.f32.mrb[26].mxu0  ;;  %v2969_v59 = vpop.f32.mrb[26].mxu1 }
 0x12d   : > { %v2882_v60 = vpop.f32.mrb[27].mxu0  ;;  %v2970_v61 = vpop.f32.mrb[27].mxu1 }
 0x12e   : > { %v3844_v63 = vadd.f32 %v2968_v55, %v2856_v62  ;;  %v2883_v1 = vadd.f32 %v2882_v60, %v2881_v58  ;;  %v2971_v2 = vadd.f32 %v2970_v61, %v2969_v59 }
 0x130   : > { %v3846_v50 = vadd.f32 %v2971_v2, %v2859_v4 }
 0x132   : > { %v2884_v3 = vpop.f32.mrb[28].mxu0  ;;  %v2972_v6 = vpop.f32.mrb[28].mxu1 }
 0x133   : > { %v2885_v56 = vpop.f32.mrb[29].mxu0  ;;  %v2973_v7 = vpop.f32.mrb[29].mxu1 }
 0x134   : > { %v2886_v8 = vadd.f32 %v2885_v56, %v2884_v3  ;;  %v2974_v9 = vadd.f32 %v2973_v7, %v2972_v6  ;;  %v2887_v11 = vpop.f32.mrb[30].mxu0  ;;  %v2975_v13 = vpop.f32.mrb[30].mxu1 }
 0x135   : > { %v2888_v14 = vpop.f32.mrb[31].mxu0  ;;  %v2976_v15 = vpop.f32.mrb[31].mxu1 }
 0x136   : > { %v3848_v18 = vadd.f32 %v2974_v9, %v2862_v10  ;;  %v2889_v19 = vadd.f32 %v2888_v14, %v2887_v11  ;;  %v2977_v20 = vadd.f32 %v2976_v15, %v2975_v13 }
 0x138   : > { %v3850_v62 = vadd.f32 %v2977_v20, %v2865_v16 }
 0x13a   : > { %v2890_v21 = vpop.f32.mrb[32].mxu0  ;;  %v2978_v23 = vpop.f32.mrb[32].mxu1 }
 0x13b   : > { %v2891_v4 = vpop.f32.mrb[33].mxu0  ;;  %v2979_v24 = vpop.f32.mrb[33].mxu1 }
 0x13c   : > { %v2892_v25 = vadd.f32 %v2891_v4, %v2890_v21  ;;  %v2980_v26 = vadd.f32 %v2979_v24, %v2978_v23  ;;  %v2893_v27 = vpop.f32.mrb[34].mxu0  ;;  %v2981_v30 = vpop.f32.mrb[34].mxu1 }
 0x13d   : > { %v2894_v32 = vpop.f32.mrb[35].mxu0  ;;  %v2982_v33 = vpop.f32.mrb[35].mxu1 }
 0x13e   : > { %v3852_v34 = vadd.f32 %v2980_v26, %v2868_v22  ;;  %v2895_v35 = vadd.f32 %v2894_v32, %v2893_v27  ;;  %v2983_v37 = vadd.f32 %v2982_v33, %v2981_v30 }
 0x140   : > { %v3854_v10 = vadd.f32 %v2983_v37, %v2871_v29 }
 0x142   : > { %v2896_v39 = vpop.f32.mrb[36].mxu0  ;;  %v2984_v41 = vpop.f32.mrb[36].mxu1 }
 0x143   : > { %v2897_v16 = vpop.f32.mrb[37].mxu0  ;;  %v2985_v42 = vpop.f32.mrb[37].mxu1 }
 0x144   : > { %v3856_v43 = vadd.f32 %v2897_v16, %v2896_v39  ;;  %v2986_v48 = vadd.f32 %v2985_v42, %v2984_v41  ;;  %v2899_v49 = vpop.f32.mrb[38].mxu0  ;;  %v2987_v51 = vpop.f32.mrb[38].mxu1 }
 0x145   : > { %v2900_v44 = vpop.f32.mrb[39].mxu0  ;;  %v2988_v53 = vpop.f32.mrb[39].mxu1 }
 0x146   : > { %v3858_v55 = vadd.f32 %v2986_v48, %v2874_v36  ;;  %v2901_v58 = vadd.f32 %v2900_v44, %v2899_v49  ;;  %v2989_v22 = vadd.f32 %v2988_v53, %v2987_v51 }
 0x148   : > { %v3860_v59 = vadd.f32 %v2989_v22, %v2877_v47 }
 0x14a   : > { %v2902_v60 = vpop.f32.mrb[40].mxu0  ;;  %v2990_v29 = vpop.f32.mrb[40].mxu1 }
 0x14b   : > { %v2903_v61 = vpop.f32.mrb[41].mxu0  ;;  %v2991_v2 = vpop.f32.mrb[41].mxu1 }
 0x14c   : > { %v3862_v3 = vadd.f32 %v2903_v61, %v2902_v60  ;;  %v2992_v6 = vadd.f32 %v2991_v2, %v2990_v29  ;;  %v2905_v56 = vpop.f32.mrb[42].mxu0  ;;  %v2993_v7 = vpop.f32.mrb[42].mxu1 }
 0x14d   : > { %v2906_v9 = vpop.f32.mrb[43].mxu0  ;;  %v2994_v11 = vpop.f32.mrb[43].mxu1 }
 0x14e   : > { %v3864_v13 = vadd.f32 %v2992_v6, %v2880_v54  ;;  %v3866_v14 = vadd.f32 %v2906_v9, %v2905_v56  ;;  %v2995_v36 = vadd.f32 %v2994_v11, %v2993_v7 }
 0x150   : > { %v3868_v15 = vadd.f32 %v2995_v36, %v2883_v1 }
 0x152   : > { %v2908_v47 = vpop.f32.mrb[44].mxu0  ;;  %v2996_v20 = vpop.f32.mrb[44].mxu1 }
 0x153   : > { %v2909_v21 = vpop.f32.mrb[45].mxu0  ;;  %v2997_v23 = vpop.f32.mrb[45].mxu1 }
 0x154   : > { %v3870_v4 = vadd.f32 %v2909_v21, %v2908_v47  ;;  %v2998_v24 = vadd.f32 %v2997_v23, %v2996_v20  ;;  %v2911_v26 = vpop.f32.mrb[46].mxu0  ;;  %v2999_v27 = vpop.f32.mrb[46].mxu1 }
 0x155   : > { %v2912_v30 = vpop.f32.mrb[47].mxu0  ;;  %v3000_v32 = vpop.f32.mrb[47].mxu1 }
 0x156   : > { %v3872_v33 = vadd.f32 %v2998_v24, %v2886_v8  ;;  %v3874_v54 = vadd.f32 %v2912_v30, %v2911_v26  ;;  %v3001_v37 = vadd.f32 %v3000_v32, %v2999_v27 }
 0x158   : > { %v3876_v39 = vadd.f32 %v3001_v37, %v2889_v19 }
 0x15a   : > { %v3002_v1 = vpop.f32.mrb[48].mxu1  ;;  %v3066_v41 = vpop.f32.mrb[48].mxu0 }
 0x15b   : > { %v3003_v16 = vpop.f32.mrb[49].mxu1  ;;  %v3067_v42 = vpop.f32.mrb[49].mxu0 }
 0x15c   : > { %v3004_v48 = vadd.f32 %v3003_v16, %v3002_v1  ;;  %v3068_v49 = vadd.f32 %v3067_v42, %v3066_v41  ;;  %v3005_v51 = vpop.f32.mrb[50].mxu1  ;;  %v3069_v44 = vpop.f32.mrb[50].mxu0 }
 0x15d   : > { %v3006_v53 = vpop.f32.mrb[51].mxu1  ;;  %v3070_v22 = vpop.f32.mrb[51].mxu0 }
 0x15e   : > { %v3878_v60 = vadd.f32 %v3004_v48, %v2892_v25  ;;  %v3007_v29 = vadd.f32 %v3006_v53, %v3005_v51  ;;  %v3071_v8 = vadd.f32 %v3070_v22, %v3069_v44  ;;  %v3881_v61 = vadd.f32 %v3068_v49, %v3836_v28 }
 0x160   : > { %v3883_v2 = vadd.f32 %v3007_v29, %v2895_v35  ;;  %v3886_v19 = vadd.f32 %v3071_v8, %v3838_v31 }
 0x162   : > { %v3008_v6 = vpop.f32.mrb[52].mxu1  ;;  %v3072_v56 = vpop.f32.mrb[52].mxu0 }
 0x163   : > { %v3009_v7 = vpop.f32.mrb[53].mxu1  ;;  %v3073_v9 = vpop.f32.mrb[53].mxu0 }
 0x164   : > { %v3010_v11 = vadd.f32 %v3009_v7, %v3008_v6  ;;  %v3074_v36 = vadd.f32 %v3073_v9, %v3072_v56  ;;  %v3011_v47 = vpop.f32.mrb[54].mxu1  ;;  %v3075_v20 = vpop.f32.mrb[54].mxu0 }
 0x165   : > { %v3012_v25 = vpop.f32.mrb[55].mxu1  ;;  %v3076_v21 = vpop.f32.mrb[55].mxu0 }
 0x166   : > { %v3889_v23 = vadd.f32 %v3010_v11, %v3856_v43  ;;  %v3013_v28 = vadd.f32 %v3012_v25, %v3011_v47  ;;  %v3077_v24 = vadd.f32 %v3076_v21, %v3075_v20  ;;  %v3892_v35 = vadd.f32 %v3074_v36, %v3840_v46 }
 0x168   : > { %v3894_v31 = vadd.f32 %v3013_v28, %v2901_v58  ;;  %v3897_v26 = vadd.f32 %v3077_v24, %v3842_v38 }
 0x16a   : > { %v3014_v27 = vpop.f32.mrb[56].mxu1  ;;  %v3078_v30 = vpop.f32.mrb[56].mxu0 }
 0x16b   : > { %v3015_v32 = vpop.f32.mrb[57].mxu1  ;;  %v3079_v37 = vpop.f32.mrb[57].mxu0 }
 0x16c   : > { %v3016_v1 = vadd.f32 %v3015_v32, %v3014_v27  ;;  %v3080_v41 = vadd.f32 %v3079_v37, %v3078_v30  ;;  %v3017_v16 = vpop.f32.mrb[58].mxu1  ;;  %v3081_v42 = vpop.f32.mrb[58].mxu0 }
 0x16d   : > { %v3018_v43 = vpop.f32.mrb[59].mxu1  ;;  %v3082_v48 = vpop.f32.mrb[59].mxu0 }
 0x16e   : > { %v3900_v49 = vadd.f32 %v3016_v1, %v3862_v3  ;;  %v3019_v46 = vadd.f32 %v3018_v43, %v3017_v16  ;;  %v3083_v51 = vadd.f32 %v3082_v48, %v3081_v42  ;;  %v3903_v58 = vadd.f32 %v3080_v41, %v3844_v63 }
 0x170   : > { %v3906_v38 = vadd.f32 %v3019_v46, %v3866_v14  ;;  %v3909_v44 = vadd.f32 %v3083_v51, %v3846_v50 }
 0x172   : > { %v3020_v53 = vpop.f32.mrb[60].mxu1  ;;  %v3084_v22 = vpop.f32.mrb[60].mxu0 }
 0x173   : > { %v3021_v29 = vpop.f32.mrb[61].mxu1  ;;  %v3085_v8 = vpop.f32.mrb[61].mxu0 }
 0x174   : > { %v3022_v6 = vadd.f32 %v3021_v29, %v3020_v53  ;;  %v3086_v56 = vadd.f32 %v3085_v8, %v3084_v22  ;;  %v3023_v7 = vpop.f32.mrb[62].mxu1  ;;  %v3087_v3 = vpop.f32.mrb[62].mxu0 }
 0x175   : > { %v3024_v9 = vpop.f32.mrb[63].mxu1  ;;  %v3088_v11 = vpop.f32.mrb[63].mxu0 }
 0x176   : > { %v3912_v36 = vadd.f32 %v3022_v6, %v3870_v4  ;;  %v3025_v63 = vadd.f32 %v3024_v9, %v3023_v7  ;;  %v3089_v47 = vadd.f32 %v3088_v11, %v3087_v3  ;;  %v3915_v14 = vadd.f32 %v3086_v56, %v3848_v18 }
 0x178   : > { %v3918_v50 = vadd.f32 %v3025_v63, %v3874_v54  ;;  %v3921_v20 = vadd.f32 %v3089_v47, %v3850_v62 }
 0x17a   : > { %v3026_v25 = vpop.f32.mrb[64].mxu1  ;;  %v3090_v21 = vpop.f32.mrb[64].mxu0 }
 0x17b   : > { %v3027_v28 = vpop.f32.mrb[65].mxu1  ;;  %v3091_v24 = vpop.f32.mrb[65].mxu0 }
 0x17c   : > { %v3028_v27 = vadd.f32 %v3027_v28, %v3026_v25  ;;  %v3092_v30 = vadd.f32 %v3091_v24, %v3090_v21  ;;  %v3029_v32 = vpop.f32.mrb[66].mxu1  ;;  %v3093_v4 = vpop.f32.mrb[66].mxu0 }
 0x17d   : > { %v3030_v37 = vpop.f32.mrb[67].mxu1  ;;  %v3094_v1 = vpop.f32.mrb[67].mxu0 }
 0x17e   : > { %v3924_v41 = vadd.f32 %v3028_v27, %v3819_v40  ;;  %v3031_v18 = vadd.f32 %v3030_v37, %v3029_v32  ;;  %v3095_v16 = vadd.f32 %v3094_v1, %v3093_v4  ;;  %v3927_v54 = vadd.f32 %v3092_v30, %v3852_v34 }
 0x180   : > { %v3930_v62 = vadd.f32 %v3031_v18, %v3821_v45  ;;  %v3933_v42 = vadd.f32 %v3095_v16, %v3854_v10 }
 0x182   : > { %v3032_v43 = vpop.f32.mrb[68].mxu1  ;;  %v3096_v48 = vpop.f32.mrb[68].mxu0 }
 0x183   : > { %v3033_v46 = vpop.f32.mrb[69].mxu1  ;;  %v3097_v51 = vpop.f32.mrb[69].mxu0 }
 0x184   : > { %v3034_v53 = vadd.f32 %v3033_v46, %v3032_v43  ;;  %v3098_v22 = vadd.f32 %v3097_v51, %v3096_v48  ;;  %v3035_v29 = vpop.f32.mrb[70].mxu1  ;;  %v3099_v40 = vpop.f32.mrb[70].mxu0 }
 0x185   : > { %v3036_v8 = vpop.f32.mrb[71].mxu1  ;;  %v3100_v6 = vpop.f32.mrb[71].mxu0 }
 0x186   : > { %v3936_v56 = vadd.f32 %v3034_v53, %v3824_v52  ;;  %v3037_v34 = vadd.f32 %v3036_v8, %v3035_v29  ;;  %v3101_v7 = vadd.f32 %v3100_v6, %v3099_v40  ;;  %v3939_v45 = vadd.f32 %v3098_v22, %v3858_v55 }
 0x187   : > { %v2130_v8 = vlaneseq }
 0x188   : > { %v3942_v10 = vadd.f32 %v3037_v34, %v3826_v57  ;;  %v3945_v3 = vadd.f32 %v3101_v7, %v3860_v59  ;;  %v3974_v7 = vld [vmem:[%s4198_s2] ss:$0 sm:$0xff] }
 0x18a   : > { %v3038_v9 = vpop.f32.mrb[72].mxu1  ;;  %v3102_v11 = vpop.f32.mrb[72].mxu0 }
 0x18b   : > { %v3039_v63 = vpop.f32.mrb[73].mxu1  ;;  %v3103_v47 = vpop.f32.mrb[73].mxu0 }
 0x18c   : > { %v3040_v25 = vadd.f32 %v3039_v63, %v3038_v9  ;;  %v3104_v21 = vadd.f32 %v3103_v47, %v3102_v11  ;;  %v3041_v28 = vpop.f32.mrb[74].mxu1  ;;  %v3105_v52 = vpop.f32.mrb[74].mxu0 }
 0x18d   : > { %v3042_v24 = vpop.f32.mrb[75].mxu1  ;;  %v3106_v27 = vpop.f32.mrb[75].mxu0 }
 0x18e   : > { %v3948_v30 = vadd.f32 %v3040_v25, %v3828_v0  ;;  %v3043_v55 = vadd.f32 %v3042_v24, %v3041_v28  ;;  %v3107_v32 = vadd.f32 %v3106_v27, %v3105_v52  ;;  %v3951_v57 = vadd.f32 %v3104_v21, %v3864_v13 }
 0x18f   : > { %v3984_v21 = vand.u32 127, %v2130_v8 }
 0x190   : > { %v3954_v59 = vadd.f32 %v3043_v55, %v3830_v5  ;;  %v3957_v4 = vadd.f32 %v3107_v32, %v3868_v15 }
 0x191   : > { %vm2134_vm1 = vcmp.ge.s32.totalorder %v3984_v21, 16 }
 0x192   : > { %v3044_v37 = vpop.f32.mrb[76].mxu1  ;;  %v3108_v1 = vpop.f32.mrb[76].mxu0 }
 0x193   : > { %v3045_v18 = vpop.f32.mrb[77].mxu1  ;;  %v3109_v16 = vpop.f32.mrb[77].mxu0 }
 0x194   : > { %v3046_v43 = vadd.f32 %v3045_v18, %v3044_v37  ;;  %v3110_v48 = vadd.f32 %v3109_v16, %v3108_v1  ;;  %v3047_v46 = vpop.f32.mrb[78].mxu1  ;;  %v3111_v0 = vpop.f32.mrb[78].mxu0 }
 0x195   : > { %v3048_v51 = vpop.f32.mrb[79].mxu1  ;;  %v3112_v53 = vpop.f32.mrb[79].mxu0 }
 0x196   : > { %v3960_v22 = vadd.f32 %v3046_v43, %v3832_v12  ;;  %v3049_v13 = vadd.f32 %v3048_v51, %v3047_v46  ;;  %v3113_v29 = vadd.f32 %v3112_v53, %v3111_v0  ;;  %v3963_v5 = vadd.f32 %v3110_v48, %v3872_v33 }
 0x198   : > { %v3966_v15 = vadd.f32 %v3049_v13, %v3834_v17  ;;  %v3969_v40 = vadd.f32 %v3113_v29, %v3876_v39  ;;  %v3980_v17 = vld [vmem:[%s4199_s3] ss:$0 sm:$0xff] }
 0x19a   : > { %v3114_v6 = vpop.f32.mrb[80].mxu0  ;;  %v3186_v34 = vpop.f32.mrb[80].mxu1 }
 0x19b   : > { %v1933_v12 = vadd.f32 %v3186_v34, %v3892_v35  ;;  %v3115_v9 = vpop.f32.mrb[81].mxu0  ;;  %v1924_v11 = vpop.f32.mrb[81].mxu1 }
 0x19c   : > { %v3116_v33 = vadd.f32 %v3115_v9, %v3114_v6  ;;  %v1925_v39 = vadd.f32 %v1924_v11, %v3881_v61  ;;  %v3117_v63 = vpop.f32.mrb[82].mxu0  ;;  %v3187_v47 = vpop.f32.mrb[82].mxu1 }
 0x19d   : > { %v2060_v25 = vmul.f32 %v3974_v7, %v1933_v12  ;;  %v1936_v28 = vadd.f32 %v3187_v47, %v3897_v26  ;;  %v3118_v35 = vpop.f32.mrb[83].mxu0  ;;  %v1927_v52 = vpop.f32.mrb[83].mxu1 }
 0x19e   : > { %v2058_v24 = vmul.f32 %v3974_v7, %v1925_v39  ;;  %v3119_v27 = vadd.f32 %v3118_v35, %v3117_v63  ;;  %v1928_v55 = vadd.f32 %v1927_v52, %v3886_v19  ;;  %v3990_v32 = vadd.f32 %v3116_v33, %v3878_v60 }
 0x19f   : > { %v2099_v61 = vadd.f32 %v3980_v17, %v2060_v25  ;;  %v2061_v37 = vmul.f32 %v3974_v7, %v1936_v28 }
 0x1a0   : > { %v2097_v1 = vadd.f32 %v3980_v17, %v2058_v24  ;;  %v2059_v18 = vmul.f32 %v3974_v7, %v1928_v55  ;;  %v3997_v26 = vadd.f32 %v3119_v27, %v3883_v2 }
 0x1a1   : > { %v2137_v16 = vmax.f32 %v2099_v61, 0.0  ;;  %v2100_v43 = vadd.f32 %v3980_v17, %v2061_v37 }
 0x1a2   : > { %v2135_v19 = vmax.f32 %v2097_v1, 0.0  ;;  %v2098_v60 = vadd.f32 %v3980_v17, %v2059_v18  ;;  %v3120_v48 = vpop.f32.mrb[84].mxu0  ;;  %v3190_v46 = vpop.f32.mrb[84].mxu1 }
 0x1a3   : > { %v2138_v0 = vmax.f32 %v2100_v43, 0.0  ;;  %v1949_v51 = vadd.f32 %v3190_v46, %v3915_v14  ;;  %v3121_v53 = vpop.f32.mrb[85].mxu0  ;;  %v1940_v13 = vpop.f32.mrb[85].mxu1  ;;  %v2169_v2 = vsel %vm2134_vm1, %v2137_v16, %v2099_v61 }
 0x1a4   : > { %v2136_v29 = vmax.f32 %v2098_v60, 0.0  ;;  %v3122_v8 = vadd.f32 %v3121_v53, %v3120_v48  ;;  %v1941_v6 = vadd.f32 %v1940_v13, %v3903_v58  ;;  %v3123_v34 = vpop.f32.mrb[86].mxu0  ;;  %v3191_v12 = vpop.f32.mrb[86].mxu1  ;;  %v2167_v9 = vsel %vm2134_vm1, %v2135_v19, %v2097_v1 }
 0x1a5   : > { %v2170_v14 = vsel %vm2134_vm1, %v2138_v0, %v2100_v43  ;;  %v2064_v11 = vmul.f32 %v3974_v7, %v1949_v51  ;;  %v1952_v33 = vadd.f32 %v3191_v12, %v3921_v20  ;;  %v3124_v58 = vpop.f32.mrb[87].mxu0  ;;  %v1943_v39 = vpop.f32.mrb[87].mxu1 }
 0x1a6   : > { %v2739_v63 = vpack.c.bf16 %v2170_v14, %v2169_v2  ;;  %v2168_v47 = vsel %vm2134_vm1, %v2136_v29, %v2098_v60  ;;  %v2062_v25 = vmul.f32 %v3974_v7, %v1941_v6  ;;  %v3125_v28 = vadd.f32 %v3124_v58, %v3123_v34 }
 0x1a7   : > { %v2734_v35 = vpack.c.bf16 %v2168_v47, %v2167_v9  ;;  %v2103_v52 = vadd.f32 %v3980_v17, %v2064_v11  ;;  %v2065_v24 = vmul.f32 %v3974_v7, %v1952_v33  ;;  %v1944_v27 = vadd.f32 %v1943_v39, %v3909_v44 }
 0x1a8   : > { %2811 = vst [vmem:[%s4012_s23 + $0x8] sm:$0xff] %v2739_v63   ;;  %v2101_v55 = vadd.f32 %v3980_v17, %v2062_v25  ;;  %v4027_v20 = vadd.f32 %v3122_v8, %v3889_v23  ;;  %v4030_v61 = vadd.f32 %v3125_v28, %v3894_v31 }
 0x1a9   : > { %2735 = vst [vmem:[%s4012_s23] sm:$0xff] %v2734_v35   ;;  %v2141_v37 = vmax.f32 %v2103_v52, 0.0  ;;  %v2104_v1 = vadd.f32 %v3980_v17, %v2065_v24  ;;  %v2063_v18 = vmul.f32 %v3974_v7, %v1944_v27 }
 0x1aa   : > { %v2139_v16 = vmax.f32 %v2101_v55, 0.0  ;;  %v3126_v43 = vpop.f32.mrb[88].mxu0  ;;  %v3194_v19 = vpop.f32.mrb[88].mxu1 }
 0x1ab   : > { %v2142_v60 = vmax.f32 %v2104_v1, 0.0  ;;  %v2102_v44 = vadd.f32 %v3980_v17, %v2063_v18  ;;  %v1965_v48 = vadd.f32 %v3194_v19, %v3939_v45  ;;  %v3127_v46 = vpop.f32.mrb[89].mxu0  ;;  %v1956_v23 = vpop.f32.mrb[89].mxu1  ;;  %v2173_v31 = vsel %vm2134_vm1, %v2141_v37, %v2103_v52 }
 0x1ac   : > { %v2171_v0 = vsel %vm2134_vm1, %v2139_v16, %v2101_v55  ;;  %v3128_v51 = vadd.f32 %v3127_v46, %v3126_v43  ;;  %v1957_v53 = vadd.f32 %v1956_v23, %v3927_v54  ;;  %v3129_v13 = vpop.f32.mrb[90].mxu0  ;;  %v3195_v2 = vpop.f32.mrb[90].mxu1 }
 0x1ad   : > { %v2174_v29 = vsel %vm2134_vm1, %v2142_v60, %v2104_v1  ;;  %v2140_v8 = vmax.f32 %v2102_v44, 0.0  ;;  %v2068_v45 = vmul.f32 %v3974_v7, %v1965_v48  ;;  %v1968_v6 = vadd.f32 %v3195_v2, %v3945_v3  ;;  %v3130_v34 = vpop.f32.mrb[91].mxu0  ;;  %v1959_v12 = vpop.f32.mrb[91].mxu1 }
 0x1ae   : > { %v2749_v9 = vpack.c.bf16 %v2174_v29, %v2173_v31  ;;  %v2066_v14 = vmul.f32 %v3974_v7, %v1957_v53  ;;  %v3131_v11 = vadd.f32 %v3130_v34, %v3129_v13  ;;  %v1960_v54 = vadd.f32 %v1959_v12, %v3933_v42 }
 0x1af   : > { %v2172_v33 = vsel %vm2134_vm1, %v2140_v8, %v2102_v44  ;;  %v2107_v58 = vadd.f32 %v3980_v17, %v2068_v45  ;;  %v2069_v39 = vmul.f32 %v3974_v7, %v1968_v6  ;;  %v4053_v63 = vadd.f32 %v3128_v51, %v3900_v49 }
 0x1b0   : > { %2813 = vst [vmem:[%s4012_s23 + $0x18] sm:$0xff] %v2749_v9   ;;  %v2744_v3 = vpack.c.bf16 %v2172_v33, %v2171_v0  ;;  %v2105_v47 = vadd.f32 %v3980_v17, %v2066_v14  ;;  %v2067_v25 = vmul.f32 %v3974_v7, %v1960_v54  ;;  %v4059_v28 = vadd.f32 %v3131_v11, %v3906_v38 }
 0x1b1   : > { %v2145_v42 = vmax.f32 %v2107_v58, 0.0  ;;  %v2108_v35 = vadd.f32 %v3980_v17, %v2069_v39 }
 0x1b2   : > { %2812 = vst [vmem:[%s4012_s23 + $0x10] sm:$0xff] %v2744_v3   ;;  %v2143_v52 = vmax.f32 %v2105_v47, 0.0  ;;  %v2106_v24 = vadd.f32 %v3980_v17, %v2067_v25  ;;  %v3132_v27 = vpop.f32.mrb[92].mxu0  ;;  %v3198_v55 = vpop.f32.mrb[92].mxu1 }
 0x1b3   : > { %v2146_v49 = vmax.f32 %v2108_v35, 0.0  ;;  %v1981_v37 = vadd.f32 %v3198_v55, %v3963_v5  ;;  %v3133_v1 = vpop.f32.mrb[93].mxu0  ;;  %v1972_v18 = vpop.f32.mrb[93].mxu1  ;;  %v2177_v16 = vsel %vm2134_vm1, %v2145_v42, %v2107_v58 }
 0x1b4   : > { %v2144_v43 = vmax.f32 %v2106_v24, 0.0  ;;  %v3134_v38 = vadd.f32 %v3133_v1, %v3132_v27  ;;  %v1973_v19 = vadd.f32 %v1972_v18, %v3951_v57  ;;  %v3135_v60 = vpop.f32.mrb[94].mxu0  ;;  %v3199_v44 = vpop.f32.mrb[94].mxu1  ;;  %v2175_v48 = vsel %vm2134_vm1, %v2143_v52, %v2105_v47 }
 0x1b5   : > { %v2178_v46 = vsel %vm2134_vm1, %v2146_v49, %v2108_v35  ;;  %v2072_v5 = vmul.f32 %v3974_v7, %v1981_v37  ;;  %v1984_v23 = vadd.f32 %v3199_v44, %v3969_v40  ;;  %v3136_v31 = vpop.f32.mrb[95].mxu0  ;;  %v1975_v0 = vpop.f32.mrb[95].mxu1 }
 0x1b6   : > { %v2759_v51 = vpack.c.bf16 %v2178_v46, %v2177_v16  ;;  %v2176_v57 = vsel %vm2134_vm1, %v2144_v43, %v2106_v24  ;;  %v2070_v53 = vmul.f32 %v3974_v7, %v1973_v19  ;;  %v3137_v13 = vadd.f32 %v3136_v31, %v3135_v60 }
 0x1b7   : > { %v2754_v2 = vpack.c.bf16 %v2176_v57, %v2175_v48  ;;  %v2111_v29 = vadd.f32 %v3980_v17, %v2072_v5  ;;  %v2073_v8 = vmul.f32 %v3974_v7, %v1984_v23  ;;  %v1976_v45 = vadd.f32 %v1975_v0, %v3957_v4 }
 0x1b8   : > { %2815 = vst [vmem:[%s4012_s23 + $0x28] sm:$0xff] %v2759_v51   ;;  %v2109_v6 = vadd.f32 %v3980_v17, %v2070_v53  ;;  %v1852_v40 = vadd.f32 %v3134_v38, %v3912_v36  ;;  %v1855_v34 = vadd.f32 %v3137_v13, %v3918_v50 }
 0x1b9   : > { %2814 = vst [vmem:[%s4012_s23 + $0x20] sm:$0xff] %v2754_v2   ;;  %v2149_v12 = vmax.f32 %v2111_v29, 0.0  ;;  %v2112_v9 = vadd.f32 %v3980_v17, %v2073_v8  ;;  %v2071_v14 = vmul.f32 %v3974_v7, %v1976_v45 }
 0x1ba   : > { %v2147_v11 = vmax.f32 %v2109_v6, 0.0  ;;  %v3138_v54 = vpop.f32.mrb[96].mxu0  ;;  %v3202_v33 = vpop.f32.mrb[96].mxu1 }
 0x1bb   : > { %v2150_v58 = vmax.f32 %v2112_v9, 0.0  ;;  %v2110_v39 = vadd.f32 %v3980_v17, %v2071_v14  ;;  %v1997_v4 = vadd.f32 %v3202_v33, %v4027_v20  ;;  %v3139_v3 = vpop.f32.mrb[97].mxu0  ;;  %v1988_v47 = vpop.f32.mrb[97].mxu1  ;;  %v2181_v36 = vsel %vm2134_vm1, %v2149_v12, %v2111_v29 }
 0x1bc   : > { %v2179_v50 = vsel %vm2134_vm1, %v2147_v11, %v2109_v6  ;;  %v3140_v25 = vadd.f32 %v3139_v3, %v3138_v54  ;;  %v1989_v42 = vadd.f32 %v1988_v47, %v3990_v32  ;;  %v3141_v35 = vpop.f32.mrb[98].mxu0  ;;  %v3203_v52 = vpop.f32.mrb[98].mxu1 }
 0x1bd   : > { %v2182_v24 = vsel %vm2134_vm1, %v2150_v58, %v2112_v9  ;;  %v2148_v27 = vmax.f32 %v2110_v39, 0.0  ;;  %v2076_v20 = vmul.f32 %v3974_v7, %v1997_v4  ;;  %v2000_v55 = vadd.f32 %v3203_v52, %v4030_v61  ;;  %v3142_v49 = vpop.f32.mrb[99].mxu0  ;;  %v1991_v37 = vpop.f32.mrb[99].mxu1 }
 0x1be   : > { %v2769_v1 = vpack.c.bf16 %v2182_v24, %v2181_v36  ;;  %v2074_v18 = vmul.f32 %v3974_v7, %v1989_v42  ;;  %v3143_v16 = vadd.f32 %v3142_v49, %v3141_v35  ;;  %v1992_v32 = vadd.f32 %v1991_v37, %v3997_v26 }
 0x1bf   : > { %v2180_v43 = vsel %vm2134_vm1, %v2148_v27, %v2110_v39  ;;  %v2115_v38 = vadd.f32 %v3980_v17, %v2076_v20  ;;  %v2077_v19 = vmul.f32 %v3974_v7, %v2000_v55  ;;  %v1860_v60 = vadd.f32 %v3140_v25, %v3924_v41 }
 0x1c0   : > { %2817 = vst [vmem:[%s4012_s23 + $0x38] sm:$0xff] %v2769_v1   ;;  %v2764_v61 = vpack.c.bf16 %v2180_v43, %v2179_v50  ;;  %v2113_v44 = vadd.f32 %v3980_v17, %v2074_v18  ;;  %v2075_v48 = vmul.f32 %v3974_v7, %v1992_v32  ;;  %v4109_v46 = vadd.f32 %v3143_v16, %v3930_v62 }
 0x1c1   : > { %v2153_v5 = vmax.f32 %v2115_v38, 0.0  ;;  %v2116_v26 = vadd.f32 %v3980_v17, %v2077_v19 }
 0x1c2   : > { %2816 = vst [vmem:[%s4012_s23 + $0x30] sm:$0xff] %v2764_v61   ;;  %v2151_v23 = vmax.f32 %v2113_v44, 0.0  ;;  %v2114_v31 = vadd.f32 %v3980_v17, %v2075_v48  ;;  %v3144_v0 = vpop.f32.mrb[100].mxu0  ;;  %v3206_v51 = vpop.f32.mrb[100].mxu1 }
 0x1c3   : > { %v2154_v57 = vmax.f32 %v2116_v26, 0.0  ;;  %v2013_v41 = vadd.f32 %v3206_v51, %v1852_v40  ;;  %v3145_v53 = vpop.f32.mrb[101].mxu0  ;;  %v2004_v13 = vpop.f32.mrb[101].mxu1  ;;  %v2185_v2 = vsel %vm2134_vm1, %v2153_v5, %v2115_v38 }
 0x1c4   : > { %v2152_v29 = vmax.f32 %v2114_v31, 0.0  ;;  %v3146_v8 = vadd.f32 %v3145_v53, %v3144_v0  ;;  %v2005_v62 = vadd.f32 %v2004_v13, %v4053_v63  ;;  %v3147_v45 = vpop.f32.mrb[102].mxu0  ;;  %v3207_v6 = vpop.f32.mrb[102].mxu1  ;;  %v2183_v12 = vsel %vm2134_vm1, %v2151_v23, %v2113_v44 }
 0x1c5   : > { %v2186_v9 = vsel %vm2134_vm1, %v2154_v57, %v2116_v26  ;;  %v2080_v40 = vmul.f32 %v3974_v7, %v2013_v41  ;;  %v2016_v14 = vadd.f32 %v3207_v6, %v1855_v34  ;;  %v3148_v11 = vpop.f32.mrb[103].mxu0  ;;  %v2007_v54 = vpop.f32.mrb[103].mxu1 }
 0x1c6   : > { %v2779_v33 = vpack.c.bf16 %v2186_v9, %v2185_v2  ;;  %v2184_v58 = vsel %vm2134_vm1, %v2152_v29, %v2114_v31  ;;  %v2078_v63 = vmul.f32 %v3974_v7, %v2005_v62  ;;  %v3149_v39 = vadd.f32 %v3148_v11, %v3147_v45 }
 0x1c7   : > { %v2774_v4 = vpack.c.bf16 %v2184_v58, %v2183_v12  ;;  %v2119_v3 = vadd.f32 %v3980_v17, %v2080_v40  ;;  %v2081_v47 = vmul.f32 %v3974_v7, %v2016_v14  ;;  %v2008_v36 = vadd.f32 %v2007_v54, %v4059_v28 }
 0x1c8   : > { %2819 = vst [vmem:[%s4012_s23 + $0x48] sm:$0xff] %v2779_v33   ;;  %v2117_v50 = vadd.f32 %v3980_v17, %v2078_v63  ;;  %v1868_v34 = vadd.f32 %v3146_v8, %v3936_v56  ;;  %v1871_v25 = vadd.f32 %v3149_v39, %v3942_v10 }
 0x1c9   : > { %2818 = vst [vmem:[%s4012_s23 + $0x40] sm:$0xff] %v2774_v4   ;;  %v2157_v42 = vmax.f32 %v2119_v3, 0.0  ;;  %v2120_v35 = vadd.f32 %v3980_v17, %v2081_v47  ;;  %v2079_v52 = vmul.f32 %v3974_v7, %v2008_v36 }
 0x1ca   : > { %v2155_v24 = vmax.f32 %v2117_v50, 0.0  ;;  %v3150_v27 = vpop.f32.mrb[104].mxu0  ;;  %v3210_v20 = vpop.f32.mrb[104].mxu1 }
 0x1cb   : > { %v2158_v55 = vmax.f32 %v2120_v35, 0.0  ;;  %v2118_v49 = vadd.f32 %v3980_v17, %v2079_v52  ;;  %v2029_v28 = vadd.f32 %v3210_v20, %v1868_v34  ;;  %v3151_v37 = vpop.f32.mrb[105].mxu0  ;;  %v2020_v1 = vpop.f32.mrb[105].mxu1  ;;  %v2189_v56 = vsel %vm2134_vm1, %v2157_v42, %v2119_v3 }
 0x1cc   : > { %v2187_v10 = vsel %vm2134_vm1, %v2155_v24, %v2117_v50  ;;  %v3152_v18 = vadd.f32 %v3151_v37, %v3150_v27  ;;  %v2021_v16 = vadd.f32 %v2020_v1, %v1860_v60  ;;  %v3153_v32 = vpop.f32.mrb[106].mxu0  ;;  %v3211_v43 = vpop.f32.mrb[106].mxu1 }
 0x1cd   : > { %v2190_v38 = vsel %vm2134_vm1, %v2158_v55, %v2120_v35  ;;  %v2156_v19 = vmax.f32 %v2118_v49, 0.0  ;;  %v2084_v61 = vmul.f32 %v3974_v7, %v2029_v28  ;;  %v2032_v44 = vadd.f32 %v3211_v43, %v1871_v25  ;;  %v3154_v48 = vpop.f32.mrb[107].mxu0  ;;  %v2023_v5 = vpop.f32.mrb[107].mxu1 }
 0x1ce   : > { %v2789_v26 = vpack.c.bf16 %v2190_v38, %v2189_v56  ;;  %v2082_v23 = vmul.f32 %v3974_v7, %v2021_v16  ;;  %v3155_v31 = vadd.f32 %v3154_v48, %v3153_v32  ;;  %v2024_v0 = vadd.f32 %v2023_v5, %v4109_v46 }
 0x1cf   : > { %v2188_v60 = vsel %vm2134_vm1, %v2156_v19, %v2118_v49  ;;  %v2123_v51 = vadd.f32 %v3980_v17, %v2084_v61  ;;  %v2085_v57 = vmul.f32 %v3974_v7, %v2032_v44  ;;  %v1876_v41 = vadd.f32 %v3152_v18, %v3948_v30 }
 0x1d0   : > { %2821 = vst [vmem:[%s4012_s23 + $0x58] sm:$0xff] %v2789_v26   ;;  %v2784_v53 = vpack.c.bf16 %v2188_v60, %v2187_v10  ;;  %v2121_v13 = vadd.f32 %v3980_v17, %v2082_v23  ;;  %v2083_v2 = vmul.f32 %v3974_v7, %v2024_v0  ;;  %v1879_v29 = vadd.f32 %v3155_v31, %v3954_v59 }
 0x1d1   : > { %v2161_v8 = vmax.f32 %v2123_v51, 0.0  ;;  %v2124_v46 = vadd.f32 %v3980_v17, %v2085_v57 }
 0x1d2   : > { %2820 = vst [vmem:[%s4012_s23 + $0x50] sm:$0xff] %v2784_v53   ;;  %v2159_v62 = vmax.f32 %v2121_v13, 0.0  ;;  %v2122_v45 = vadd.f32 %v3980_v17, %v2083_v2  ;;  %v3156_v6 = vpop.f32.mrb[108].mxu0  ;;  %v3214_v12 = vpop.f32.mrb[108].mxu1 }
 0x1d3   : > { %v2162_v9 = vmax.f32 %v2124_v46, 0.0  ;;  %v3157_v40 = vpop.f32.mrb[109].mxu0  ;;  %v2036_v30 = vpop.f32.mrb[109].mxu1  ;;  %v2193_v59 = vsel %vm2134_vm1, %v2161_v8, %v2123_v51 }
 0x1d4   : > { %v2160_v14 = vmax.f32 %v2122_v45, 0.0  ;;  %v3158_v11 = vadd.f32 %v3157_v40, %v3156_v6  ;;  %v2037_v54 = vadd.f32 %v2036_v30, %v1876_v41  ;;  %v3159_v33 = vpop.f32.mrb[110].mxu0  ;;  %v3215_v58 = vpop.f32.mrb[110].mxu1  ;;  %v2191_v63 = vsel %vm2134_vm1, %v2159_v62, %v2121_v13 }
 0x1d5   : > { %v2194_v39 = vsel %vm2134_vm1, %v2162_v9, %v2124_v46  ;;  %v3160_v4 = vpop.f32.mrb[111].mxu0  ;;  %v2039_v3 = vpop.f32.mrb[111].mxu1 }
 0x1d6   : > { %v2799_v47 = vpack.c.bf16 %v2194_v39, %v2193_v59  ;;  %v2192_v36 = vsel %vm2134_vm1, %v2160_v14, %v2122_v45  ;;  %v1884_v50 = vadd.f32 %v3158_v11, %v3960_v22  ;;  %v2086_v34 = vmul.f32 %v3974_v7, %v2037_v54 }
 0x1d7   : > { %v2794_v25 = vpack.c.bf16 %v2192_v36, %v2191_v63  ;;  %v3161_v42 = vadd.f32 %v3160_v4, %v3159_v33  ;;  %v2040_v35 = vadd.f32 %v2039_v3, %v1879_v29 }
 0x1d8   : > { %2823 = vst [vmem:[%s4012_s23 + $0x68] sm:$0xff] %v2799_v47   ;;  %v2045_v52 = vadd.f32 %v3214_v12, %v1884_v50  ;;  %v2125_v24 = vadd.f32 %v3980_v17, %v2086_v34 }
 0x1d9   : > { %2822 = vst [vmem:[%s4012_s23 + $0x60] sm:$0xff] %v2794_v25   ;;  %v1887_v27 = vadd.f32 %v3161_v42, %v3966_v15  ;;  %v2087_v20 = vmul.f32 %v3974_v7, %v2040_v35 }
 0x1da   : > { %v2088_v55 = vmul.f32 %v3974_v7, %v2045_v52  ;;  %v2163_v49 = vmax.f32 %v2125_v24, 0.0 }
 0x1db   : > { %v2048_v22 = vadd.f32 %v3215_v58, %v1887_v27  ;;  %v2126_v28 = vadd.f32 %v3980_v17, %v2087_v20 }
 0x1dc   : > { %v2127_v37 = vadd.f32 %v3980_v17, %v2088_v55  ;;  %v2195_v18 = vsel %vm2134_vm1, %v2163_v49, %v2125_v24 }
 0x1dd   : > { %v2089_v1 = vmul.f32 %v3974_v7, %v2048_v22  ;;  %v2164_v56 = vmax.f32 %v2126_v28, 0.0 }
 0x1de   : > { %v2165_v10 = vmax.f32 %v2127_v37, 0.0 }
 0x1df   : > { %v2128_v15 = vadd.f32 %v3980_v17, %v2089_v1  ;;  %v2196_v16 = vsel %vm2134_vm1, %v2164_v56, %v2126_v28 }
 0x1e0   : > { %v2804_v32 = vpack.c.bf16 %v2196_v16, %v2195_v18  ;;  %v2197_v38 = vsel %vm2134_vm1, %v2165_v10, %v2127_v37 }
 0x1e1   : > { %v2166_v43 = vmax.f32 %v2128_v15, 0.0 }
 0x1e2   : > { %2824 = vst [vmem:[%s4012_s23 + $0x70] sm:$0xff] %v2804_v32  }
 0x1e3   : > { %v2198_v19 = vsel %vm2134_vm1, %v2166_v43, %v2128_v15 }
 0x1e4   : > { %v2809_v7 = vpack.c.bf16 %v2198_v19, %v2197_v38 }
 0x1e6   : > { %2825 = vst [vmem:[%s4012_s23 + $0x78] sm:$0xff] %v2809_v7  }
 0x1e7 PF: > { %s14_s17 = sadd.s32 1, %s3489_s17   ;;  %s4201_s15 = smov %s3485_s16 }
 0x1e8   : > { %p11_p5 = scmp.ge.s32.totalorder %s14_s17, 4   ;;  %s4202_s16 = smov %s4204_s18 }
 0x1ea   :  { %13 = sbr.rel (!%p11_p5) target bundleno = 2 (0x2), region = 75 }

// kernel: d_mask_forward.5
= control target key start
LH: loop header
LB: loop body
LE: loop exit
PB: predicated region body
PF: predicated region fallthrough
CT: control target
= control target key end

     0   :  { %s1753_s18 = smov 0   ;;  %s1755_s19 = smov 0   ;;  %s1984_s0 = inlined_call_operand.vmem [shape: bf16[512,144], index: 0, kind: input, shape index: {}]   ;;  %s1985_s1 = inlined_call_operand.vmem [shape: bf16[144,128], index: 1, kind: input, shape index: {}]   ;;  %s1986_s2 = inlined_call_operand.vmem [shape: f32[1,128], index: 2, kind: input, shape index: {}]   ;;  %s1987_s3 = inlined_call_operand.vmem [shape: f32[1,128], index: 3, kind: input, shape index: {}]   ;;  %s1988_s4 = inlined_call_operand.vmem [shape: bf16[512,128], index: 4, kind: input, shape index: {}]   ;;  %s1989_s5 = inlined_call_operand.vmem [shape: bf16[512,128], index: 5, kind: output, shape index: {}]  }
   0x1   :  { %s1757_s20 = smov 0  }
   0x2 LB: > { %s27_s21 = sadd.s32 1, %s1716_s19  ;;  %p1290_p0 = scmp.ge.s32.totalorder %s1720_s20, 1  ;;  %s1720_s20 = sphi %s1757_s20, %s15_s20   ;;  %s1716_s19 = sphi %s1755_s19, %s1991_s19   ;;  %s1712_s18 = sphi %s1753_s18, %s1990_s18  }
   0x3   : > { %p29_p1 = scmp.ge.s32.totalorder %s27_s21, 2  ;;  %p244_p2 = scmp.lt.s32.totalorder %s1720_s20, 3 }
   0x5   : > { %s1993_s21 = smov (%p29_p1, %s27_s21), 0  ;;  %p245_p3 = pnand %p1290_p0, %p244_p2 }
   0x6   : > { %v1641_v0 = vld [vmem:[%s1985_s1] sm:$0xff] (!%p245_p3)   ;;  %v1722_v1 = vmov (!%p245_p3), 0   ;;  %s1291_s24 = sshll.u32 (!%p245_p3), %s1712_s18, 5  ;;  %v1642_v2 = vld [vmem:[%s1985_s1 + $0x8] sm:$0xff] (!%p245_p3)   ;;  %v1643_v3 = vld [vmem:[%s1985_s1 + $0x10] sm:$0xff] (!%p245_p3)   ;;  %vm578_vm0 = vcmask (!%p245_p3), 130048  }
   0x7   : > { %248 = sbr.rel (%p245_p3) target bundleno = 325 (0x145), region = 40  ;;  %627 = vmatprep.subr.bf16.mxu0 (!%p245_p3), %v1722_v1  ;;  %1598 = vmatprep.subr.bf16.mxu1 (!%p245_p3), %v1722_v1  ;;  %p295_p4 = scmp.lt.s32.totalorder (!%p245_p3), %s1291_s24, 63  ;;  %v1644_v4 = vld [vmem:[%s1985_s1 + $0x18] sm:$0xff] (!%p245_p3)   ;;  %v1645_v7 = vld [vmem:[%s1985_s1 + $0x20] sm:$0xff] (!%p245_p3)   ;;  %v1646_v8 = vld [vmem:[%s1985_s1 + $0x28] sm:$0xff] (!%p245_p3)  }
   0x8   : > { %628 = vmatpush1.bf16.msra.mxu0 (!%p245_p3), %v1641_v0  ;;  %1607 = vmatpush1.bf16.msra.mxu1 (!%p245_p3), %v1641_v0  ;;  %v1647_v9 = vld [vmem:[%s1985_s1 + $0x30] sm:$0xff] (!%p245_p3)   ;;  %v1648_v10 = vld [vmem:[%s1985_s1 + $0x38] sm:$0xff] (!%p245_p3)   ;;  %v1649_v11 = vld [vmem:[%s1985_s1 + $0x40] sm:$0xff] (!%p245_p3)  }
   0x9   : > { %629 = vmatprep.subr.bf16.mxu0 (!%p245_p3), %v1722_v1  ;;  %1599 = vmatprep.subr.bf16.mxu1 (!%p245_p3), %v1722_v1  ;;  %v1865_v42 = vld [vmem:[%s1986_s2] ss:$0 sm:$0xff] (!%p245_p3) }
   0xa   : > { %v1872_v46 = vld [vmem:[%s1987_s3] ss:$0 sm:$0xff] (!%p245_p3) }
   0xc   : > { %630 = vmatpush1.bf16.msra.mxu0 (!%p245_p3), %v1642_v2  ;;  %1608 = vmatpush1.bf16.msra.mxu1 (!%p245_p3), %v1642_v2 }
   0xd   : > { %631 = vmatprep.subr.bf16.mxu0 (!%p245_p3), %v1722_v1  ;;  %1600 = vmatprep.subr.bf16.mxu1 (!%p245_p3), %v1722_v1 }
   0xe   : > { %s1995_s24 = smov (!%p295_p4, %s1291_s24), 63 }
   0xf   : > { %s1391_s29 = sshll.u32 %s1995_s24, 3  ;;  %s1295_s23 = sshll.u32 %s1995_s24, 2 }
  0x10   : > { %s1786_s7 = scalar_lea.vmem %s1984_s0, %s1391_s29  ;;  %632 = vmatpush1.bf16.msra.mxu0 %v1643_v3  ;;  %1609 = vmatpush1.bf16.msra.mxu1 %v1643_v3  ;;  %s1860_s27 = scalar_lea.vmem %s1988_s4, %s1295_s23 }
  0x11   : > { %v1652_v5 = vld [vmem:[%s1786_s7 + $0x4] ss:$8 sps:$4 sm:$0xff]   ;;  %633 = vmatprep.subr.bf16.mxu0 %v1722_v1  ;;  %1601 = vmatprep.subr.bf16.mxu1 %v1722_v1  ;;  %v1650_v12 = vld [vmem:[%s1786_s7] ss:$8 sps:$4 sm:$0xff]   ;;  %v1656_v14 = vld [vmem:[%s1786_s7 + $0x14] ss:$8 sps:$4 sm:$0xff]   ;;  %s1891_s9 = scalar_lea.vmem %s1989_s5, %s1295_s23 }
  0x12   : > { %v1655_v6 = vld [vmem:[%s1786_s7 + $0x84] ss:$8 sps:$4 sm:$0xff]   ;;  %1339 = vmatprep.mubr.msk.bf16.mxu0 %vm578_vm0, %v1652_v5  ;;  %v1653_v13 = vld [vmem:[%s1786_s7 + $0x80] ss:$8 sps:$4 sm:$0xff]   ;;  %v1658_v15 = vld [vmem:[%s1786_s7 + $0x94] ss:$8 sps:$4 sm:$0xff]  }
  0x13   : > { %1347 = vmatprep.mubr.msk.bf16.mxu1 %vm578_vm0, %v1655_v6  ;;  %v1660_v16 = vld [vmem:[%s1786_s7 + $0x10] ss:$8 sps:$4 sm:$0xff]   ;;  %v1662_v18 = vld [vmem:[%s1786_s7 + $0x24] ss:$8 sps:$4 sm:$0xff]   ;;  %v1666_v20 = vld [vmem:[%s1786_s7 + $0x20] ss:$8 sps:$4 sm:$0xff]  }
  0x14   : > { %634 = vmatpush1.bf16.msra.mxu0 %v1644_v4  ;;  %1610 = vmatpush1.bf16.msra.mxu1 %v1644_v4  ;;  %v1661_v17 = vld [vmem:[%s1786_s7 + $0x90] ss:$8 sps:$4 sm:$0xff]   ;;  %v1664_v19 = vld [vmem:[%s1786_s7 + $0xa4] ss:$8 sps:$4 sm:$0xff]   ;;  %v1667_v21 = vld [vmem:[%s1786_s7 + $0xa0] ss:$8 sps:$4 sm:$0xff]  }
  0x15   : > { %635 = vmatprep.subr.bf16.mxu0 %v1722_v1  ;;  %1602 = vmatprep.subr.bf16.mxu1 %v1722_v1  ;;  %v1668_v22 = vld [vmem:[%s1786_s7 + $0x34] ss:$8 sps:$4 sm:$0xff]   ;;  %v1672_v24 = vld [vmem:[%s1786_s7 + $0x30] ss:$8 sps:$4 sm:$0xff]   ;;  %v1674_v26 = vld [vmem:[%s1786_s7 + $0x44] ss:$8 sps:$4 sm:$0xff]  }
  0x16   : > { %v1670_v23 = vld [vmem:[%s1786_s7 + $0xb4] ss:$8 sps:$4 sm:$0xff]   ;;  %v1673_v25 = vld [vmem:[%s1786_s7 + $0xb0] ss:$8 sps:$4 sm:$0xff]   ;;  %v1676_v27 = vld [vmem:[%s1786_s7 + $0xc4] ss:$8 sps:$4 sm:$0xff]  }
  0x17   : > { %v1678_v28 = vld [vmem:[%s1786_s7 + $0x40] ss:$8 sps:$4 sm:$0xff]   ;;  %v1680_v30 = vld [vmem:[%s1786_s7 + $0x54] ss:$8 sps:$4 sm:$0xff]   ;;  %v1684_v32 = vld [vmem:[%s1786_s7 + $0x50] ss:$8 sps:$4 sm:$0xff]  }
  0x18   : > { %636 = vmatpush1.bf16.msra.mxu0 %v1645_v7  ;;  %1611 = vmatpush1.bf16.msra.mxu1 %v1645_v7  ;;  %v1679_v29 = vld [vmem:[%s1786_s7 + $0xc0] ss:$8 sps:$4 sm:$0xff]   ;;  %v1682_v31 = vld [vmem:[%s1786_s7 + $0xd4] ss:$8 sps:$4 sm:$0xff]   ;;  %v1685_v33 = vld [vmem:[%s1786_s7 + $0xd0] ss:$8 sps:$4 sm:$0xff]  }
  0x19   : > { %637 = vmatprep.subr.bf16.mxu0 %v1722_v1  ;;  %1603 = vmatprep.subr.bf16.mxu1 %v1722_v1  ;;  %v1686_v34 = vld [vmem:[%s1786_s7 + $0x64] ss:$8 sps:$4 sm:$0xff]   ;;  %v1690_v36 = vld [vmem:[%s1786_s7 + $0x60] ss:$8 sps:$4 sm:$0xff]   ;;  %v1692_v38 = vld [vmem:[%s1786_s7 + $0x74] ss:$8 sps:$4 sm:$0xff]  }
  0x1a   : > { %v1688_v35 = vld [vmem:[%s1786_s7 + $0xe4] ss:$8 sps:$4 sm:$0xff]   ;;  %v1691_v37 = vld [vmem:[%s1786_s7 + $0xe0] ss:$8 sps:$4 sm:$0xff]   ;;  %v1694_v39 = vld [vmem:[%s1786_s7 + $0xf4] ss:$8 sps:$4 sm:$0xff]  }
  0x1b   : > { %v1696_v40 = vld [vmem:[%s1786_s7 + $0x70] ss:$8 sps:$4 sm:$0xff]   ;;  %v1425_v43 = vld [vmem:[%s1860_s27] sm:$0xff]   ;;  %v1568_v4 = vld [vmem:[%s1860_s27 + $0x8] sm:$0xff]  }
  0x1c   : > { %638 = vmatpush1.bf16.msra.mxu0 %v1646_v8  ;;  %1612 = vmatpush1.bf16.msra.mxu1 %v1646_v8  ;;  %v1697_v41 = vld [vmem:[%s1786_s7 + $0xf0] ss:$8 sps:$4 sm:$0xff]   ;;  %v1575_v44 = vld [vmem:[%s1860_s27 + $0x40] sm:$0xff]   ;;  %v1426_v49 = vunpack.c.l.bf16 %v1425_v43  ;;  %v1427_v55 = vunpack.c.h.bf16 %v1425_v43  ;;  %v1576_v5 = vld [vmem:[%s1860_s27 + $0x48] sm:$0xff]  }
  0x1d   : > { %639 = vmatprep.subr.bf16.mxu0 %v1722_v1  ;;  %1604 = vmatprep.subr.bf16.mxu1 %v1722_v1  ;;  %v1458_v51 = vunpack.c.l.bf16 %v1575_v44  ;;  %v1459_v57 = vunpack.c.h.bf16 %v1575_v44 }
  0x20   : > { %640 = vmatpush1.bf16.msra.mxu0 %v1647_v9  ;;  %1613 = vmatpush1.bf16.msra.mxu1 %v1647_v9 }
  0x21   : > { %641 = vmatprep.subr.bf16.mxu0 %v1722_v1  ;;  %1605 = vmatprep.subr.bf16.mxu1 %v1722_v1 }
  0x24   : > { %642 = vmatpush1.bf16.msra.mxu0 %v1648_v10  ;;  %1614 = vmatpush1.bf16.msra.mxu1 %v1648_v10 }
  0x25   : > { %643 = vmatprep.subr.bf16.mxu0 %v1722_v1  ;;  %1606 = vmatprep.subr.bf16.mxu1 %v1722_v1 }
  0x28   : > { %644 = vmatpush1.bf16.msra.mxu0 %v1649_v11  ;;  %1615 = vmatpush1.bf16.msra.mxu1 %v1649_v11  ;;  %v1430_v11 = vunpack.c.l.bf16 %v1568_v4 }
  0x2b   : > { %660 = vmatmul.mubr.bf16.vlgmr.msra.gmra.mrb[0].mxu0 %v1650_v12  ;;  %724 = vmatmul.mubr.bf16.vlgmr.msra.gmra.mrb[0].mxu1 %v1653_v13  ;;  %v1462_v13 = vunpack.c.l.bf16 %v1576_v5 }
  0x2c   : > { %1340 = vmatprep.mubr.msk.bf16.mxu0 %vm578_vm0, %v1656_v14  ;;  %1348 = vmatprep.mubr.msk.bf16.mxu1 %vm578_vm0, %v1658_v15 }
  0x33   : > { %668 = vmatmul.mubr.bf16.gmra.mrb[4].mxu0 %v1660_v16  ;;  %732 = vmatmul.mubr.bf16.gmra.mrb[4].mxu1 %v1661_v17 }
  0x34   : > { %1341 = vmatprep.mubr.msk.bf16.mxu0 %vm578_vm0, %v1662_v18  ;;  %1349 = vmatprep.mubr.msk.bf16.mxu1 %vm578_vm0, %v1664_v19 }
  0x3b   : > { %676 = vmatmul.mubr.bf16.gmra.mrb[8].mxu0 %v1666_v20  ;;  %740 = vmatmul.mubr.bf16.gmra.mrb[8].mxu1 %v1667_v21 }
  0x3c   : > { %1342 = vmatprep.mubr.msk.bf16.mxu0 %vm578_vm0, %v1668_v22  ;;  %1350 = vmatprep.mubr.msk.bf16.mxu1 %vm578_vm0, %v1670_v23 }
  0x43   : > { %684 = vmatmul.mubr.bf16.gmra.mrb[12].mxu0 %v1672_v24  ;;  %748 = vmatmul.mubr.bf16.gmra.mrb[12].mxu1 %v1673_v25 }
  0x44   : > { %1343 = vmatprep.mubr.msk.bf16.mxu0 %vm578_vm0, %v1674_v26  ;;  %1351 = vmatprep.mubr.msk.bf16.mxu1 %vm578_vm0, %v1676_v27 }
  0x4b   : > { %692 = vmatmul.mubr.bf16.gmra.mrb[16].mxu0 %v1678_v28  ;;  %756 = vmatmul.mubr.bf16.gmra.mrb[16].mxu1 %v1679_v29  ;;  %v1431_v29 = vunpack.c.h.bf16 %v1568_v4 }
  0x4c   : > { %1344 = vmatprep.mubr.msk.bf16.mxu0 %vm578_vm0, %v1680_v30  ;;  %1352 = vmatprep.mubr.msk.bf16.mxu1 %vm578_vm0, %v1682_v31  ;;  %v1463_v31 = vunpack.c.h.bf16 %v1576_v5 }
  0x53   : > { %700 = vmatmul.mubr.bf16.gmra.mrb[20].mxu0 %v1684_v32  ;;  %764 = vmatmul.mubr.bf16.gmra.mrb[20].mxu1 %v1685_v33 }
  0x54   : > { %1345 = vmatprep.mubr.msk.bf16.mxu0 %vm578_vm0, %v1686_v34  ;;  %1353 = vmatprep.mubr.msk.bf16.mxu1 %vm578_vm0, %v1688_v35  ;;  %v1569_v34 = vld [vmem:[%s1860_s27 + $0x10] sm:$0xff]  }
  0x55   : > { %v1577_v35 = vld [vmem:[%s1860_s27 + $0x50] sm:$0xff]  }
  0x56   : > { %v1466_v44 = vunpack.c.l.bf16 %v1577_v35 }
  0x5b   : > { %708 = vmatmul.mubr.bf16.gmra.mrb[24].mxu0 %v1690_v36  ;;  %772 = vmatmul.mubr.bf16.gmra.mrb[24].mxu1 %v1691_v37 }
  0x5c   : > { %1346 = vmatprep.mubr.msk.bf16.mxu0 %vm578_vm0, %v1692_v38  ;;  %1354 = vmatprep.mubr.msk.bf16.mxu1 %vm578_vm0, %v1694_v39 }
  0x63   : > { %716 = vmatmul.mubr.bf16.gmra.mrb[28].mxu0 %v1696_v40  ;;  %780 = vmatmul.mubr.bf16.gmra.mrb[28].mxu1 %v1697_v41  ;;  %v1434_v41 = vunpack.c.l.bf16 %v1569_v34 }
  0xfe   : > { %v661_v45 = vpop.f32.mrb[0].mxu0  ;;  %v725_v47 = vpop.f32.mrb[0].mxu1 }
  0xff   : > { %v795_v48 = vmul.f32 %v1865_v42, %v661_v45  ;;  %v811_v50 = vmul.f32 %v1865_v42, %v725_v47  ;;  %v663_v52 = vpop.f32.mrb[1].mxu0  ;;  %v727_v53 = vpop.f32.mrb[1].mxu1 }
 0x100   : > { %v664_v54 = vpop.f32.mrb[2].mxu0  ;;  %v728_v56 = vpop.f32.mrb[2].mxu1 }
 0x101   : > { %v834_v58 = vadd.f32 %v1872_v46, %v795_v48  ;;  %v850_v59 = vadd.f32 %v1872_v46, %v811_v50  ;;  %v796_v60 = vmul.f32 %v1865_v42, %v664_v54  ;;  %v812_v61 = vmul.f32 %v1865_v42, %v728_v56  ;;  %v666_v62 = vpop.f32.mrb[3].mxu0  ;;  %v730_v63 = vpop.f32.mrb[3].mxu1 }
 0x102   : > { %v1435_v50 = vunpack.c.h.bf16 %v1569_v34 }
 0x103   : > { %v930_v0 = vadd.f32 %v1426_v49, %v834_v58  ;;  %v946_v1 = vadd.f32 %v1458_v51, %v850_v59  ;;  %v835_v2 = vadd.f32 %v1872_v46, %v796_v60  ;;  %v851_v3 = vadd.f32 %v1872_v46, %v812_v61 }
 0x104   : > { %v1467_v51 = vunpack.c.h.bf16 %v1577_v35 }
 0x105   : > { %v931_v6 = vadd.f32 %v1427_v55, %v835_v2  ;;  %v947_v7 = vadd.f32 %v1459_v57, %v851_v3  ;;  %v962_v8 = vmax.f32 %v930_v0, 0.0  ;;  %v978_v9 = vmax.f32 %v946_v1, 0.0 }
 0x106   : > { %v669_v10 = vpop.f32.mrb[4].mxu0  ;;  %v733_v12 = vpop.f32.mrb[4].mxu1 }
 0x107   : > { %v963_v14 = vmax.f32 %v931_v6, 0.0  ;;  %v979_v15 = vmax.f32 %v947_v7, 0.0  ;;  %v797_v16 = vmul.f32 %v1865_v42, %v669_v10  ;;  %v813_v17 = vmul.f32 %v1865_v42, %v733_v12  ;;  %v671_v18 = vpop.f32.mrb[5].mxu0  ;;  %v735_v19 = vpop.f32.mrb[5].mxu1  ;;  %v1570_v6 = vld [vmem:[%s1860_s27 + $0x18] sm:$0xff]  }
 0x108   : > { %v672_v20 = vpop.f32.mrb[6].mxu0  ;;  %v736_v21 = vpop.f32.mrb[6].mxu1  ;;  %v1578_v7 = vld [vmem:[%s1860_s27 + $0x58] sm:$0xff]  }
 0x109   : > { %v1491_v22 = vpack.c.bf16 %v963_v14, %v962_v8  ;;  %v1531_v23 = vpack.c.bf16 %v979_v15, %v978_v9  ;;  %v836_v24 = vadd.f32 %v1872_v46, %v797_v16  ;;  %v852_v25 = vadd.f32 %v1872_v46, %v813_v17  ;;  %v674_v26 = vpop.f32.mrb[7].mxu0  ;;  %v738_v27 = vpop.f32.mrb[7].mxu1 }
 0x10a   : > { %v798_v28 = vmul.f32 %v1865_v42, %v672_v20  ;;  %v814_v30 = vmul.f32 %v1865_v42, %v736_v21  ;;  %v1470_v15 = vunpack.c.l.bf16 %v1578_v7 }
 0x10b   : > { %1492 = vst [vmem:[%s1891_s9] sm:$0xff] %v1491_v22   ;;  %1590 = vst [vmem:[%s1891_s9 + $0x40] sm:$0xff] %v1531_v23   ;;  %v932_v32 = vadd.f32 %v1430_v11, %v836_v24  ;;  %v948_v33 = vadd.f32 %v1462_v13, %v852_v25  ;;  %v1438_v13 = vunpack.c.l.bf16 %v1570_v6 }
 0x10c   : > { %v837_v36 = vadd.f32 %v1872_v46, %v798_v28  ;;  %v853_v37 = vadd.f32 %v1872_v46, %v814_v30 }
 0x10d   : > { %v964_v52 = vmax.f32 %v932_v32, 0.0  ;;  %v980_v53 = vmax.f32 %v948_v33, 0.0  ;;  %v1471_v33 = vunpack.c.h.bf16 %v1578_v7 }
 0x10e   : > { %v933_v38 = vadd.f32 %v1431_v29, %v837_v36  ;;  %v949_v39 = vadd.f32 %v1463_v31, %v853_v37  ;;  %v677_v40 = vpop.f32.mrb[8].mxu0  ;;  %v741_v43 = vpop.f32.mrb[8].mxu1  ;;  %v1439_v31 = vunpack.c.h.bf16 %v1570_v6  ;;  %v1571_v36 = vld [vmem:[%s1860_s27 + $0x20] sm:$0xff]  }
 0x10f   : > { %v799_v45 = vmul.f32 %v1865_v42, %v677_v40  ;;  %v815_v47 = vmul.f32 %v1865_v42, %v741_v43  ;;  %v679_v48 = vpop.f32.mrb[9].mxu0  ;;  %v743_v49 = vpop.f32.mrb[9].mxu1  ;;  %v1579_v37 = vld [vmem:[%s1860_s27 + $0x60] sm:$0xff]  }
 0x110   : > { %v965_v54 = vmax.f32 %v933_v38, 0.0  ;;  %v981_v55 = vmax.f32 %v949_v39, 0.0  ;;  %v680_v56 = vpop.f32.mrb[10].mxu0  ;;  %v744_v57 = vpop.f32.mrb[10].mxu1 }
 0x111   : > { %v838_v58 = vadd.f32 %v1872_v46, %v799_v45  ;;  %v854_v59 = vadd.f32 %v1872_v46, %v815_v47  ;;  %v800_v60 = vmul.f32 %v1865_v42, %v680_v56  ;;  %v816_v61 = vmul.f32 %v1865_v42, %v744_v57  ;;  %v682_v62 = vpop.f32.mrb[11].mxu0  ;;  %v746_v63 = vpop.f32.mrb[11].mxu1 }
 0x112   : > { %v1496_v0 = vpack.c.bf16 %v965_v54, %v964_v52  ;;  %v1536_v1 = vpack.c.bf16 %v981_v55, %v980_v53  ;;  %v1474_v47 = vunpack.c.l.bf16 %v1579_v37  ;;  %v1443_v52 = vunpack.c.h.bf16 %v1571_v36 }
 0x113   : > { %v934_v2 = vadd.f32 %v1434_v41, %v838_v58  ;;  %v950_v3 = vadd.f32 %v1466_v44, %v854_v59  ;;  %v839_v4 = vadd.f32 %v1872_v46, %v800_v60  ;;  %v855_v5 = vadd.f32 %v1872_v46, %v816_v61 }
 0x114   : > { %1583 = vst [vmem:[%s1891_s9 + $0x8] sm:$0xff] %v1496_v0   ;;  %1591 = vst [vmem:[%s1891_s9 + $0x48] sm:$0xff] %v1536_v1   ;;  %v1442_v44 = vunpack.c.l.bf16 %v1571_v36  ;;  %v1475_v53 = vunpack.c.h.bf16 %v1579_v37 }
 0x115   : > { %v935_v8 = vadd.f32 %v1435_v50, %v839_v4  ;;  %v951_v9 = vadd.f32 %v1467_v51, %v855_v5  ;;  %v966_v10 = vmax.f32 %v934_v2, 0.0  ;;  %v982_v11 = vmax.f32 %v950_v3, 0.0 }
 0x116   : > { %v685_v12 = vpop.f32.mrb[12].mxu0  ;;  %v749_v14 = vpop.f32.mrb[12].mxu1 }
 0x117   : > { %v967_v16 = vmax.f32 %v935_v8, 0.0  ;;  %v983_v17 = vmax.f32 %v951_v9, 0.0  ;;  %v801_v18 = vmul.f32 %v1865_v42, %v685_v12  ;;  %v817_v19 = vmul.f32 %v1865_v42, %v749_v14  ;;  %v687_v20 = vpop.f32.mrb[13].mxu0  ;;  %v751_v21 = vpop.f32.mrb[13].mxu1  ;;  %v1572_v8 = vld [vmem:[%s1860_s27 + $0x28] sm:$0xff]  }
 0x118   : > { %v688_v22 = vpop.f32.mrb[14].mxu0  ;;  %v752_v23 = vpop.f32.mrb[14].mxu1  ;;  %v1580_v9 = vld [vmem:[%s1860_s27 + $0x68] sm:$0xff]  }
 0x119   : > { %v1501_v24 = vpack.c.bf16 %v967_v16, %v966_v10  ;;  %v1541_v25 = vpack.c.bf16 %v983_v17, %v982_v11  ;;  %v840_v26 = vadd.f32 %v1872_v46, %v801_v18  ;;  %v856_v27 = vadd.f32 %v1872_v46, %v817_v19  ;;  %v690_v28 = vpop.f32.mrb[15].mxu0  ;;  %v754_v29 = vpop.f32.mrb[15].mxu1 }
 0x11a   : > { %v802_v30 = vmul.f32 %v1865_v42, %v688_v22  ;;  %v818_v32 = vmul.f32 %v1865_v42, %v752_v23  ;;  %v1478_v17 = vunpack.c.l.bf16 %v1580_v9 }
 0x11b   : > { %1584 = vst [vmem:[%s1891_s9 + $0x10] sm:$0xff] %v1501_v24   ;;  %1592 = vst [vmem:[%s1891_s9 + $0x50] sm:$0xff] %v1541_v25   ;;  %v936_v34 = vadd.f32 %v1438_v13, %v840_v26  ;;  %v952_v35 = vadd.f32 %v1470_v15, %v856_v27  ;;  %v1446_v15 = vunpack.c.l.bf16 %v1572_v8 }
 0x11c   : > { %v841_v38 = vadd.f32 %v1872_v46, %v802_v30  ;;  %v857_v39 = vadd.f32 %v1872_v46, %v818_v32 }
 0x11d   : > { %v968_v54 = vmax.f32 %v936_v34, 0.0  ;;  %v984_v55 = vmax.f32 %v952_v35, 0.0  ;;  %v1479_v35 = vunpack.c.h.bf16 %v1580_v9 }
 0x11e   : > { %v937_v40 = vadd.f32 %v1439_v31, %v841_v38  ;;  %v953_v41 = vadd.f32 %v1471_v33, %v857_v39  ;;  %v693_v43 = vpop.f32.mrb[16].mxu0  ;;  %v757_v45 = vpop.f32.mrb[16].mxu1  ;;  %v1447_v33 = vunpack.c.h.bf16 %v1572_v8  ;;  %v1573_v38 = vld [vmem:[%s1860_s27 + $0x30] sm:$0xff]  }
 0x11f   : > { %v803_v48 = vmul.f32 %v1865_v42, %v693_v43  ;;  %v819_v49 = vmul.f32 %v1865_v42, %v757_v45  ;;  %v695_v50 = vpop.f32.mrb[17].mxu0  ;;  %v759_v51 = vpop.f32.mrb[17].mxu1  ;;  %v1581_v39 = vld [vmem:[%s1860_s27 + $0x70] sm:$0xff]  }
 0x120   : > { %v969_v56 = vmax.f32 %v937_v40, 0.0  ;;  %v985_v57 = vmax.f32 %v953_v41, 0.0  ;;  %v696_v58 = vpop.f32.mrb[18].mxu0  ;;  %v760_v59 = vpop.f32.mrb[18].mxu1 }
 0x121   : > { %v842_v60 = vadd.f32 %v1872_v46, %v803_v48  ;;  %v858_v61 = vadd.f32 %v1872_v46, %v819_v49  ;;  %v804_v62 = vmul.f32 %v1865_v42, %v696_v58  ;;  %v820_v63 = vmul.f32 %v1865_v42, %v760_v59  ;;  %v698_v0 = vpop.f32.mrb[19].mxu0  ;;  %v762_v1 = vpop.f32.mrb[19].mxu1 }
 0x122   : > { %v1506_v2 = vpack.c.bf16 %v969_v56, %v968_v54  ;;  %v1546_v3 = vpack.c.bf16 %v985_v57, %v984_v55  ;;  %v1482_v49 = vunpack.c.l.bf16 %v1581_v39  ;;  %v1451_v54 = vunpack.c.h.bf16 %v1573_v38 }
 0x123   : > { %v938_v4 = vadd.f32 %v1442_v44, %v842_v60  ;;  %v954_v5 = vadd.f32 %v1474_v47, %v858_v61  ;;  %v843_v6 = vadd.f32 %v1872_v46, %v804_v62  ;;  %v859_v7 = vadd.f32 %v1872_v46, %v820_v63 }
 0x124   : > { %1585 = vst [vmem:[%s1891_s9 + $0x18] sm:$0xff] %v1506_v2   ;;  %1593 = vst [vmem:[%s1891_s9 + $0x58] sm:$0xff] %v1546_v3   ;;  %v1450_v47 = vunpack.c.l.bf16 %v1573_v38  ;;  %v1483_v55 = vunpack.c.h.bf16 %v1581_v39 }
 0x125   : > { %v939_v10 = vadd.f32 %v1443_v52, %v843_v6  ;;  %v955_v11 = vadd.f32 %v1475_v53, %v859_v7  ;;  %v970_v12 = vmax.f32 %v938_v4, 0.0  ;;  %v986_v13 = vmax.f32 %v954_v5, 0.0 }
 0x126   : > { %v701_v14 = vpop.f32.mrb[20].mxu0  ;;  %v765_v16 = vpop.f32.mrb[20].mxu1 }
 0x127   : > { %v971_v18 = vmax.f32 %v939_v10, 0.0  ;;  %v987_v19 = vmax.f32 %v955_v11, 0.0  ;;  %v805_v20 = vmul.f32 %v1865_v42, %v701_v14  ;;  %v821_v21 = vmul.f32 %v1865_v42, %v765_v16  ;;  %v703_v22 = vpop.f32.mrb[21].mxu0  ;;  %v767_v23 = vpop.f32.mrb[21].mxu1  ;;  %v1574_v10 = vld [vmem:[%s1860_s27 + $0x38] sm:$0xff]  }
 0x128   : > { %v704_v24 = vpop.f32.mrb[22].mxu0  ;;  %v768_v25 = vpop.f32.mrb[22].mxu1  ;;  %v1582_v11 = vld [vmem:[%s1860_s27 + $0x78] sm:$0xff]  }
 0x129   : > { %v1511_v26 = vpack.c.bf16 %v971_v18, %v970_v12  ;;  %v1551_v27 = vpack.c.bf16 %v987_v19, %v986_v13  ;;  %v844_v28 = vadd.f32 %v1872_v46, %v805_v20  ;;  %v860_v29 = vadd.f32 %v1872_v46, %v821_v21  ;;  %v706_v30 = vpop.f32.mrb[23].mxu0  ;;  %v770_v31 = vpop.f32.mrb[23].mxu1 }
 0x12a   : > { %v806_v32 = vmul.f32 %v1865_v42, %v704_v24  ;;  %v822_v34 = vmul.f32 %v1865_v42, %v768_v25  ;;  %v1486_v19 = vunpack.c.l.bf16 %v1582_v11 }
 0x12b   : > { %1586 = vst [vmem:[%s1891_s9 + $0x20] sm:$0xff] %v1511_v26   ;;  %1594 = vst [vmem:[%s1891_s9 + $0x60] sm:$0xff] %v1551_v27   ;;  %v940_v36 = vadd.f32 %v1446_v15, %v844_v28  ;;  %v956_v37 = vadd.f32 %v1478_v17, %v860_v29  ;;  %v1454_v17 = vunpack.c.l.bf16 %v1574_v10 }
 0x12c   : > { %v845_v40 = vadd.f32 %v1872_v46, %v806_v32  ;;  %v861_v41 = vadd.f32 %v1872_v46, %v822_v34 }
 0x12d   : > { %v972_v56 = vmax.f32 %v940_v36, 0.0  ;;  %v988_v57 = vmax.f32 %v956_v37, 0.0  ;;  %v1487_v37 = vunpack.c.h.bf16 %v1582_v11 }
 0x12e   : > { %v941_v43 = vadd.f32 %v1447_v33, %v845_v40  ;;  %v957_v44 = vadd.f32 %v1479_v35, %v861_v41  ;;  %v709_v45 = vpop.f32.mrb[24].mxu0  ;;  %v773_v48 = vpop.f32.mrb[24].mxu1  ;;  %v1455_v35 = vunpack.c.h.bf16 %v1574_v10 }
 0x12f   : > { %v807_v50 = vmul.f32 %v1865_v42, %v709_v45  ;;  %v823_v51 = vmul.f32 %v1865_v42, %v773_v48  ;;  %v711_v52 = vpop.f32.mrb[25].mxu0  ;;  %v775_v53 = vpop.f32.mrb[25].mxu1 }
 0x130   : > { %v973_v58 = vmax.f32 %v941_v43, 0.0  ;;  %v989_v59 = vmax.f32 %v957_v44, 0.0  ;;  %v712_v60 = vpop.f32.mrb[26].mxu0  ;;  %v776_v61 = vpop.f32.mrb[26].mxu1 }
 0x131   : > { %v846_v62 = vadd.f32 %v1872_v46, %v807_v50  ;;  %v862_v63 = vadd.f32 %v1872_v46, %v823_v51  ;;  %v808_v0 = vmul.f32 %v1865_v42, %v712_v60  ;;  %v824_v1 = vmul.f32 %v1865_v42, %v776_v61  ;;  %v714_v2 = vpop.f32.mrb[27].mxu0  ;;  %v778_v3 = vpop.f32.mrb[27].mxu1 }
 0x132   : > { %v1516_v4 = vpack.c.bf16 %v973_v58, %v972_v56  ;;  %v1556_v5 = vpack.c.bf16 %v989_v59, %v988_v57 }
 0x133   : > { %v942_v6 = vadd.f32 %v1450_v47, %v846_v62  ;;  %v958_v7 = vadd.f32 %v1482_v49, %v862_v63  ;;  %v847_v8 = vadd.f32 %v1872_v46, %v808_v0  ;;  %v863_v9 = vadd.f32 %v1872_v46, %v824_v1 }
 0x134   : > { %1587 = vst [vmem:[%s1891_s9 + $0x28] sm:$0xff] %v1516_v4   ;;  %1595 = vst [vmem:[%s1891_s9 + $0x68] sm:$0xff] %v1556_v5  }
 0x135   : > { %v943_v12 = vadd.f32 %v1451_v54, %v847_v8  ;;  %v959_v13 = vadd.f32 %v1483_v55, %v863_v9  ;;  %v974_v14 = vmax.f32 %v942_v6, 0.0  ;;  %v990_v15 = vmax.f32 %v958_v7, 0.0 }
 0x136   : > { %v717_v16 = vpop.f32.mrb[28].mxu0  ;;  %v781_v18 = vpop.f32.mrb[28].mxu1 }
 0x137   : > { %v975_v20 = vmax.f32 %v943_v12, 0.0  ;;  %v991_v21 = vmax.f32 %v959_v13, 0.0  ;;  %v809_v22 = vmul.f32 %v1865_v42, %v717_v16  ;;  %v825_v23 = vmul.f32 %v1865_v42, %v781_v18  ;;  %v719_v24 = vpop.f32.mrb[29].mxu0  ;;  %v783_v25 = vpop.f32.mrb[29].mxu1 }
 0x138   : > { %v720_v26 = vpop.f32.mrb[30].mxu0  ;;  %v784_v27 = vpop.f32.mrb[30].mxu1 }
 0x139   : > { %v1521_v28 = vpack.c.bf16 %v975_v20, %v974_v14  ;;  %v1561_v29 = vpack.c.bf16 %v991_v21, %v990_v15  ;;  %v848_v30 = vadd.f32 %v1872_v46, %v809_v22  ;;  %v864_v31 = vadd.f32 %v1872_v46, %v825_v23  ;;  %v722_v32 = vpop.f32.mrb[31].mxu0  ;;  %v786_v33 = vpop.f32.mrb[31].mxu1 }
 0x13a   : > { %v810_v34 = vmul.f32 %v1865_v42, %v720_v26  ;;  %v826_v36 = vmul.f32 %v1865_v42, %v784_v27 }
 0x13b   : > { %1588 = vst [vmem:[%s1891_s9 + $0x30] sm:$0xff] %v1521_v28   ;;  %1596 = vst [vmem:[%s1891_s9 + $0x70] sm:$0xff] %v1561_v29   ;;  %v944_v38 = vadd.f32 %v1454_v17, %v848_v30  ;;  %v960_v39 = vadd.f32 %v1486_v19, %v864_v31 }
 0x13c   : > { %v849_v40 = vadd.f32 %v1872_v46, %v810_v34  ;;  %v865_v41 = vadd.f32 %v1872_v46, %v826_v36 }
 0x13d   : > { %v976_v45 = vmax.f32 %v944_v38, 0.0  ;;  %v992_v47 = vmax.f32 %v960_v39, 0.0 }
 0x13e   : > { %v945_v43 = vadd.f32 %v1455_v35, %v849_v40  ;;  %v961_v44 = vadd.f32 %v1487_v37, %v865_v41 }
 0x140   : > { %v977_v48 = vmax.f32 %v945_v43, 0.0  ;;  %v993_v49 = vmax.f32 %v961_v44, 0.0 }
 0x142   : > { %v1526_v50 = vpack.c.bf16 %v977_v48, %v976_v45  ;;  %v1566_v51 = vpack.c.bf16 %v993_v49, %v992_v47 }
 0x144   : > { %1589 = vst [vmem:[%s1891_s9 + $0x38] sm:$0xff] %v1526_v50   ;;  %1597 = vst [vmem:[%s1891_s9 + $0x78] sm:$0xff] %v1566_v51  }
 0x145 PF: > { %s15_s20 = sadd.s32 1, %s1720_s20   ;;  %s1990_s18 = smov %s1716_s19 }
 0x146   : > { %p12_p5 = scmp.ge.s32.totalorder %s15_s20, 4   ;;  %s1991_s19 = smov %s1993_s21 }
 0x148   :  { %14 = sbr.rel (!%p12_p5) target bundleno = 2 (0x2), region = 82 }

// kernel: d_mask_forward.6
= control target key start
LH: loop header
LB: loop body
LE: loop exit
PB: predicated region body
PF: predicated region fallthrough
CT: control target
= control target key end

     0   :  { %s3471_s15 = smov 0   ;;  %s3473_s16 = smov 0   ;;  %s4104_s0 = inlined_call_operand.vmem [shape: bf16[2048,400], index: 0, kind: input, shape index: {}]   ;;  %s4105_s1 = inlined_call_operand.vmem [shape: bf16[400,128], index: 1, kind: input, shape index: {}]   ;;  %s4106_s2 = inlined_call_operand.vmem [shape: f32[1,128], index: 2, kind: input, shape index: {}]   ;;  %s4107_s3 = inlined_call_operand.vmem [shape: f32[1,128], index: 3, kind: input, shape index: {}]   ;;  %s4108_s4 = inlined_call_operand.vmem [shape: bf16[2048,128], index: 4, kind: output, shape index: {}]  }
   0x1   :  { %s3475_s17 = smov 0  }
   0x2 LB: > { %s26_s18 = sadd.s32 1, %s3439_s16  ;;  %p2598_p0 = scmp.ge.s32.totalorder %s3443_s17, 1  ;;  %s3443_s17 = sphi %s3475_s17, %s14_s17   ;;  %s3439_s16 = sphi %s3473_s16, %s4110_s16   ;;  %s3435_s15 = sphi %s3471_s15, %s4109_s15  }
   0x3   : > { %p28_p1 = scmp.ge.s32.totalorder %s26_s18, 4  ;;  %p203_p2 = scmp.lt.s32.totalorder %s3443_s17, 5 }
   0x5   : > { %s4112_s18 = smov (%p28_p1, %s26_s18), 0  ;;  %p204_p3 = pnand %p2598_p0, %p203_p2 }
   0x6   : > { %v3202_v0 = vld [vmem:[%s4105_s1] sm:$0xff] (!%p204_p3)   ;;  %v3445_v1 = vmov (!%p204_p3), 0   ;;  %v3203_v2 = vld [vmem:[%s4105_s1 + $0x8] sm:$0xff] (!%p204_p3)   ;;  %v3204_v3 = vld [vmem:[%s4105_s1 + $0x10] sm:$0xff] (!%p204_p3)   ;;  %s2599_s27 = sshll.u32 (!%p204_p3), %s3435_s15, 6  ;;  %vm1206_vm0 = vcmask (!%p204_p3), 130048  }
   0x7   : > { %207 = sbr.rel (%p204_p3) target bundleno = 545 (0x221), region = 36  ;;  %1303 = vmatprep.subr.bf16.mxu1 (!%p204_p3), %v3445_v1  ;;  %1592 = vmatprep.subr.bf16.mxu0 (!%p204_p3), %v3445_v1  ;;  %v3209_v4 = vld [vmem:[%s4105_s1 + $0x80] sm:$0xff] (!%p204_p3)   ;;  %v3211_v5 = vld [vmem:[%s4105_s1 + $0x88] sm:$0xff] (!%p204_p3)   ;;  %v3205_v6 = vld [vmem:[%s4105_s1 + $0x18] sm:$0xff] (!%p204_p3)   ;;  %p244_p4 = scmp.lt.s32.totalorder (!%p204_p3), %s2599_s27, 255 }
   0x8   : > { %1304 = vmatpush1.bf16.msra.mxu1 (!%p204_p3), %v3202_v0  ;;  %1593 = vmatpush1.bf16.msra.mxu0 (!%p204_p3), %v3209_v4  ;;  %v3213_v7 = vld [vmem:[%s4105_s1 + $0x90] sm:$0xff] (!%p204_p3)   ;;  %v3206_v8 = vld [vmem:[%s4105_s1 + $0x20] sm:$0xff] (!%p204_p3)   ;;  %v3215_v9 = vld [vmem:[%s4105_s1 + $0x98] sm:$0xff] (!%p204_p3)  }
   0x9   : > { %1305 = vmatprep.subr.bf16.mxu1 (!%p204_p3), %v3445_v1  ;;  %1594 = vmatprep.subr.bf16.mxu0 (!%p204_p3), %v3445_v1  ;;  %v3207_v10 = vld [vmem:[%s4105_s1 + $0x28] sm:$0xff] (!%p204_p3)   ;;  %v3217_v11 = vld [vmem:[%s4105_s1 + $0xa0] sm:$0xff] (!%p204_p3)   ;;  %v3208_v12 = vld [vmem:[%s4105_s1 + $0x30] sm:$0xff] (!%p204_p3)  }
   0xa   : > { %v3219_v13 = vld [vmem:[%s4105_s1 + $0xa8] sm:$0xff] (!%p204_p3)   ;;  %v3210_v15 = vld [vmem:[%s4105_s1 + $0x38] sm:$0xff] (!%p204_p3)   ;;  %v3221_v17 = vld [vmem:[%s4105_s1 + $0xb0] sm:$0xff] (!%p204_p3)  }
   0xb   : > { %v3212_v18 = vld [vmem:[%s4105_s1 + $0x40] sm:$0xff] (!%p204_p3)   ;;  %v3223_v19 = vld [vmem:[%s4105_s1 + $0xb8] sm:$0xff] (!%p204_p3)   ;;  %v3214_v20 = vld [vmem:[%s4105_s1 + $0x48] sm:$0xff] (!%p204_p3)  }
   0xc   : > { %1306 = vmatpush1.bf16.msra.mxu1 (!%p204_p3), %v3203_v2  ;;  %1595 = vmatpush1.bf16.msra.mxu0 (!%p204_p3), %v3211_v5  ;;  %v3225_v21 = vld [vmem:[%s4105_s1 + $0xc0] sm:$0xff] (!%p204_p3)   ;;  %v3216_v22 = vld [vmem:[%s4105_s1 + $0x50] sm:$0xff] (!%p204_p3)   ;;  %v3218_v25 = vld [vmem:[%s4105_s1 + $0x58] sm:$0xff] (!%p204_p3)  }
   0xd   : > { %1307 = vmatprep.subr.bf16.mxu1 (!%p204_p3), %v3445_v1  ;;  %1596 = vmatprep.subr.bf16.mxu0 (!%p204_p3), %v3445_v1  ;;  %v3220_v26 = vld [vmem:[%s4105_s1 + $0x60] sm:$0xff] (!%p204_p3)   ;;  %v3222_v29 = vld [vmem:[%s4105_s1 + $0x68] sm:$0xff] (!%p204_p3)   ;;  %v3224_v30 = vld [vmem:[%s4105_s1 + $0x70] sm:$0xff] (!%p204_p3)  }
   0xe   : > { %s4114_s27 = smov (!%p244_p4, %s2599_s27), 255  ;;  %v3229_v33 = vld [vmem:[%s4105_s1 + $0x78] sm:$0xff]  }
   0xf   : > { %s2857_s14 = sshll.u32 %s4114_s27, 4  ;;  %s2603_s9 = sshll.u32 %s4114_s27, 2 }
  0x10   : > { %1308 = vmatpush1.bf16.msra.mxu1 %v3204_v3  ;;  %1597 = vmatpush1.bf16.msra.mxu0 %v3213_v7  ;;  %s3545_s24 = scalar_lea.vmem %s4104_s0, %s2857_s14  ;;  %s3785_s12 = scalar_lea.vmem %s4108_s4, %s2603_s9 }
  0x11   : > { %1309 = vmatprep.subr.bf16.mxu1 %v3445_v1  ;;  %1598 = vmatprep.subr.bf16.mxu0 %v3445_v1  ;;  %v3228_v14 = vld [vmem:[%s3545_s24 + $0xc] ss:$16 sps:$4 sm:$0xff]   ;;  %v3232_v16 = vld [vmem:[%s3545_s24 + $0x4] ss:$16 sps:$4 sm:$0xff]   ;;  %v3226_v23 = vld [vmem:[%s3545_s24 + $0x8] ss:$16 sps:$4 sm:$0xff]  }
  0x12   : > { %2757 = vmatprep.mubr.msk.bf16.mxu0 %vm1206_vm0, %v3228_v14  ;;  %1335 = vmatprep.mubr.bf16.mxu1 %v3232_v16  ;;  %v3233_v24 = vld [vmem:[%s3545_s24 + $0x2c] ss:$16 sps:$4 sm:$0xff]   ;;  %v3235_v27 = vld [vmem:[%s3545_s24 + $0x28] ss:$16 sps:$4 sm:$0xff]   ;;  %v3230_v34 = vld [vmem:[%s3545_s24] ss:$16 sps:$4 sm:$0xff]  }
  0x13   : > { %v3239_v28 = vld [vmem:[%s3545_s24 + $0x4c] ss:$16 sps:$4 sm:$0xff]   ;;  %v3241_v31 = vld [vmem:[%s3545_s24 + $0x48] ss:$16 sps:$4 sm:$0xff]   ;;  %v3236_v35 = vld [vmem:[%s3545_s24 + $0x24] ss:$16 sps:$4 sm:$0xff]  }
  0x14   : > { %1310 = vmatpush1.bf16.msra.mxu1 %v3205_v6  ;;  %1599 = vmatpush1.bf16.msra.mxu0 %v3215_v9  ;;  %v3245_v32 = vld [vmem:[%s3545_s24 + $0x6c] ss:$16 sps:$4 sm:$0xff]   ;;  %v3247_v36 = vld [vmem:[%s3545_s24 + $0x68] ss:$16 sps:$4 sm:$0xff]   ;;  %v3238_v38 = vld [vmem:[%s3545_s24 + $0x20] ss:$16 sps:$4 sm:$0xff]  }
  0x15   : > { %1311 = vmatprep.subr.bf16.mxu1 %v3445_v1  ;;  %1600 = vmatprep.subr.bf16.mxu0 %v3445_v1  ;;  %v3251_v37 = vld [vmem:[%s3545_s24 + $0x8c] ss:$16 sps:$4 sm:$0xff]   ;;  %v3242_v39 = vld [vmem:[%s3545_s24 + $0x44] ss:$16 sps:$4 sm:$0xff]   ;;  %v3253_v40 = vld [vmem:[%s3545_s24 + $0x88] ss:$16 sps:$4 sm:$0xff]  }
  0x16   : > { %v3257_v41 = vld [vmem:[%s3545_s24 + $0xac] ss:$16 sps:$4 sm:$0xff]   ;;  %v3244_v42 = vld [vmem:[%s3545_s24 + $0x40] ss:$16 sps:$4 sm:$0xff]   ;;  %v3248_v43 = vld [vmem:[%s3545_s24 + $0x64] ss:$16 sps:$4 sm:$0xff]  }
  0x17   : > { %v3259_v44 = vld [vmem:[%s3545_s24 + $0xa8] ss:$16 sps:$4 sm:$0xff]   ;;  %v3263_v45 = vld [vmem:[%s3545_s24 + $0xcc] ss:$16 sps:$4 sm:$0xff]   ;;  %v3250_v46 = vld [vmem:[%s3545_s24 + $0x60] ss:$16 sps:$4 sm:$0xff]  }
  0x18   : > { %1312 = vmatpush1.bf16.msra.mxu1 %v3206_v8  ;;  %1601 = vmatpush1.bf16.msra.mxu0 %v3217_v11  ;;  %v3254_v47 = vld [vmem:[%s3545_s24 + $0x84] ss:$16 sps:$4 sm:$0xff]   ;;  %v3265_v48 = vld [vmem:[%s3545_s24 + $0xc8] ss:$16 sps:$4 sm:$0xff]   ;;  %v3269_v49 = vld [vmem:[%s3545_s24 + $0xec] ss:$16 sps:$4 sm:$0xff]  }
  0x19   : > { %1313 = vmatprep.subr.bf16.mxu1 %v3445_v1  ;;  %1602 = vmatprep.subr.bf16.mxu0 %v3445_v1  ;;  %v3256_v50 = vld [vmem:[%s3545_s24 + $0x80] ss:$16 sps:$4 sm:$0xff]   ;;  %v3260_v51 = vld [vmem:[%s3545_s24 + $0xa4] ss:$16 sps:$4 sm:$0xff]   ;;  %v3271_v52 = vld [vmem:[%s3545_s24 + $0xe8] ss:$16 sps:$4 sm:$0xff]  }
  0x1a   : > { %v3275_v53 = vld [vmem:[%s3545_s24 + $0x10c] ss:$16 sps:$4 sm:$0xff]   ;;  %v3262_v54 = vld [vmem:[%s3545_s24 + $0xa0] ss:$16 sps:$4 sm:$0xff]   ;;  %v3266_v55 = vld [vmem:[%s3545_s24 + $0xc4] ss:$16 sps:$4 sm:$0xff]  }
  0x1b   : > { %v3277_v56 = vld [vmem:[%s3545_s24 + $0x108] ss:$16 sps:$4 sm:$0xff]   ;;  %v3281_v57 = vld [vmem:[%s3545_s24 + $0x12c] ss:$16 sps:$4 sm:$0xff]   ;;  %v3268_v58 = vld [vmem:[%s3545_s24 + $0xc0] ss:$16 sps:$4 sm:$0xff]  }
  0x1c   : > { %1314 = vmatpush1.bf16.msra.mxu1 %v3207_v10  ;;  %1603 = vmatpush1.bf16.msra.mxu0 %v3219_v13  ;;  %v3272_v59 = vld [vmem:[%s3545_s24 + $0xe4] ss:$16 sps:$4 sm:$0xff]   ;;  %v3283_v60 = vld [vmem:[%s3545_s24 + $0x128] ss:$16 sps:$4 sm:$0xff]   ;;  %v3287_v61 = vld [vmem:[%s3545_s24 + $0x14c] ss:$16 sps:$4 sm:$0xff]  }
  0x1d   : > { %1315 = vmatprep.subr.bf16.mxu1 %v3445_v1  ;;  %1604 = vmatprep.subr.bf16.mxu0 %v3445_v1  ;;  %v3274_v62 = vld [vmem:[%s3545_s24 + $0xe0] ss:$16 sps:$4 sm:$0xff]   ;;  %v3278_v63 = vld [vmem:[%s3545_s24 + $0x104] ss:$16 sps:$4 sm:$0xff]   ;;  %v3289_v0 = vld [vmem:[%s3545_s24 + $0x148] ss:$16 sps:$4 sm:$0xff]  }
  0x1e   : > { %v3280_v2 = vld [vmem:[%s3545_s24 + $0x100] ss:$16 sps:$4 sm:$0xff]   ;;  %v3284_v3 = vld [vmem:[%s3545_s24 + $0x124] ss:$16 sps:$4 sm:$0xff]   ;;  %v3295_v4 = vld [vmem:[%s3545_s24 + $0x168] ss:$16 sps:$4 sm:$0xff]  }
  0x1f   : > { %v3299_v5 = vld [vmem:[%s3545_s24 + $0x18c] ss:$16 sps:$4 sm:$0xff]   ;;  %v3286_v6 = vld [vmem:[%s3545_s24 + $0x120] ss:$16 sps:$4 sm:$0xff]   ;;  %v3290_v7 = vld [vmem:[%s3545_s24 + $0x144] ss:$16 sps:$4 sm:$0xff]  }
  0x20   : > { %1316 = vmatpush1.bf16.msra.mxu1 %v3208_v12  ;;  %1605 = vmatpush1.bf16.msra.mxu0 %v3221_v17  ;;  %v3301_v8 = vld [vmem:[%s3545_s24 + $0x188] ss:$16 sps:$4 sm:$0xff]   ;;  %v3305_v9 = vld [vmem:[%s3545_s24 + $0x1ac] ss:$16 sps:$4 sm:$0xff]   ;;  %v3292_v10 = vld [vmem:[%s3545_s24 + $0x140] ss:$16 sps:$4 sm:$0xff]  }
  0x21   : > { %1317 = vmatprep.subr.bf16.mxu1 %v3445_v1  ;;  %1606 = vmatprep.subr.bf16.mxu0 %v3445_v1  ;;  %v3296_v11 = vld [vmem:[%s3545_s24 + $0x164] ss:$16 sps:$4 sm:$0xff]   ;;  %v3307_v12 = vld [vmem:[%s3545_s24 + $0x1a8] ss:$16 sps:$4 sm:$0xff]   ;;  %v3311_v13 = vld [vmem:[%s3545_s24 + $0x1cc] ss:$16 sps:$4 sm:$0xff]  }
  0x22   : > { %v3298_v14 = vld [vmem:[%s3545_s24 + $0x160] ss:$16 sps:$4 sm:$0xff]   ;;  %v3313_v16 = vld [vmem:[%s3545_s24 + $0x1c8] ss:$16 sps:$4 sm:$0xff]   ;;  %v3317_v17 = vld [vmem:[%s3545_s24 + $0x1ec] ss:$16 sps:$4 sm:$0xff]  }
  0x24   : > { %1318 = vmatpush1.bf16.msra.mxu1 %v3210_v15  ;;  %1607 = vmatpush1.bf16.msra.mxu0 %v3223_v19  ;;  %v3302_v15 = vld [vmem:[%s3545_s24 + $0x184] ss:$16 sps:$4 sm:$0xff]  }
  0x25   : > { %1319 = vmatprep.subr.bf16.mxu1 %v3445_v1  ;;  %1608 = vmatprep.subr.bf16.mxu0 %v3445_v1  ;;  %v3308_v19 = vld [vmem:[%s3545_s24 + $0x1a4] ss:$16 sps:$4 sm:$0xff]  }
  0x28   : > { %1320 = vmatpush1.bf16.msra.mxu1 %v3212_v18  ;;  %1609 = vmatpush1.bf16.msra.mxu0 %v3225_v21  ;;  %v3304_v18 = vld [vmem:[%s3545_s24 + $0x180] ss:$16 sps:$4 sm:$0xff]   ;;  %v3323_v21 = vld [vmem:[%s3545_s24 + $0x20c] ss:$16 sps:$4 sm:$0xff]  }
  0x29   : > { %1321 = vmatprep.subr.bf16.mxu1 %v3445_v1 }
  0x2b   : > { %1625 = vmatmul.mubr.bf16.vlgmr.msra.gmra.mrb[0].mxu0 %v3226_v23  ;;  %v3314_v23 = vld [vmem:[%s3545_s24 + $0x1c4] ss:$16 sps:$4 sm:$0xff]  }
  0x2c   : > { %1322 = vmatpush1.bf16.msra.mxu1 %v3214_v20  ;;  %2758 = vmatprep.mubr.msk.bf16.mxu0 %vm1206_vm0, %v3233_v24  ;;  %v3319_v20 = vld [vmem:[%s3545_s24 + $0x1e8] ss:$16 sps:$4 sm:$0xff]  }
  0x2d   : > { %1323 = vmatprep.subr.bf16.mxu1 %v3445_v1  ;;  %v3325_v24 = vld [vmem:[%s3545_s24 + $0x208] ss:$16 sps:$4 sm:$0xff]  }
  0x30   : > { %1324 = vmatpush1.bf16.msra.mxu1 %v3216_v22  ;;  %v3310_v22 = vld [vmem:[%s3545_s24 + $0x1a0] ss:$16 sps:$4 sm:$0xff]  }
  0x31   : > { %1325 = vmatprep.subr.bf16.mxu1 %v3445_v1 }
  0x33   : > { %1633 = vmatmul.mubr.bf16.gmra.mrb[4].mxu0 %v3235_v27  ;;  %v3320_v27 = vld [vmem:[%s3545_s24 + $0x1e4] ss:$16 sps:$4 sm:$0xff]  }
  0x34   : > { %1326 = vmatpush1.bf16.msra.mxu1 %v3218_v25  ;;  %2759 = vmatprep.mubr.msk.bf16.mxu0 %vm1206_vm0, %v3239_v28  ;;  %v3329_v25 = vld [vmem:[%s3545_s24 + $0x22c] ss:$16 sps:$4 sm:$0xff]   ;;  %v3331_v28 = vld [vmem:[%s3545_s24 + $0x228] ss:$16 sps:$4 sm:$0xff]  }
  0x35   : > { %1327 = vmatprep.subr.bf16.mxu1 %v3445_v1 }
  0x38   : > { %1328 = vmatpush1.bf16.msra.mxu1 %v3220_v26  ;;  %v3316_v26 = vld [vmem:[%s3545_s24 + $0x1c0] ss:$16 sps:$4 sm:$0xff]  }
  0x39   : > { %1329 = vmatprep.subr.bf16.mxu1 %v3445_v1 }
  0x3b   : > { %1641 = vmatmul.mubr.bf16.gmra.mrb[8].mxu0 %v3241_v31  ;;  %v3326_v31 = vld [vmem:[%s3545_s24 + $0x204] ss:$16 sps:$4 sm:$0xff]  }
  0x3c   : > { %1330 = vmatpush1.bf16.msra.mxu1 %v3222_v29  ;;  %2760 = vmatprep.mubr.msk.bf16.mxu0 %vm1206_vm0, %v3245_v32  ;;  %v3335_v29 = vld [vmem:[%s3545_s24 + $0x24c] ss:$16 sps:$4 sm:$0xff]   ;;  %v3337_v32 = vld [vmem:[%s3545_s24 + $0x248] ss:$16 sps:$4 sm:$0xff]  }
  0x3d   : > { %1331 = vmatprep.subr.bf16.mxu1 %v3445_v1 }
  0x40   : > { %1332 = vmatpush1.bf16.msra.mxu1 %v3224_v30  ;;  %v3322_v30 = vld [vmem:[%s3545_s24 + $0x1e0] ss:$16 sps:$4 sm:$0xff]  }
  0x41   : > { %1333 = vmatprep.subr.bf16.mxu1 %v3445_v1  ;;  %v3293_v1 = vld [vmem:[%s3545_s24 + $0x16c] ss:$16 sps:$4 sm:$0xff]  }
  0x43   : > { %1649 = vmatmul.mubr.bf16.gmra.mrb[12].mxu0 %v3247_v36  ;;  %v3343_v36 = vld [vmem:[%s3545_s24 + $0x268] ss:$16 sps:$4 sm:$0xff]  }
  0x44   : > { %1334 = vmatpush1.bf16.msra.mxu1 %v3229_v33  ;;  %2761 = vmatprep.mubr.msk.bf16.mxu0 %vm1206_vm0, %v3251_v37  ;;  %v3341_v33 = vld [vmem:[%s3545_s24 + $0x26c] ss:$16 sps:$4 sm:$0xff]  }
  0x45   : > { %v3347_v37 = vld [vmem:[%s3545_s24 + $0x28c] ss:$16 sps:$4 sm:$0xff]  }
  0x47   : > { %1336 = vmatmul.mubr.bf16.vlgmr.msra.gmra.mrb[0].mxu1 %v3230_v34  ;;  %v3328_v34 = vld [vmem:[%s3545_s24 + $0x200] ss:$16 sps:$4 sm:$0xff]  }
  0x48   : > { %1343 = vmatprep.mubr.bf16.mxu1 %v3236_v35  ;;  %v3332_v35 = vld [vmem:[%s3545_s24 + $0x224] ss:$16 sps:$4 sm:$0xff]  }
  0x4b   : > { %1657 = vmatmul.mubr.bf16.gmra.mrb[16].mxu0 %v3253_v40  ;;  %v3349_v40 = vld [vmem:[%s3545_s24 + $0x288] ss:$16 sps:$4 sm:$0xff]  }
  0x4c   : > { %2762 = vmatprep.mubr.msk.bf16.mxu0 %vm1206_vm0, %v3257_v41  ;;  %v3353_v41 = vld [vmem:[%s3545_s24 + $0x2ac] ss:$16 sps:$4 sm:$0xff]  }
  0x4f   : > { %1344 = vmatmul.mubr.bf16.gmra.mrb[4].mxu1 %v3238_v38  ;;  %v3334_v38 = vld [vmem:[%s3545_s24 + $0x220] ss:$16 sps:$4 sm:$0xff]  }
  0x50   : > { %1351 = vmatprep.mubr.bf16.mxu1 %v3242_v39  ;;  %v3338_v39 = vld [vmem:[%s3545_s24 + $0x244] ss:$16 sps:$4 sm:$0xff]  }
  0x53   : > { %1665 = vmatmul.mubr.bf16.gmra.mrb[20].mxu0 %v3259_v44  ;;  %v3355_v44 = vld [vmem:[%s3545_s24 + $0x2a8] ss:$16 sps:$4 sm:$0xff]  }
  0x54   : > { %2763 = vmatprep.mubr.msk.bf16.mxu0 %vm1206_vm0, %v3263_v45  ;;  %v3359_v45 = vld [vmem:[%s3545_s24 + $0x2cc] ss:$16 sps:$4 sm:$0xff]  }
  0x57   : > { %1352 = vmatmul.mubr.bf16.gmra.mrb[8].mxu1 %v3244_v42  ;;  %v3340_v42 = vld [vmem:[%s3545_s24 + $0x240] ss:$16 sps:$4 sm:$0xff]  }
  0x58   : > { %1359 = vmatprep.mubr.bf16.mxu1 %v3248_v43  ;;  %v3344_v43 = vld [vmem:[%s3545_s24 + $0x264] ss:$16 sps:$4 sm:$0xff]  }
  0x5b   : > { %1673 = vmatmul.mubr.bf16.gmra.mrb[24].mxu0 %v3265_v48  ;;  %v3361_v48 = vld [vmem:[%s3545_s24 + $0x2c8] ss:$16 sps:$4 sm:$0xff]  }
  0x5c   : > { %2764 = vmatprep.mubr.msk.bf16.mxu0 %vm1206_vm0, %v3269_v49  ;;  %v3365_v49 = vld [vmem:[%s3545_s24 + $0x2ec] ss:$16 sps:$4 sm:$0xff]  }
  0x5f   : > { %1360 = vmatmul.mubr.bf16.gmra.mrb[12].mxu1 %v3250_v46  ;;  %v3346_v46 = vld [vmem:[%s3545_s24 + $0x260] ss:$16 sps:$4 sm:$0xff]  }
  0x60   : > { %1367 = vmatprep.mubr.bf16.mxu1 %v3254_v47  ;;  %v3350_v47 = vld [vmem:[%s3545_s24 + $0x284] ss:$16 sps:$4 sm:$0xff]  }
  0x63   : > { %1681 = vmatmul.mubr.bf16.gmra.mrb[28].mxu0 %v3271_v52  ;;  %v3367_v52 = vld [vmem:[%s3545_s24 + $0x2e8] ss:$16 sps:$4 sm:$0xff]  }
  0x64   : > { %2765 = vmatprep.mubr.msk.bf16.mxu0 %vm1206_vm0, %v3275_v53  ;;  %v3371_v53 = vld [vmem:[%s3545_s24 + $0x30c] ss:$16 sps:$4 sm:$0xff]  }
  0x67   : > { %1368 = vmatmul.mubr.bf16.gmra.mrb[16].mxu1 %v3256_v50  ;;  %v3352_v50 = vld [vmem:[%s3545_s24 + $0x280] ss:$16 sps:$4 sm:$0xff]  }
  0x68   : > { %1375 = vmatprep.mubr.bf16.mxu1 %v3260_v51  ;;  %v3356_v51 = vld [vmem:[%s3545_s24 + $0x2a4] ss:$16 sps:$4 sm:$0xff]  }
  0x6b   : > { %1689 = vmatmul.mubr.bf16.gmra.mrb[32].mxu0 %v3277_v56  ;;  %v3373_v56 = vld [vmem:[%s3545_s24 + $0x308] ss:$16 sps:$4 sm:$0xff]  }
  0x6c   : > { %2766 = vmatprep.mubr.msk.bf16.mxu0 %vm1206_vm0, %v3281_v57  ;;  %v3377_v57 = vld [vmem:[%s3545_s24 + $0x32c] ss:$16 sps:$4 sm:$0xff]  }
  0x6f   : > { %1376 = vmatmul.mubr.bf16.gmra.mrb[20].mxu1 %v3262_v54  ;;  %v3358_v54 = vld [vmem:[%s3545_s24 + $0x2a0] ss:$16 sps:$4 sm:$0xff]  }
  0x70   : > { %1383 = vmatprep.mubr.bf16.mxu1 %v3266_v55  ;;  %v3362_v55 = vld [vmem:[%s3545_s24 + $0x2c4] ss:$16 sps:$4 sm:$0xff]  }
  0x73   : > { %1697 = vmatmul.mubr.bf16.gmra.mrb[36].mxu0 %v3283_v60  ;;  %v3379_v60 = vld [vmem:[%s3545_s24 + $0x328] ss:$16 sps:$4 sm:$0xff]  }
  0x74   : > { %2767 = vmatprep.mubr.msk.bf16.mxu0 %vm1206_vm0, %v3287_v61  ;;  %v3383_v61 = vld [vmem:[%s3545_s24 + $0x34c] ss:$16 sps:$4 sm:$0xff]  }
  0x77   : > { %1384 = vmatmul.mubr.bf16.gmra.mrb[24].mxu1 %v3268_v58  ;;  %v3364_v58 = vld [vmem:[%s3545_s24 + $0x2c0] ss:$16 sps:$4 sm:$0xff]  }
  0x78   : > { %1391 = vmatprep.mubr.bf16.mxu1 %v3272_v59  ;;  %v3368_v59 = vld [vmem:[%s3545_s24 + $0x2e4] ss:$16 sps:$4 sm:$0xff]  }
  0x7b   : > { %1705 = vmatmul.mubr.bf16.gmra.mrb[40].mxu0 %v3289_v0  ;;  %v3385_v0 = vld [vmem:[%s3545_s24 + $0x348] ss:$16 sps:$4 sm:$0xff]  }
  0x7c   : > { %2768 = vmatprep.mubr.msk.bf16.mxu0 %vm1206_vm0, %v3293_v1  ;;  %v3389_v1 = vld [vmem:[%s3545_s24 + $0x36c] ss:$16 sps:$4 sm:$0xff]  }
  0x7f   : > { %1392 = vmatmul.mubr.bf16.gmra.mrb[28].mxu1 %v3274_v62  ;;  %v3370_v62 = vld [vmem:[%s3545_s24 + $0x2e0] ss:$16 sps:$4 sm:$0xff]  }
  0x80   : > { %1399 = vmatprep.mubr.bf16.mxu1 %v3278_v63  ;;  %v3374_v63 = vld [vmem:[%s3545_s24 + $0x304] ss:$16 sps:$4 sm:$0xff]  }
  0x83   : > { %1713 = vmatmul.mubr.bf16.gmra.mrb[44].mxu0 %v3295_v4 }
  0x84   : > { %2769 = vmatprep.mubr.msk.bf16.mxu0 %vm1206_vm0, %v3299_v5 }
  0x87   : > { %1400 = vmatmul.mubr.bf16.gmra.mrb[32].mxu1 %v3280_v2  ;;  %v3376_v2 = vld [vmem:[%s3545_s24 + $0x300] ss:$16 sps:$4 sm:$0xff]  }
  0x88   : > { %1407 = vmatprep.mubr.bf16.mxu1 %v3284_v3  ;;  %v3380_v3 = vld [vmem:[%s3545_s24 + $0x324] ss:$16 sps:$4 sm:$0xff]  }
  0x8b   : > { %1721 = vmatmul.mubr.bf16.gmra.mrb[48].mxu0 %v3301_v8  ;;  %v3395_v8 = vld [vmem:[%s3545_s24 + $0x38c] ss:$16 sps:$4 sm:$0xff]  }
  0x8c   : > { %2770 = vmatprep.mubr.msk.bf16.mxu0 %vm1206_vm0, %v3305_v9 }
  0x8f   : > { %1408 = vmatmul.mubr.bf16.gmra.mrb[36].mxu1 %v3286_v6  ;;  %v3391_v6 = vld [vmem:[%s3545_s24 + $0x368] ss:$16 sps:$4 sm:$0xff]  }
  0x90   : > { %1415 = vmatprep.mubr.bf16.mxu1 %v3290_v7 }
  0x93   : > { %1729 = vmatmul.mubr.bf16.gmra.mrb[52].mxu0 %v3307_v12 }
  0x94   : > { %2771 = vmatprep.mubr.msk.bf16.mxu0 %vm1206_vm0, %v3311_v13 }
  0x97   : > { %1416 = vmatmul.mubr.bf16.gmra.mrb[40].mxu1 %v3292_v10  ;;  %v3382_v10 = vld [vmem:[%s3545_s24 + $0x320] ss:$16 sps:$4 sm:$0xff]  }
  0x98   : > { %1423 = vmatprep.mubr.bf16.mxu1 %v3296_v11  ;;  %v3386_v11 = vld [vmem:[%s3545_s24 + $0x344] ss:$16 sps:$4 sm:$0xff]  }
  0x9b   : > { %1737 = vmatmul.mubr.bf16.gmra.mrb[56].mxu0 %v3313_v16  ;;  %v3401_v16 = vld [vmem:[%s3545_s24 + $0x3ac] ss:$16 sps:$4 sm:$0xff]  }
  0x9c   : > { %2772 = vmatprep.mubr.msk.bf16.mxu0 %vm1206_vm0, %v3317_v17 }
  0x9f   : > { %1424 = vmatmul.mubr.bf16.gmra.mrb[44].mxu1 %v3298_v14  ;;  %v3397_v14 = vld [vmem:[%s3545_s24 + $0x388] ss:$16 sps:$4 sm:$0xff]  }
  0xa0   : > { %1431 = vmatprep.mubr.bf16.mxu1 %v3302_v15 }
  0xa3   : > { %1745 = vmatmul.mubr.bf16.gmra.mrb[60].mxu0 %v3319_v20 }
  0xa4   : > { %2773 = vmatprep.mubr.msk.bf16.mxu0 %vm1206_vm0, %v3323_v21 }
  0xa7   : > { %1432 = vmatmul.mubr.bf16.gmra.mrb[48].mxu1 %v3304_v18  ;;  %v3388_v18 = vld [vmem:[%s3545_s24 + $0x340] ss:$16 sps:$4 sm:$0xff]  }
  0xa8   : > { %1439 = vmatprep.mubr.bf16.mxu1 %v3308_v19  ;;  %v3392_v19 = vld [vmem:[%s3545_s24 + $0x364] ss:$16 sps:$4 sm:$0xff]  }
  0xab   : > { %1753 = vmatmul.mubr.bf16.gmra.mrb[64].mxu0 %v3325_v24  ;;  %v3407_v24 = vld [vmem:[%s3545_s24 + $0x3cc] ss:$16 sps:$4 sm:$0xff]  }
  0xac   : > { %2774 = vmatprep.mubr.msk.bf16.mxu0 %vm1206_vm0, %v3329_v25 }
  0xaf   : > { %1440 = vmatmul.mubr.bf16.gmra.mrb[52].mxu1 %v3310_v22  ;;  %v3403_v22 = vld [vmem:[%s3545_s24 + $0x3a8] ss:$16 sps:$4 sm:$0xff]  }
  0xb0   : > { %1447 = vmatprep.mubr.bf16.mxu1 %v3314_v23 }
  0xb3   : > { %1761 = vmatmul.mubr.bf16.gmra.mrb[68].mxu0 %v3331_v28  ;;  %v2024_v28 = vlaneseq }
  0xb4   : > { %2775 = vmatprep.mubr.msk.bf16.mxu0 %vm1206_vm0, %v3335_v29 }
  0xb7   : > { %1448 = vmatmul.mubr.bf16.gmra.mrb[56].mxu1 %v3316_v26 }
  0xb8   : > { %1455 = vmatprep.mubr.bf16.mxu1 %v3320_v27  ;;  %v3753_v27 = vld [vmem:[%s4106_s2] ss:$0 sm:$0xff] }
  0xbb   : > { %1769 = vmatmul.mubr.bf16.gmra.mrb[72].mxu0 %v3337_v32  ;;  %v3760_v32 = vld [vmem:[%s4107_s3] ss:$0 sm:$0xff] }
  0xbc   : > { %2776 = vmatprep.mubr.msk.bf16.mxu0 %vm1206_vm0, %v3341_v33 }
  0xbf   : > { %1456 = vmatmul.mubr.bf16.gmra.mrb[60].mxu1 %v3322_v30 }
  0xc0   : > { %1463 = vmatprep.mubr.bf16.mxu1 %v3326_v31  ;;  %v3394_v31 = vld [vmem:[%s3545_s24 + $0x360] ss:$16 sps:$4 sm:$0xff]  }
  0xc3   : > { %1777 = vmatmul.mubr.bf16.gmra.mrb[76].mxu0 %v3343_v36 }
  0xc4   : > { %2777 = vmatprep.mubr.msk.bf16.mxu0 %vm1206_vm0, %v3347_v37 }
  0xc7   : > { %1464 = vmatmul.mubr.bf16.gmra.mrb[64].mxu1 %v3328_v34  ;;  %v3398_v34 = vld [vmem:[%s3545_s24 + $0x384] ss:$16 sps:$4 sm:$0xff]  }
  0xc8   : > { %1471 = vmatprep.mubr.bf16.mxu1 %v3332_v35 }
  0xcb   : > { %1785 = vmatmul.mubr.bf16.gmra.mrb[80].mxu0 %v3349_v40 }
  0xcc   : > { %2778 = vmatprep.mubr.msk.bf16.mxu0 %vm1206_vm0, %v3353_v41  ;;  %v3409_v41 = vld [vmem:[%s3545_s24 + $0x3c8] ss:$16 sps:$4 sm:$0xff]  }
  0xcf   : > { %1472 = vmatmul.mubr.bf16.gmra.mrb[68].mxu1 %v3334_v38 }
  0xd0   : > { %1479 = vmatprep.mubr.bf16.mxu1 %v3338_v39  ;;  %v3766_v39 = vand.u32 127, %v2024_v28 }
  0xd2   : > { %vm2028_vm1 = vcmp.ge.s32.totalorder %v3766_v39, 8 }
  0xd3   : > { %1793 = vmatmul.mubr.bf16.gmra.mrb[84].mxu0 %v3355_v44 }
  0xd4   : > { %2779 = vmatprep.mubr.msk.bf16.mxu0 %vm1206_vm0, %v3359_v45  ;;  %v3413_v45 = vld [vmem:[%s3545_s24 + $0x3ec] ss:$16 sps:$4 sm:$0xff]  }
  0xd7   : > { %1480 = vmatmul.mubr.bf16.gmra.mrb[72].mxu1 %v3340_v42 }
  0xd8   : > { %1487 = vmatprep.mubr.bf16.mxu1 %v3344_v43 }
  0xdb   : > { %1801 = vmatmul.mubr.bf16.gmra.mrb[88].mxu0 %v3361_v48 }
  0xdc   : > { %2780 = vmatprep.mubr.msk.bf16.mxu0 %vm1206_vm0, %v3365_v49 }
  0xdf   : > { %1488 = vmatmul.mubr.bf16.gmra.mrb[76].mxu1 %v3346_v46 }
  0xe0   : > { %1495 = vmatprep.mubr.bf16.mxu1 %v3350_v47 }
  0xe3   : > { %1809 = vmatmul.mubr.bf16.gmra.mrb[92].mxu0 %v3367_v52 }
  0xe4   : > { %2781 = vmatprep.mubr.msk.bf16.mxu0 %vm1206_vm0, %v3371_v53  ;;  %v3400_v53 = vld [vmem:[%s3545_s24 + $0x380] ss:$16 sps:$4 sm:$0xff]  }
  0xe7   : > { %1496 = vmatmul.mubr.bf16.gmra.mrb[80].mxu1 %v3352_v50 }
  0xe8   : > { %1503 = vmatprep.mubr.bf16.mxu1 %v3356_v51 }
  0xeb   : > { %1817 = vmatmul.mubr.bf16.gmra.mrb[96].mxu0 %v3373_v56 }
  0xec   : > { %2782 = vmatprep.mubr.msk.bf16.mxu0 %vm1206_vm0, %v3377_v57 }
  0xef   : > { %1504 = vmatmul.mubr.bf16.gmra.mrb[84].mxu1 %v3358_v54 }
  0xf0   : > { %1511 = vmatprep.mubr.bf16.mxu1 %v3362_v55  ;;  %v3404_v55 = vld [vmem:[%s3545_s24 + $0x3a4] ss:$16 sps:$4 sm:$0xff]  }
  0xf3   : > { %1825 = vmatmul.mubr.bf16.gmra.mrb[100].mxu0 %v3379_v60 }
  0xf4   : > { %2783 = vmatprep.mubr.msk.bf16.mxu0 %vm1206_vm0, %v3383_v61 }
  0xf7   : > { %1512 = vmatmul.mubr.bf16.gmra.mrb[88].mxu1 %v3364_v58 }
  0xf8   : > { %1519 = vmatprep.mubr.bf16.mxu1 %v3368_v59 }
  0xfb   : > { %1833 = vmatmul.mubr.bf16.gmra.mrb[104].mxu0 %v3385_v0  ;;  %v3415_v0 = vld [vmem:[%s3545_s24 + $0x3e8] ss:$16 sps:$4 sm:$0xff]  }
  0xfc   : > { %2784 = vmatprep.mubr.msk.bf16.mxu0 %vm1206_vm0, %v3389_v1 }
  0xfe   : > { %v1626_v4 = vpop.f32.mrb[0].mxu0 }
  0xff   : > { %1520 = vmatmul.mubr.bf16.gmra.mrb[92].mxu1 %v3370_v62  ;;  %v1628_v5 = vpop.f32.mrb[1].mxu0 }
 0x100   : > { %1527 = vmatprep.mubr.bf16.mxu1 %v3374_v63  ;;  %v1629_v7 = vpop.f32.mrb[2].mxu0 }
 0x101   : > { %v1631_v9 = vpop.f32.mrb[3].mxu0 }
 0x103   : > { %1841 = vmatmul.mubr.bf16.gmra.mrb[108].mxu0 %v3391_v6 }
 0x104   : > { %2785 = vmatprep.mubr.msk.bf16.mxu0 %vm1206_vm0, %v3395_v8 }
 0x106   : > { %v1634_v12 = vpop.f32.mrb[4].mxu0 }
 0x107   : > { %1528 = vmatmul.mubr.bf16.gmra.mrb[96].mxu1 %v3376_v2  ;;  %v1636_v13 = vpop.f32.mrb[5].mxu0 }
 0x108   : > { %1535 = vmatprep.mubr.bf16.mxu1 %v3380_v3  ;;  %v1637_v15 = vpop.f32.mrb[6].mxu0  ;;  %v3410_v13 = vld [vmem:[%s3545_s24 + $0x3c4] ss:$16 sps:$4 sm:$0xff]  }
 0x109   : > { %v1639_v17 = vpop.f32.mrb[7].mxu0 }
 0x10b   : > { %1849 = vmatmul.mubr.bf16.gmra.mrb[112].mxu0 %v3397_v14 }
 0x10c   : > { %2786 = vmatprep.mubr.msk.bf16.mxu0 %vm1206_vm0, %v3401_v16 }
 0x10e   : > { %v3744_v20 = vpop.f32.mrb[8].mxu0 }
 0x10f   : > { %1536 = vmatmul.mubr.bf16.gmra.mrb[100].mxu1 %v3382_v10  ;;  %v1644_v21 = vpop.f32.mrb[9].mxu0 }
 0x110   : > { %1543 = vmatprep.mubr.bf16.mxu1 %v3386_v11  ;;  %v3747_v23 = vpop.f32.mrb[10].mxu0  ;;  %v3406_v11 = vld [vmem:[%s3545_s24 + $0x3a0] ss:$16 sps:$4 sm:$0xff]  }
 0x111   : > { %v1647_v25 = vpop.f32.mrb[11].mxu0 }
 0x113   : > { %1857 = vmatmul.mubr.bf16.gmra.mrb[116].mxu0 %v3403_v22 }
 0x114   : > { %2787 = vmatprep.mubr.msk.bf16.mxu0 %vm1206_vm0, %v3407_v24 }
 0x116   : > { %v3764_v38 = vpop.f32.mrb[12].mxu0 }
 0x117   : > { %1544 = vmatmul.mubr.bf16.gmra.mrb[104].mxu1 %v3388_v18  ;;  %v1652_v40 = vpop.f32.mrb[13].mxu0 }
 0x118   : > { %1551 = vmatprep.mubr.bf16.mxu1 %v3392_v19  ;;  %v3771_v44 = vpop.f32.mrb[14].mxu0 }
 0x119   : > { %v1655_v46 = vpop.f32.mrb[15].mxu0 }
 0x11a   : > { %v1337_v26 = vpop.f32.mrb[0].mxu1 }
 0x11b   : > { %v1627_v29 = vadd.f32 %v1626_v4, %v1337_v26  ;;  %v1339_v30 = vpop.f32.mrb[1].mxu1  ;;  %1865 = vmatmul.mubr.bf16.gmra.mrb[120].mxu0 %v3409_v41 }
 0x11c   : > { %v1340_v33 = vpop.f32.mrb[2].mxu1  ;;  %2788 = vmatprep.mubr.msk.bf16.mxu0 %vm1206_vm0, %v3413_v45 }
 0x11d   : > { %v1888_v35 = vmul.f32 %v3753_v27, %v1627_v29  ;;  %v1630_v36 = vadd.f32 %v1629_v7, %v1340_v33  ;;  %v1342_v37 = vpop.f32.mrb[3].mxu1 }
 0x11e   : > { %v3790_v61 = vpop.f32.mrb[16].mxu0 }
 0x11f   : > { %v1959_v42 = vadd.f32 %v3760_v32, %v1888_v35  ;;  %v1889_v43 = vmul.f32 %v3753_v27, %v1630_v36  ;;  %1552 = vmatmul.mubr.bf16.gmra.mrb[108].mxu1 %v3394_v31  ;;  %v1660_v63 = vpop.f32.mrb[17].mxu0  ;;  %v3416_v36 = vld [vmem:[%s3545_s24 + $0x3e4] ss:$16 sps:$4 sm:$0xff]  }
 0x120   : > { %1559 = vmatprep.mubr.bf16.mxu1 %v3398_v34  ;;  %v3795_v3 = vpop.f32.mrb[18].mxu0  ;;  %v3412_v34 = vld [vmem:[%s3545_s24 + $0x3c0] ss:$16 sps:$4 sm:$0xff]  }
 0x121   : > { %v2029_v47 = vmax.f32 %v1959_v42, 0.0  ;;  %v1960_v48 = vadd.f32 %v3760_v32, %v1889_v43  ;;  %v1663_v4 = vpop.f32.mrb[19].mxu0 }
 0x122   : > { %v1345_v49 = vpop.f32.mrb[4].mxu1 }
 0x123   : > { %v2030_v50 = vmax.f32 %v1960_v48, 0.0  ;;  %v1635_v51 = vadd.f32 %v1634_v12, %v1345_v49  ;;  %v1347_v52 = vpop.f32.mrb[5].mxu1  ;;  %v2093_v56 = vsel %vm2028_vm1, %v2029_v47, %v1959_v42  ;;  %1873 = vmatmul.mubr.bf16.gmra.mrb[124].mxu0 %v3415_v0 }
 0x124   : > { %v1348_v54 = vpop.f32.mrb[6].mxu1 }
 0x125   : > { %v2094_v57 = vsel %vm2028_vm1, %v2030_v50, %v1960_v48  ;;  %v1890_v58 = vmul.f32 %v3753_v27, %v1635_v51  ;;  %v1638_v59 = vadd.f32 %v1637_v15, %v1348_v54  ;;  %v1350_v60 = vpop.f32.mrb[7].mxu1 }
 0x126   : > { %v2925_v62 = vpack.c.bf16 %v2094_v57, %v2093_v56  ;;  %v1666_v19 = vpop.f32.mrb[20].mxu0  ;;  %v3418_v56 = vld [vmem:[%s3545_s24 + $0x3e0] ss:$16 sps:$4 sm:$0xff]  }
 0x127   : > { %v1961_v1 = vadd.f32 %v3760_v32, %v1890_v58  ;;  %v1891_v2 = vmul.f32 %v3753_v27, %v1638_v59  ;;  %1560 = vmatmul.mubr.bf16.gmra.mrb[112].mxu1 %v3400_v53 }
 0x128   : > { %2926 = vst [vmem:[%s3785_s12] sm:$0xff] %v2925_v62   ;;  %1567 = vmatprep.mubr.bf16.mxu1 %v3404_v55 }
 0x129   : > { %v2031_v5 = vmax.f32 %v1961_v1, 0.0  ;;  %v1962_v6 = vadd.f32 %v3760_v32, %v1891_v2 }
 0x12a   : > { %v1353_v7 = vpop.f32.mrb[8].mxu1 }
 0x12b   : > { %v2032_v8 = vmax.f32 %v1962_v6, 0.0  ;;  %v1643_v9 = vadd.f32 %v3744_v20, %v1353_v7  ;;  %v1355_v10 = vpop.f32.mrb[9].mxu1  ;;  %v2095_v14 = vsel %vm2028_vm1, %v2031_v5, %v1961_v1  ;;  %v1668_v20 = vpop.f32.mrb[21].mxu0 }
 0x12c   : > { %v1356_v12 = vpop.f32.mrb[10].mxu1  ;;  %v1669_v25 = vpop.f32.mrb[22].mxu0 }
 0x12d   : > { %v2096_v15 = vsel %vm2028_vm1, %v2032_v8, %v1962_v6  ;;  %v1892_v16 = vmul.f32 %v3753_v27, %v1643_v9  ;;  %v1646_v17 = vadd.f32 %v3747_v23, %v1356_v12  ;;  %v1358_v18 = vpop.f32.mrb[11].mxu1  ;;  %v1671_v26 = vpop.f32.mrb[23].mxu0 }
 0x12e   : > { %v2930_v21 = vpack.c.bf16 %v2096_v15, %v2095_v14  ;;  %v1674_v45 = vpop.f32.mrb[24].mxu0 }
 0x12f   : > { %v1963_v22 = vadd.f32 %v3760_v32, %v1892_v16  ;;  %v1893_v24 = vmul.f32 %v3753_v27, %v1646_v17  ;;  %1568 = vmatmul.mubr.bf16.gmra.mrb[116].mxu1 %v3406_v11 }
 0x130   : > { %3082 = vst [vmem:[%s3785_s12 + $0x8] sm:$0xff] %v2930_v21   ;;  %1575 = vmatprep.mubr.bf16.mxu1 %v3410_v13 }
 0x131   : > { %v2033_v28 = vmax.f32 %v1963_v22, 0.0  ;;  %v1964_v29 = vadd.f32 %v3760_v32, %v1893_v24 }
 0x132   : > { %v1361_v30 = vpop.f32.mrb[12].mxu1 }
 0x133   : > { %v2034_v23 = vmax.f32 %v1964_v29, 0.0  ;;  %v1651_v31 = vadd.f32 %v3764_v38, %v1361_v30  ;;  %v1363_v33 = vpop.f32.mrb[13].mxu1  ;;  %v2097_v37 = vsel %vm2028_vm1, %v2033_v28, %v1963_v22  ;;  %v1676_v38 = vpop.f32.mrb[25].mxu0 }
 0x134   : > { %v1364_v35 = vpop.f32.mrb[14].mxu1  ;;  %v1677_v49 = vpop.f32.mrb[26].mxu0 }
 0x135   : > { %v2098_v40 = vsel %vm2028_vm1, %v2034_v23, %v1964_v29  ;;  %v1894_v41 = vmul.f32 %v3753_v27, %v1651_v31  ;;  %v1654_v42 = vadd.f32 %v3771_v44, %v1364_v35  ;;  %v1366_v43 = vpop.f32.mrb[15].mxu1  ;;  %v1679_v50 = vpop.f32.mrb[27].mxu0 }
 0x136   : > { %v2935_v46 = vpack.c.bf16 %v2098_v40, %v2097_v37  ;;  %v1682_v0 = vpop.f32.mrb[28].mxu0 }
 0x137   : > { %v1965_v47 = vadd.f32 %v3760_v32, %v1894_v41  ;;  %v1895_v48 = vmul.f32 %v3753_v27, %v1654_v42  ;;  %1576 = vmatmul.mubr.bf16.gmra.mrb[120].mxu1 %v3412_v34  ;;  %v1684_v2 = vpop.f32.mrb[29].mxu0 }
 0x138   : > { %3083 = vst [vmem:[%s3785_s12 + $0x10] sm:$0xff] %v2935_v46   ;;  %1583 = vmatprep.mubr.bf16.mxu1 %v3416_v36  ;;  %v1685_v5 = vpop.f32.mrb[30].mxu0 }
 0x139   : > { %v2035_v51 = vmax.f32 %v1965_v47, 0.0  ;;  %v1966_v52 = vadd.f32 %v3760_v32, %v1895_v48  ;;  %v1687_v6 = vpop.f32.mrb[31].mxu0 }
 0x13a   : > { %v1369_v53 = vpop.f32.mrb[16].mxu1 }
 0x13b   : > { %v2036_v54 = vmax.f32 %v1966_v52, 0.0  ;;  %v1659_v44 = vadd.f32 %v3790_v61, %v1369_v53  ;;  %v1371_v55 = vpop.f32.mrb[17].mxu1  ;;  %v2099_v58 = vsel %vm2028_vm1, %v2035_v51, %v1965_v47 }
 0x13c   : > { %v1372_v57 = vpop.f32.mrb[18].mxu1 }
 0x13d   : > { %v2100_v59 = vsel %vm2028_vm1, %v2036_v54, %v1966_v52  ;;  %v1896_v60 = vmul.f32 %v3753_v27, %v1659_v44  ;;  %v1662_v62 = vadd.f32 %v3795_v3, %v1372_v57  ;;  %v1374_v63 = vpop.f32.mrb[19].mxu1 }
 0x13e   : > { %v2940_v1 = vpack.c.bf16 %v2100_v59, %v2099_v58  ;;  %v1690_v18 = vpop.f32.mrb[32].mxu0 }
 0x13f   : > { %v1967_v61 = vadd.f32 %v3760_v32, %v1896_v60  ;;  %v1897_v4 = vmul.f32 %v3753_v27, %v1662_v62  ;;  %1584 = vmatmul.mubr.bf16.gmra.mrb[124].mxu1 %v3418_v56  ;;  %v1692_v20 = vpop.f32.mrb[33].mxu0 }
 0x140   : > { %3084 = vst [vmem:[%s3785_s12 + $0x18] sm:$0xff] %v2940_v1  }
 0x141   : > { %v2037_v7 = vmax.f32 %v1967_v61, 0.0  ;;  %v1968_v8 = vadd.f32 %v3760_v32, %v1897_v4 }
 0x142   : > { %v1377_v9 = vpop.f32.mrb[20].mxu1 }
 0x143   : > { %v2038_v10 = vmax.f32 %v1968_v8, 0.0  ;;  %v1667_v11 = vadd.f32 %v1666_v19, %v1377_v9  ;;  %v1379_v3 = vpop.f32.mrb[21].mxu1  ;;  %v2101_v13 = vsel %vm2028_vm1, %v2037_v7, %v1967_v61  ;;  %v1693_v19 = vpop.f32.mrb[34].mxu0 }
 0x144   : > { %v1380_v12 = vpop.f32.mrb[22].mxu1  ;;  %v1695_v26 = vpop.f32.mrb[35].mxu0 }
 0x145   : > { %v2102_v14 = vsel %vm2028_vm1, %v2038_v10, %v1968_v8  ;;  %v1898_v15 = vmul.f32 %v3753_v27, %v1667_v11  ;;  %v1670_v16 = vadd.f32 %v1669_v25, %v1380_v12  ;;  %v1382_v17 = vpop.f32.mrb[23].mxu1 }
 0x146   : > { %v2945_v21 = vpack.c.bf16 %v2102_v14, %v2101_v13  ;;  %v1698_v41 = vpop.f32.mrb[36].mxu0 }
 0x147   : > { %v1969_v22 = vadd.f32 %v3760_v32, %v1898_v15  ;;  %v1899_v24 = vmul.f32 %v3753_v27, %v1670_v16  ;;  %v1700_v43 = vpop.f32.mrb[37].mxu0 }
 0x148   : > { %3085 = vst [vmem:[%s3785_s12 + $0x20] sm:$0xff] %v2945_v21  }
 0x149   : > { %v2039_v28 = vmax.f32 %v1969_v22, 0.0  ;;  %v1970_v29 = vadd.f32 %v3760_v32, %v1899_v24 }
 0x14a   : > { %v1385_v30 = vpop.f32.mrb[24].mxu1 }
 0x14b   : > { %v2040_v23 = vmax.f32 %v1970_v29, 0.0  ;;  %v1675_v31 = vadd.f32 %v1674_v45, %v1385_v30  ;;  %v1387_v33 = vpop.f32.mrb[25].mxu1  ;;  %v2103_v34 = vsel %vm2028_vm1, %v2039_v28, %v1969_v22  ;;  %v1701_v45 = vpop.f32.mrb[38].mxu0 }
 0x14c   : > { %v1388_v25 = vpop.f32.mrb[26].mxu1  ;;  %v1703_v47 = vpop.f32.mrb[39].mxu0 }
 0x14d   : > { %v2104_v35 = vsel %vm2028_vm1, %v2040_v23, %v1970_v29  ;;  %v1900_v36 = vmul.f32 %v3753_v27, %v1675_v31  ;;  %v1678_v37 = vadd.f32 %v1677_v49, %v1388_v25  ;;  %v1390_v40 = vpop.f32.mrb[27].mxu1 }
 0x14e   : > { %v2950_v42 = vpack.c.bf16 %v2104_v35, %v2103_v34  ;;  %v1706_v59 = vpop.f32.mrb[40].mxu0 }
 0x14f   : > { %v1971_v46 = vadd.f32 %v3760_v32, %v1900_v36  ;;  %v1901_v38 = vmul.f32 %v3753_v27, %v1678_v37  ;;  %v1708_v62 = vpop.f32.mrb[41].mxu0 }
 0x150   : > { %3086 = vst [vmem:[%s3785_s12 + $0x28] sm:$0xff] %v2950_v42  }
 0x151   : > { %v2041_v48 = vmax.f32 %v1971_v46, 0.0  ;;  %v1972_v50 = vadd.f32 %v3760_v32, %v1901_v38 }
 0x152   : > { %v1393_v51 = vpop.f32.mrb[28].mxu1 }
 0x153   : > { %v2042_v52 = vmax.f32 %v1972_v50, 0.0  ;;  %v1683_v53 = vadd.f32 %v1682_v0, %v1393_v51  ;;  %v1395_v54 = vpop.f32.mrb[29].mxu1  ;;  %v2105_v44 = vsel %vm2028_vm1, %v2041_v48, %v1971_v46  ;;  %v1709_v0 = vpop.f32.mrb[42].mxu0 }
 0x154   : > { %v1396_v49 = vpop.f32.mrb[30].mxu1  ;;  %v1711_v2 = vpop.f32.mrb[43].mxu0 }
 0x155   : > { %v2106_v55 = vsel %vm2028_vm1, %v2042_v52, %v1972_v50  ;;  %v1902_v56 = vmul.f32 %v3753_v27, %v1683_v53  ;;  %v1686_v57 = vadd.f32 %v1685_v5, %v1396_v49  ;;  %v1398_v58 = vpop.f32.mrb[31].mxu1 }
 0x156   : > { %v2955_v60 = vpack.c.bf16 %v2106_v55, %v2105_v44  ;;  %v1714_v14 = vpop.f32.mrb[44].mxu0 }
 0x157   : > { %v1973_v63 = vadd.f32 %v3760_v32, %v1902_v56  ;;  %v1903_v1 = vmul.f32 %v3753_v27, %v1686_v57  ;;  %v1716_v16 = vpop.f32.mrb[45].mxu0 }
 0x158   : > { %3087 = vst [vmem:[%s3785_s12 + $0x30] sm:$0xff] %v2955_v60  }
 0x159   : > { %v2043_v61 = vmax.f32 %v1973_v63, 0.0  ;;  %v1974_v4 = vadd.f32 %v3760_v32, %v1903_v1 }
 0x15a   : > { %v1401_v6 = vpop.f32.mrb[32].mxu1 }
 0x15b   : > { %v2044_v7 = vmax.f32 %v1974_v4, 0.0  ;;  %v1691_v8 = vadd.f32 %v1690_v18, %v1401_v6  ;;  %v1403_v9 = vpop.f32.mrb[33].mxu1  ;;  %v2107_v10 = vsel %vm2028_vm1, %v2043_v61, %v1973_v63  ;;  %v1717_v18 = vpop.f32.mrb[46].mxu0 }
 0x15c   : > { %v1404_v5 = vpop.f32.mrb[34].mxu1  ;;  %v1719_v20 = vpop.f32.mrb[47].mxu0 }
 0x15d   : > { %v2108_v11 = vsel %vm2028_vm1, %v2044_v7, %v1974_v4  ;;  %v1904_v3 = vmul.f32 %v3753_v27, %v1691_v8  ;;  %v1694_v12 = vadd.f32 %v1693_v19, %v1404_v5  ;;  %v1406_v13 = vpop.f32.mrb[35].mxu1 }
 0x15e   : > { %v2960_v15 = vpack.c.bf16 %v2108_v11, %v2107_v10  ;;  %v1722_v35 = vpop.f32.mrb[48].mxu0 }
 0x15f   : > { %v1975_v17 = vadd.f32 %v3760_v32, %v1904_v3  ;;  %v1905_v21 = vmul.f32 %v3753_v27, %v1694_v12  ;;  %v1724_v37 = vpop.f32.mrb[49].mxu0 }
 0x160   : > { %3088 = vst [vmem:[%s3785_s12 + $0x38] sm:$0xff] %v2960_v15  }
 0x161   : > { %v2045_v22 = vmax.f32 %v1975_v17, 0.0  ;;  %v1976_v24 = vadd.f32 %v3760_v32, %v1905_v21 }
 0x162   : > { %v1409_v26 = vpop.f32.mrb[36].mxu1 }
 0x163   : > { %v2046_v28 = vmax.f32 %v1976_v24, 0.0  ;;  %v1699_v29 = vadd.f32 %v1698_v41, %v1409_v26  ;;  %v1411_v30 = vpop.f32.mrb[37].mxu1  ;;  %v2109_v23 = vsel %vm2028_vm1, %v2045_v22, %v1975_v17  ;;  %v1725_v41 = vpop.f32.mrb[50].mxu0 }
 0x164   : > { %v1412_v19 = vpop.f32.mrb[38].mxu1  ;;  %v1727_v43 = vpop.f32.mrb[51].mxu0 }
 0x165   : > { %v2110_v31 = vsel %vm2028_vm1, %v2046_v28, %v1976_v24  ;;  %v1906_v33 = vmul.f32 %v3753_v27, %v1699_v29  ;;  %v1702_v25 = vadd.f32 %v1701_v45, %v1412_v19  ;;  %v1414_v34 = vpop.f32.mrb[39].mxu1 }
 0x166   : > { %v2965_v36 = vpack.c.bf16 %v2110_v31, %v2109_v23  ;;  %v1730_v55 = vpop.f32.mrb[52].mxu0 }
 0x167   : > { %v1977_v40 = vadd.f32 %v3760_v32, %v1906_v33  ;;  %v1907_v42 = vmul.f32 %v3753_v27, %v1702_v25  ;;  %v1732_v57 = vpop.f32.mrb[53].mxu0 }
 0x168   : > { %3089 = vst [vmem:[%s3785_s12 + $0x40] sm:$0xff] %v2965_v36  }
 0x169   : > { %v2047_v46 = vmax.f32 %v1977_v40, 0.0  ;;  %v1978_v38 = vadd.f32 %v3760_v32, %v1907_v42 }
 0x16a   : > { %v1417_v47 = vpop.f32.mrb[40].mxu1 }
 0x16b   : > { %v2048_v48 = vmax.f32 %v1978_v38, 0.0  ;;  %v1707_v50 = vadd.f32 %v1706_v59, %v1417_v47  ;;  %v1419_v51 = vpop.f32.mrb[41].mxu1  ;;  %v2111_v52 = vsel %vm2028_vm1, %v2047_v46, %v1977_v40  ;;  %v1733_v59 = vpop.f32.mrb[54].mxu0 }
 0x16c   : > { %v1420_v45 = vpop.f32.mrb[42].mxu1  ;;  %v1735_v62 = vpop.f32.mrb[55].mxu0 }
 0x16d   : > { %v2112_v53 = vsel %vm2028_vm1, %v2048_v48, %v1978_v38  ;;  %v1908_v54 = vmul.f32 %v3753_v27, %v1707_v50  ;;  %v1710_v49 = vadd.f32 %v1709_v0, %v1420_v45  ;;  %v1422_v44 = vpop.f32.mrb[43].mxu1 }
 0x16e   : > { %v2970_v56 = vpack.c.bf16 %v2112_v53, %v2111_v52  ;;  %v1738_v11 = vpop.f32.mrb[56].mxu0 }
 0x16f   : > { %v1979_v58 = vadd.f32 %v3760_v32, %v1908_v54  ;;  %v1909_v60 = vmul.f32 %v3753_v27, %v1710_v49  ;;  %v1740_v12 = vpop.f32.mrb[57].mxu0 }
 0x170   : > { %3090 = vst [vmem:[%s3785_s12 + $0x48] sm:$0xff] %v2970_v56  }
 0x171   : > { %v2049_v63 = vmax.f32 %v1979_v58, 0.0  ;;  %v1980_v1 = vadd.f32 %v3760_v32, %v1909_v60 }
 0x172   : > { %v1425_v2 = vpop.f32.mrb[44].mxu1 }
 0x173   : > { %v2050_v61 = vmax.f32 %v1980_v1, 0.0  ;;  %v1715_v4 = vadd.f32 %v1714_v14, %v1425_v2  ;;  %v1427_v6 = vpop.f32.mrb[45].mxu1  ;;  %v2113_v7 = vsel %vm2028_vm1, %v2049_v63, %v1979_v58  ;;  %v1741_v14 = vpop.f32.mrb[58].mxu0 }
 0x174   : > { %v1428_v0 = vpop.f32.mrb[46].mxu1  ;;  %v1743_v16 = vpop.f32.mrb[59].mxu0 }
 0x175   : > { %v2114_v8 = vsel %vm2028_vm1, %v2050_v61, %v1980_v1  ;;  %v1910_v9 = vmul.f32 %v3753_v27, %v1715_v4  ;;  %v1718_v5 = vadd.f32 %v1717_v18, %v1428_v0  ;;  %v1430_v10 = vpop.f32.mrb[47].mxu1 }
 0x176   : > { %v2975_v3 = vpack.c.bf16 %v2114_v8, %v2113_v7  ;;  %v1746_v31 = vpop.f32.mrb[60].mxu0 }
 0x177   : > { %v1981_v13 = vadd.f32 %v3760_v32, %v1910_v9  ;;  %v1911_v15 = vmul.f32 %v3753_v27, %v1718_v5  ;;  %v1748_v25 = vpop.f32.mrb[61].mxu0 }
 0x178   : > { %3091 = vst [vmem:[%s3785_s12 + $0x50] sm:$0xff] %v2975_v3  }
 0x179   : > { %v2051_v17 = vmax.f32 %v1981_v13, 0.0  ;;  %v1982_v21 = vadd.f32 %v3760_v32, %v1911_v15 }
 0x17a   : > { %v1433_v20 = vpop.f32.mrb[48].mxu1 }
 0x17b   : > { %v2052_v22 = vmax.f32 %v1982_v21, 0.0  ;;  %v1723_v24 = vadd.f32 %v1722_v35, %v1433_v20  ;;  %v1435_v26 = vpop.f32.mrb[49].mxu1  ;;  %v2115_v28 = vsel %vm2028_vm1, %v2051_v17, %v1981_v13  ;;  %v1749_v35 = vpop.f32.mrb[62].mxu0 }
 0x17c   : > { %v1436_v18 = vpop.f32.mrb[50].mxu1  ;;  %v1751_v37 = vpop.f32.mrb[63].mxu0 }
 0x17d   : > { %v2116_v29 = vsel %vm2028_vm1, %v2052_v22, %v1982_v21  ;;  %v1912_v30 = vmul.f32 %v3753_v27, %v1723_v24  ;;  %v1726_v19 = vadd.f32 %v1725_v41, %v1436_v18  ;;  %v1438_v23 = vpop.f32.mrb[51].mxu1 }
 0x17e   : > { %v2980_v33 = vpack.c.bf16 %v2116_v29, %v2115_v28  ;;  %v1754_v53 = vpop.f32.mrb[64].mxu0 }
 0x17f   : > { %v1983_v34 = vadd.f32 %v3760_v32, %v1912_v30  ;;  %v1913_v36 = vmul.f32 %v3753_v27, %v1726_v19  ;;  %v1756_v49 = vpop.f32.mrb[65].mxu0 }
 0x180   : > { %3092 = vst [vmem:[%s3785_s12 + $0x58] sm:$0xff] %v2980_v33  }
 0x181   : > { %v2053_v40 = vmax.f32 %v1983_v34, 0.0  ;;  %v1984_v42 = vadd.f32 %v3760_v32, %v1913_v36 }
 0x182   : > { %v1441_v43 = vpop.f32.mrb[52].mxu1 }
 0x183   : > { %v2054_v46 = vmax.f32 %v1984_v42, 0.0  ;;  %v1731_v38 = vadd.f32 %v1730_v55, %v1441_v43  ;;  %v1443_v47 = vpop.f32.mrb[53].mxu1  ;;  %v2117_v48 = vsel %vm2028_vm1, %v2053_v40, %v1983_v34  ;;  %v1757_v55 = vpop.f32.mrb[66].mxu0 }
 0x184   : > { %v1444_v41 = vpop.f32.mrb[54].mxu1  ;;  %v1759_v57 = vpop.f32.mrb[67].mxu0 }
 0x185   : > { %v2118_v50 = vsel %vm2028_vm1, %v2054_v46, %v1984_v42  ;;  %v1914_v51 = vmul.f32 %v3753_v27, %v1731_v38  ;;  %v1734_v45 = vadd.f32 %v1733_v59, %v1444_v41  ;;  %v1446_v52 = vpop.f32.mrb[55].mxu1 }
 0x186   : > { %v2985_v54 = vpack.c.bf16 %v2118_v50, %v2117_v48  ;;  %v1762_v8 = vpop.f32.mrb[68].mxu0 }
 0x187   : > { %v1985_v44 = vadd.f32 %v3760_v32, %v1914_v51  ;;  %v1915_v56 = vmul.f32 %v3753_v27, %v1734_v45  ;;  %v1764_v5 = vpop.f32.mrb[69].mxu0 }
 0x188   : > { %3093 = vst [vmem:[%s3785_s12 + $0x60] sm:$0xff] %v2985_v54  }
 0x189   : > { %v2055_v58 = vmax.f32 %v1985_v44, 0.0  ;;  %v1986_v60 = vadd.f32 %v3760_v32, %v1915_v56 }
 0x18a   : > { %v1449_v62 = vpop.f32.mrb[56].mxu1 }
 0x18b   : > { %v2056_v63 = vmax.f32 %v1986_v60, 0.0  ;;  %v1739_v1 = vadd.f32 %v1738_v11, %v1449_v62  ;;  %v1451_v2 = vpop.f32.mrb[57].mxu1  ;;  %v2119_v61 = vsel %vm2028_vm1, %v2055_v58, %v1985_v44  ;;  %v1765_v11 = vpop.f32.mrb[70].mxu0 }
 0x18c   : > { %v1452_v59 = vpop.f32.mrb[58].mxu1  ;;  %v1767_v12 = vpop.f32.mrb[71].mxu0 }
 0x18d   : > { %v2120_v4 = vsel %vm2028_vm1, %v2056_v63, %v1986_v60  ;;  %v1916_v6 = vmul.f32 %v3753_v27, %v1739_v1  ;;  %v1742_v0 = vadd.f32 %v1741_v14, %v1452_v59  ;;  %v1454_v7 = vpop.f32.mrb[59].mxu1 }
 0x18e   : > { %v2990_v9 = vpack.c.bf16 %v2120_v4, %v2119_v61  ;;  %v1770_v29 = vpop.f32.mrb[72].mxu0 }
 0x18f   : > { %v1987_v10 = vadd.f32 %v3760_v32, %v1916_v6  ;;  %v1917_v3 = vmul.f32 %v3753_v27, %v1742_v0  ;;  %v1772_v19 = vpop.f32.mrb[73].mxu0 }
 0x190   : > { %3094 = vst [vmem:[%s3785_s12 + $0x68] sm:$0xff] %v2990_v9  }
 0x191   : > { %v2057_v13 = vmax.f32 %v1987_v10, 0.0  ;;  %v1988_v15 = vadd.f32 %v3760_v32, %v1917_v3 }
 0x192   : > { %v1457_v16 = vpop.f32.mrb[60].mxu1 }
 0x193   : > { %v2058_v17 = vmax.f32 %v1988_v15, 0.0  ;;  %v1747_v21 = vadd.f32 %v1746_v31, %v1457_v16  ;;  %v1459_v20 = vpop.f32.mrb[61].mxu1  ;;  %v2121_v22 = vsel %vm2028_vm1, %v2057_v13, %v1987_v10  ;;  %v1773_v31 = vpop.f32.mrb[74].mxu0 }
 0x194   : > { %v1460_v14 = vpop.f32.mrb[62].mxu1  ;;  %v1775_v25 = vpop.f32.mrb[75].mxu0 }
 0x195   : > { %v2122_v24 = vsel %vm2028_vm1, %v2058_v17, %v1988_v15  ;;  %v1918_v26 = vmul.f32 %v3753_v27, %v1747_v21  ;;  %v1750_v18 = vadd.f32 %v1749_v35, %v1460_v14  ;;  %v1462_v28 = vpop.f32.mrb[63].mxu1 }
 0x196   : > { %v2995_v30 = vpack.c.bf16 %v2122_v24, %v2121_v22  ;;  %v1778_v50 = vpop.f32.mrb[76].mxu0 }
 0x197   : > { %v1989_v23 = vadd.f32 %v3760_v32, %v1918_v26  ;;  %v1919_v33 = vmul.f32 %v3753_v27, %v1750_v18  ;;  %v1780_v45 = vpop.f32.mrb[77].mxu0 }
 0x198   : > { %3095 = vst [vmem:[%s3785_s12 + $0x70] sm:$0xff] %v2995_v30  }
 0x199   : > { %v2059_v34 = vmax.f32 %v1989_v23, 0.0  ;;  %v1990_v36 = vadd.f32 %v3760_v32, %v1919_v33 }
 0x19a   : > { %v1465_v37 = vpop.f32.mrb[64].mxu1 }
 0x19b   : > { %v2060_v40 = vmax.f32 %v1990_v36, 0.0  ;;  %v1755_v42 = vadd.f32 %v1754_v53, %v1465_v37  ;;  %v1467_v43 = vpop.f32.mrb[65].mxu1  ;;  %v2123_v46 = vsel %vm2028_vm1, %v2059_v34, %v1989_v23  ;;  %v1781_v53 = vpop.f32.mrb[78].mxu0 }
 0x19c   : > { %v1468_v35 = vpop.f32.mrb[66].mxu1  ;;  %v1783_v49 = vpop.f32.mrb[79].mxu0 }
 0x19d   : > { %v2124_v38 = vsel %vm2028_vm1, %v2060_v40, %v1990_v36  ;;  %v1920_v47 = vmul.f32 %v3753_v27, %v1755_v42  ;;  %v1758_v41 = vadd.f32 %v1757_v55, %v1468_v35  ;;  %v1470_v48 = vpop.f32.mrb[67].mxu1 }
 0x19e   : > { %v3000_v51 = vpack.c.bf16 %v2124_v38, %v2123_v46  ;;  %v1786_v4 = vpop.f32.mrb[80].mxu0 }
 0x19f   : > { %v1991_v52 = vadd.f32 %v3760_v32, %v1920_v47  ;;  %v1921_v54 = vmul.f32 %v3753_v27, %v1758_v41  ;;  %v1788_v0 = vpop.f32.mrb[81].mxu0 }
 0x1a0   : > { %3096 = vst [vmem:[%s3785_s12 + $0x78] sm:$0xff] %v3000_v51  }
 0x1a1   : > { %v2061_v44 = vmax.f32 %v1991_v52, 0.0  ;;  %v1992_v56 = vadd.f32 %v3760_v32, %v1921_v54 }
 0x1a2   : > { %v1473_v57 = vpop.f32.mrb[68].mxu1 }
 0x1a3   : > { %v2062_v58 = vmax.f32 %v1992_v56, 0.0  ;;  %v1763_v60 = vadd.f32 %v1762_v8, %v1473_v57  ;;  %v1475_v62 = vpop.f32.mrb[69].mxu1  ;;  %v2125_v63 = vsel %vm2028_vm1, %v2061_v44, %v1991_v52  ;;  %v1789_v8 = vpop.f32.mrb[82].mxu0 }
 0x1a4   : > { %v1476_v55 = vpop.f32.mrb[70].mxu1  ;;  %v1791_v5 = vpop.f32.mrb[83].mxu0 }
 0x1a5   : > { %v2126_v1 = vsel %vm2028_vm1, %v2062_v58, %v1992_v56  ;;  %v1922_v2 = vmul.f32 %v3753_v27, %v1763_v60  ;;  %v1766_v59 = vadd.f32 %v1765_v11, %v1476_v55  ;;  %v1478_v61 = vpop.f32.mrb[71].mxu1 }
 0x1a6   : > { %v3005_v6 = vpack.c.bf16 %v2126_v1, %v2125_v63  ;;  %v1794_v24 = vpop.f32.mrb[84].mxu0 }
 0x1a7   : > { %v1993_v7 = vadd.f32 %v3760_v32, %v1922_v2  ;;  %v1923_v9 = vmul.f32 %v3753_v27, %v1766_v59  ;;  %v1796_v18 = vpop.f32.mrb[85].mxu0 }
 0x1a8   : > { %3097 = vst [vmem:[%s3785_s12 + $0x80] sm:$0xff] %v3005_v6  }
 0x1a9   : > { %v2063_v10 = vmax.f32 %v1993_v7, 0.0  ;;  %v1994_v3 = vadd.f32 %v3760_v32, %v1923_v9 }
 0x1aa   : > { %v1481_v12 = vpop.f32.mrb[72].mxu1 }
 0x1ab   : > { %v2064_v13 = vmax.f32 %v1994_v3, 0.0  ;;  %v1771_v15 = vadd.f32 %v1770_v29, %v1481_v12  ;;  %v1483_v16 = vpop.f32.mrb[73].mxu1  ;;  %v2127_v17 = vsel %vm2028_vm1, %v2063_v10, %v1993_v7  ;;  %v1797_v29 = vpop.f32.mrb[86].mxu0 }
 0x1ac   : > { %v1484_v11 = vpop.f32.mrb[74].mxu1  ;;  %v1799_v19 = vpop.f32.mrb[87].mxu0 }
 0x1ad   : > { %v2128_v21 = vsel %vm2028_vm1, %v2064_v13, %v1994_v3  ;;  %v1924_v20 = vmul.f32 %v3753_v27, %v1771_v15  ;;  %v1774_v14 = vadd.f32 %v1773_v31, %v1484_v11  ;;  %v1486_v22 = vpop.f32.mrb[75].mxu1 }
 0x1ae   : > { %v3010_v26 = vpack.c.bf16 %v2128_v21, %v2127_v17  ;;  %v1802_v38 = vpop.f32.mrb[88].mxu0 }
 0x1af   : > { %v1995_v28 = vadd.f32 %v3760_v32, %v1924_v20  ;;  %v1925_v30 = vmul.f32 %v3753_v27, %v1774_v14  ;;  %v1804_v41 = vpop.f32.mrb[89].mxu0 }
 0x1b0   : > { %3098 = vst [vmem:[%s3785_s12 + $0x88] sm:$0xff] %v3010_v26  }
 0x1b1   : > { %v2065_v23 = vmax.f32 %v1995_v28, 0.0  ;;  %v1996_v33 = vadd.f32 %v3760_v32, %v1925_v30 }
 0x1b2   : > { %v1489_v25 = vpop.f32.mrb[76].mxu1 }
 0x1b3   : > { %v2066_v34 = vmax.f32 %v1996_v33, 0.0  ;;  %v1779_v36 = vadd.f32 %v1778_v50, %v1489_v25  ;;  %v1491_v37 = vpop.f32.mrb[77].mxu1  ;;  %v2129_v40 = vsel %vm2028_vm1, %v2065_v23, %v1995_v28  ;;  %v1805_v50 = vpop.f32.mrb[90].mxu0 }
 0x1b4   : > { %v1492_v31 = vpop.f32.mrb[78].mxu1  ;;  %v1807_v45 = vpop.f32.mrb[91].mxu0 }
 0x1b5   : > { %v2130_v42 = vsel %vm2028_vm1, %v2066_v34, %v1996_v33  ;;  %v1926_v43 = vmul.f32 %v3753_v27, %v1779_v36  ;;  %v1782_v35 = vadd.f32 %v1781_v53, %v1492_v31  ;;  %v1494_v46 = vpop.f32.mrb[79].mxu1 }
 0x1b6   : > { %v3015_v47 = vpack.c.bf16 %v2130_v42, %v2129_v40  ;;  %v1810_v1 = vpop.f32.mrb[92].mxu0 }
 0x1b7   : > { %v1997_v48 = vadd.f32 %v3760_v32, %v1926_v43  ;;  %v1927_v51 = vmul.f32 %v3753_v27, %v1782_v35  ;;  %v1812_v59 = vpop.f32.mrb[93].mxu0 }
 0x1b8   : > { %3099 = vst [vmem:[%s3785_s12 + $0x90] sm:$0xff] %v3015_v47  }
 0x1b9   : > { %v2067_v52 = vmax.f32 %v1997_v48, 0.0  ;;  %v1998_v54 = vadd.f32 %v3760_v32, %v1927_v51 }
 0x1ba   : > { %v1497_v49 = vpop.f32.mrb[80].mxu1 }
 0x1bb   : > { %v2068_v44 = vmax.f32 %v1998_v54, 0.0  ;;  %v1787_v56 = vadd.f32 %v1786_v4, %v1497_v49  ;;  %v1499_v57 = vpop.f32.mrb[81].mxu1  ;;  %v2131_v58 = vsel %vm2028_vm1, %v2067_v52, %v1997_v48  ;;  %v1813_v4 = vpop.f32.mrb[94].mxu0 }
 0x1bc   : > { %v1500_v53 = vpop.f32.mrb[82].mxu1  ;;  %v1815_v0 = vpop.f32.mrb[95].mxu0 }
 0x1bd   : > { %v2132_v60 = vsel %vm2028_vm1, %v2068_v44, %v1998_v54  ;;  %v1928_v62 = vmul.f32 %v3753_v27, %v1787_v56  ;;  %v1790_v55 = vadd.f32 %v1789_v8, %v1500_v53  ;;  %v1502_v63 = vpop.f32.mrb[83].mxu1 }
 0x1be   : > { %v3020_v2 = vpack.c.bf16 %v2132_v60, %v2131_v58  ;;  %v1818_v21 = vpop.f32.mrb[96].mxu0 }
 0x1bf   : > { %v1999_v61 = vadd.f32 %v3760_v32, %v1928_v62  ;;  %v1929_v6 = vmul.f32 %v3753_v27, %v1790_v55  ;;  %v1820_v14 = vpop.f32.mrb[97].mxu0 }
 0x1c0   : > { %3100 = vst [vmem:[%s3785_s12 + $0x98] sm:$0xff] %v3020_v2  }
 0x1c1   : > { %v2069_v7 = vmax.f32 %v1999_v61, 0.0  ;;  %v2000_v9 = vadd.f32 %v3760_v32, %v1929_v6 }
 0x1c2   : > { %v1505_v5 = vpop.f32.mrb[84].mxu1 }
 0x1c3   : > { %v2070_v10 = vmax.f32 %v2000_v9, 0.0  ;;  %v1795_v3 = vadd.f32 %v1794_v24, %v1505_v5  ;;  %v1507_v12 = vpop.f32.mrb[85].mxu1  ;;  %v2133_v13 = vsel %vm2028_vm1, %v2069_v7, %v1999_v61  ;;  %v1821_v24 = vpop.f32.mrb[98].mxu0 }
 0x1c4   : > { %v1508_v8 = vpop.f32.mrb[86].mxu1  ;;  %v1823_v18 = vpop.f32.mrb[99].mxu0 }
 0x1c5   : > { %v2134_v15 = vsel %vm2028_vm1, %v2070_v10, %v2000_v9  ;;  %v1930_v16 = vmul.f32 %v3753_v27, %v1795_v3  ;;  %v1798_v11 = vadd.f32 %v1797_v29, %v1508_v8  ;;  %v1510_v17 = vpop.f32.mrb[87].mxu1 }
 0x1c6   : > { %v3025_v20 = vpack.c.bf16 %v2134_v15, %v2133_v13  ;;  %v1826_v42 = vpop.f32.mrb[100].mxu0 }
 0x1c7   : > { %v2001_v22 = vadd.f32 %v3760_v32, %v1930_v16  ;;  %v1931_v26 = vmul.f32 %v3753_v27, %v1798_v11  ;;  %v1828_v35 = vpop.f32.mrb[101].mxu0  ;;  %v4021_v11 = vld [vmem:[%s4107_s3] ss:$0 sm:$0xff] }
 0x1c8   : > { %3101 = vst [vmem:[%s3785_s12 + $0xa0] sm:$0xff] %v3025_v20  }
 0x1c9   : > { %v2071_v28 = vmax.f32 %v2001_v22, 0.0  ;;  %v2002_v30 = vadd.f32 %v3760_v32, %v1931_v26 }
 0x1ca   : > { %v1513_v19 = vpop.f32.mrb[88].mxu1 }
 0x1cb   : > { %v2072_v23 = vmax.f32 %v2002_v30, 0.0  ;;  %v1803_v33 = vadd.f32 %v1802_v38, %v1513_v19  ;;  %v1515_v25 = vpop.f32.mrb[89].mxu1  ;;  %v2135_v34 = vsel %vm2028_vm1, %v2071_v28, %v2001_v22  ;;  %v1829_v38 = vpop.f32.mrb[102].mxu0 }
 0x1cc   : > { %v1516_v29 = vpop.f32.mrb[90].mxu1  ;;  %v1831_v41 = vpop.f32.mrb[103].mxu0 }
 0x1cd   : > { %v2136_v36 = vsel %vm2028_vm1, %v2072_v23, %v2002_v30  ;;  %v1932_v37 = vmul.f32 %v3753_v27, %v1803_v33  ;;  %v1806_v31 = vadd.f32 %v1805_v50, %v1516_v29  ;;  %v1518_v40 = vpop.f32.mrb[91].mxu1 }
 0x1ce   : > { %v3030_v43 = vpack.c.bf16 %v2136_v36, %v2135_v34  ;;  %v1834_v60 = vpop.f32.mrb[104].mxu0 }
 0x1cf   : > { %v2003_v46 = vadd.f32 %v3760_v32, %v1932_v37  ;;  %v1933_v47 = vmul.f32 %v3753_v27, %v1806_v31  ;;  %v1836_v55 = vpop.f32.mrb[105].mxu0 }
 0x1d0   : > { %3102 = vst [vmem:[%s3785_s12 + $0xa8] sm:$0xff] %v3030_v43  }
 0x1d1   : > { %v2073_v48 = vmax.f32 %v2003_v46, 0.0  ;;  %v2004_v51 = vadd.f32 %v3760_v32, %v1933_v47 }
 0x1d2   : > { %v1521_v45 = vpop.f32.mrb[92].mxu1 }
 0x1d3   : > { %v2074_v52 = vmax.f32 %v2004_v51, 0.0  ;;  %v1811_v54 = vadd.f32 %v1810_v1, %v1521_v45  ;;  %v1523_v49 = vpop.f32.mrb[93].mxu1  ;;  %v2137_v44 = vsel %vm2028_vm1, %v2073_v48, %v2003_v46  ;;  %v1837_v1 = vpop.f32.mrb[106].mxu0 }
 0x1d4   : > { %v1524_v50 = vpop.f32.mrb[94].mxu1  ;;  %v1839_v59 = vpop.f32.mrb[107].mxu0 }
 0x1d5   : > { %v2138_v56 = vsel %vm2028_vm1, %v2074_v52, %v2004_v51  ;;  %v1934_v57 = vmul.f32 %v3753_v27, %v1811_v54  ;;  %v1814_v53 = vadd.f32 %v1813_v4, %v1524_v50  ;;  %v1526_v58 = vpop.f32.mrb[95].mxu1 }
 0x1d6   : > { %v3035_v62 = vpack.c.bf16 %v2138_v56, %v2137_v44  ;;  %v1842_v13 = vpop.f32.mrb[108].mxu0 }
 0x1d7   : > { %v2005_v63 = vadd.f32 %v3760_v32, %v1934_v57  ;;  %v1935_v2 = vmul.f32 %v3753_v27, %v1814_v53  ;;  %v4015_v27 = vld [vmem:[%s4106_s2] ss:$0 sm:$0xff]  ;;  %v1844_v16 = vpop.f32.mrb[109].mxu0 }
 0x1d8   : > { %3103 = vst [vmem:[%s3785_s12 + $0xb0] sm:$0xff] %v3035_v62   ;;  %v1845_v20 = vpop.f32.mrb[110].mxu0 }
 0x1d9   : > { %v2075_v61 = vmax.f32 %v2005_v63, 0.0  ;;  %v2006_v6 = vadd.f32 %v3760_v32, %v1935_v2  ;;  %v1847_v14 = vpop.f32.mrb[111].mxu0 }
 0x1da   : > { %v1529_v0 = vpop.f32.mrb[96].mxu1 }
 0x1db   : > { %v2076_v7 = vmax.f32 %v2006_v6, 0.0  ;;  %v1819_v9 = vadd.f32 %v1818_v21, %v1529_v0  ;;  %v1531_v5 = vpop.f32.mrb[97].mxu1  ;;  %v2139_v10 = vsel %vm2028_vm1, %v2075_v61, %v2005_v63 }
 0x1dc   : > { %v1532_v4 = vpop.f32.mrb[98].mxu1 }
 0x1dd   : > { %v2140_v3 = vsel %vm2028_vm1, %v2076_v7, %v2006_v6  ;;  %v1936_v12 = vmul.f32 %v4015_v27, %v1819_v9  ;;  %v1822_v32 = vadd.f32 %v1821_v24, %v1532_v4  ;;  %v1534_v8 = vpop.f32.mrb[99].mxu1 }
 0x1de   : > { %v3040_v15 = vpack.c.bf16 %v2140_v3, %v2139_v10  ;;  %v1850_v36 = vpop.f32.mrb[112].mxu0 }
 0x1df   : > { %v2007_v17 = vadd.f32 %v4021_v11, %v1936_v12  ;;  %v1937_v21 = vmul.f32 %v4015_v27, %v1822_v32  ;;  %v1852_v31 = vpop.f32.mrb[113].mxu0 }
 0x1e0   : > { %3104 = vst [vmem:[%s3785_s12 + $0xb8] sm:$0xff] %v3040_v15  }
 0x1e1   : > { %v2077_v22 = vmax.f32 %v2007_v17, 0.0  ;;  %v2008_v26 = vadd.f32 %v4021_v11, %v1937_v21 }
 0x1e2   : > { %v1537_v24 = vpop.f32.mrb[100].mxu1 }
 0x1e3   : > { %v2078_v18 = vmax.f32 %v2008_v26, 0.0  ;;  %v1827_v28 = vadd.f32 %v1826_v42, %v1537_v24  ;;  %v1539_v30 = vpop.f32.mrb[101].mxu1  ;;  %v2141_v23 = vsel %vm2028_vm1, %v2077_v22, %v2007_v17  ;;  %v1853_v42 = vpop.f32.mrb[114].mxu0 }
 0x1e4   : > { %v1540_v19 = vpop.f32.mrb[102].mxu1  ;;  %v1855_v35 = vpop.f32.mrb[115].mxu0 }
 0x1e5   : > { %v2142_v33 = vsel %vm2028_vm1, %v2078_v18, %v2008_v26  ;;  %v1938_v25 = vmul.f32 %v4015_v27, %v1827_v28  ;;  %v1830_v29 = vadd.f32 %v1829_v38, %v1540_v19  ;;  %v1542_v34 = vpop.f32.mrb[103].mxu1 }
 0x1e6   : > { %v3045_v37 = vpack.c.bf16 %v2142_v33, %v2141_v23  ;;  %v1858_v56 = vpop.f32.mrb[116].mxu0 }
 0x1e7   : > { %v2009_v40 = vadd.f32 %v4021_v11, %v1938_v25  ;;  %v1939_v43 = vmul.f32 %v4015_v27, %v1830_v29  ;;  %v1860_v53 = vpop.f32.mrb[117].mxu0 }
 0x1e8   : > { %3105 = vst [vmem:[%s3785_s12 + $0xc0] sm:$0xff] %v3045_v37  }
 0x1e9   : > { %v2079_v46 = vmax.f32 %v2009_v40, 0.0  ;;  %v2010_v47 = vadd.f32 %v4021_v11, %v1939_v43 }
 0x1ea   : > { %v1545_v41 = vpop.f32.mrb[104].mxu1 }
 0x1eb   : > { %v2080_v48 = vmax.f32 %v2010_v47, 0.0  ;;  %v1835_v51 = vadd.f32 %v1834_v60, %v1545_v41  ;;  %v1547_v45 = vpop.f32.mrb[105].mxu1  ;;  %v2143_v52 = vsel %vm2028_vm1, %v2079_v46, %v2009_v40  ;;  %v1861_v60 = vpop.f32.mrb[118].mxu0 }
 0x1ec   : > { %v1548_v38 = vpop.f32.mrb[106].mxu1  ;;  %v1863_v55 = vpop.f32.mrb[119].mxu0 }
 0x1ed   : > { %v2144_v54 = vsel %vm2028_vm1, %v2080_v48, %v2010_v47  ;;  %v1940_v49 = vmul.f32 %v4015_v27, %v1835_v51  ;;  %v1838_v50 = vadd.f32 %v1837_v1, %v1548_v38  ;;  %v1550_v44 = vpop.f32.mrb[107].mxu1 }
 0x1ee   : > { %v3050_v57 = vpack.c.bf16 %v2144_v54, %v2143_v52  ;;  %v1866_v3 = vpop.f32.mrb[120].mxu0 }
 0x1ef   : > { %v2011_v58 = vadd.f32 %v4021_v11, %v1940_v49  ;;  %v1941_v62 = vmul.f32 %v4015_v27, %v1838_v50  ;;  %v1868_v32 = vpop.f32.mrb[121].mxu0 }
 0x1f0   : > { %3106 = vst [vmem:[%s3785_s12 + $0xc8] sm:$0xff] %v3050_v57  }
 0x1f1   : > { %v2081_v63 = vmax.f32 %v2011_v58, 0.0  ;;  %v2012_v2 = vadd.f32 %v4021_v11, %v1941_v62 }
 0x1f2   : > { %v1553_v59 = vpop.f32.mrb[108].mxu1 }
 0x1f3   : > { %v2082_v61 = vmax.f32 %v2012_v2, 0.0  ;;  %v1843_v6 = vadd.f32 %v1842_v13, %v1553_v59  ;;  %v1555_v0 = vpop.f32.mrb[109].mxu1  ;;  %v2145_v7 = vsel %vm2028_vm1, %v2081_v63, %v2011_v58  ;;  %v1869_v13 = vpop.f32.mrb[122].mxu0 }
 0x1f4   : > { %v1556_v1 = vpop.f32.mrb[110].mxu1  ;;  %v1871_v16 = vpop.f32.mrb[123].mxu0 }
 0x1f5   : > { %v2146_v9 = vsel %vm2028_vm1, %v2082_v61, %v2012_v2  ;;  %v1942_v5 = vmul.f32 %v4015_v27, %v1843_v6  ;;  %v1846_v4 = vadd.f32 %v1845_v20, %v1556_v1  ;;  %v1558_v10 = vpop.f32.mrb[111].mxu1 }
 0x1f6   : > { %v3055_v12 = vpack.c.bf16 %v2146_v9, %v2145_v7  ;;  %v1874_v33 = vpop.f32.mrb[124].mxu0 }
 0x1f7   : > { %v2013_v8 = vadd.f32 %v4021_v11, %v1942_v5  ;;  %v1943_v15 = vmul.f32 %v4015_v27, %v1846_v4  ;;  %v1876_v29 = vpop.f32.mrb[125].mxu0 }
 0x1f8   : > { %3107 = vst [vmem:[%s3785_s12 + $0xd0] sm:$0xff] %v3055_v12  }
 0x1f9   : > { %v2083_v17 = vmax.f32 %v2013_v8, 0.0  ;;  %v2014_v21 = vadd.f32 %v4021_v11, %v1943_v15 }
 0x1fa   : > { %v1561_v14 = vpop.f32.mrb[112].mxu1 }
 0x1fb   : > { %v2084_v22 = vmax.f32 %v2014_v21, 0.0  ;;  %v1851_v26 = vadd.f32 %v1850_v36, %v1561_v14  ;;  %v1563_v24 = vpop.f32.mrb[113].mxu1  ;;  %v2147_v18 = vsel %vm2028_vm1, %v2083_v17, %v2013_v8  ;;  %v1877_v36 = vpop.f32.mrb[126].mxu0 }
 0x1fc   : > { %v1564_v20 = vpop.f32.mrb[114].mxu1  ;;  %v1879_v31 = vpop.f32.mrb[127].mxu0 }
 0x1fd   : > { %v2148_v28 = vsel %vm2028_vm1, %v2084_v22, %v2014_v21  ;;  %v1944_v30 = vmul.f32 %v4015_v27, %v1851_v26  ;;  %v1854_v19 = vadd.f32 %v1853_v42, %v1564_v20  ;;  %v1566_v23 = vpop.f32.mrb[115].mxu1 }
 0x1fe   : > { %v3060_v25 = vpack.c.bf16 %v2148_v28, %v2147_v18 }
 0x1ff   : > { %v2015_v34 = vadd.f32 %v4021_v11, %v1944_v30  ;;  %v1945_v37 = vmul.f32 %v4015_v27, %v1854_v19 }
 0x200   : > { %3108 = vst [vmem:[%s3785_s12 + $0xd8] sm:$0xff] %v3060_v25  }
 0x201   : > { %v2085_v40 = vmax.f32 %v2015_v34, 0.0  ;;  %v2016_v43 = vadd.f32 %v4021_v11, %v1945_v37 }
 0x202   : > { %v1569_v35 = vpop.f32.mrb[116].mxu1 }
 0x203   : > { %v2086_v46 = vmax.f32 %v2016_v43, 0.0  ;;  %v1859_v47 = vadd.f32 %v1858_v56, %v1569_v35  ;;  %v1571_v41 = vpop.f32.mrb[117].mxu1  ;;  %v2149_v48 = vsel %vm2028_vm1, %v2085_v40, %v2015_v34 }
 0x204   : > { %v1572_v42 = vpop.f32.mrb[118].mxu1 }
 0x205   : > { %v2150_v51 = vsel %vm2028_vm1, %v2086_v46, %v2016_v43  ;;  %v1946_v45 = vmul.f32 %v4015_v27, %v1859_v47  ;;  %v1862_v38 = vadd.f32 %v1861_v60, %v1572_v42  ;;  %v1574_v52 = vpop.f32.mrb[119].mxu1 }
 0x206   : > { %v3065_v54 = vpack.c.bf16 %v2150_v51, %v2149_v48 }
 0x207   : > { %v2017_v49 = vadd.f32 %v4021_v11, %v1946_v45  ;;  %v1947_v50 = vmul.f32 %v4015_v27, %v1862_v38 }
 0x208   : > { %3109 = vst [vmem:[%s3785_s12 + $0xe0] sm:$0xff] %v3065_v54  }
 0x209   : > { %v2087_v44 = vmax.f32 %v2017_v49, 0.0  ;;  %v2018_v56 = vadd.f32 %v4021_v11, %v1947_v50 }
 0x20a   : > { %v1577_v57 = vpop.f32.mrb[120].mxu1 }
 0x20b   : > { %v2088_v53 = vmax.f32 %v2018_v56, 0.0  ;;  %v1867_v58 = vadd.f32 %v1866_v3, %v1577_v57  ;;  %v1579_v62 = vpop.f32.mrb[121].mxu1  ;;  %v2151_v63 = vsel %vm2028_vm1, %v2087_v44, %v2017_v49 }
 0x20c   : > { %v1580_v55 = vpop.f32.mrb[122].mxu1 }
 0x20d   : > { %v2152_v60 = vsel %vm2028_vm1, %v2088_v53, %v2018_v56  ;;  %v1948_v2 = vmul.f32 %v4015_v27, %v1867_v58  ;;  %v1870_v59 = vadd.f32 %v1869_v13, %v1580_v55  ;;  %v1582_v61 = vpop.f32.mrb[123].mxu1 }
 0x20e   : > { %v3070_v6 = vpack.c.bf16 %v2152_v60, %v2151_v63 }
 0x20f   : > { %v2019_v0 = vadd.f32 %v4021_v11, %v1948_v2  ;;  %v1949_v1 = vmul.f32 %v4015_v27, %v1870_v59 }
 0x210   : > { %3110 = vst [vmem:[%s3785_s12 + $0xe8] sm:$0xff] %v3070_v6  }
 0x211   : > { %v2089_v7 = vmax.f32 %v2019_v0, 0.0  ;;  %v2020_v9 = vadd.f32 %v4021_v11, %v1949_v1 }
 0x212   : > { %v1585_v5 = vpop.f32.mrb[124].mxu1 }
 0x213   : > { %v2090_v4 = vmax.f32 %v2020_v9, 0.0  ;;  %v1875_v10 = vadd.f32 %v1874_v33, %v1585_v5  ;;  %v1587_v3 = vpop.f32.mrb[125].mxu1  ;;  %v2153_v32 = vsel %vm2028_vm1, %v2089_v7, %v2019_v0 }
 0x214   : > { %v1588_v12 = vpop.f32.mrb[126].mxu1 }
 0x215   : > { %v2154_v8 = vsel %vm2028_vm1, %v2090_v4, %v2020_v9  ;;  %v1950_v15 = vmul.f32 %v4015_v27, %v1875_v10  ;;  %v1878_v13 = vadd.f32 %v1877_v36, %v1588_v12  ;;  %v1590_v16 = vpop.f32.mrb[127].mxu1 }
 0x216   : > { %v3075_v17 = vpack.c.bf16 %v2154_v8, %v2153_v32 }
 0x217   : > { %v2021_v21 = vadd.f32 %v4021_v11, %v1950_v15  ;;  %v1951_v14 = vmul.f32 %v4015_v27, %v1878_v13 }
 0x218   : > { %3111 = vst [vmem:[%s3785_s12 + $0xf0] sm:$0xff] %v3075_v17  }
 0x219   : > { %v2091_v22 = vmax.f32 %v2021_v21, 0.0  ;;  %v2022_v26 = vadd.f32 %v4021_v11, %v1951_v14 }
 0x21b   : > { %v2092_v24 = vmax.f32 %v2022_v26, 0.0  ;;  %v2155_v20 = vsel %vm2028_vm1, %v2091_v22, %v2021_v21 }
 0x21d   : > { %v2156_v18 = vsel %vm2028_vm1, %v2092_v24, %v2022_v26 }
 0x21e   : > { %v3080_v28 = vpack.c.bf16 %v2156_v18, %v2155_v20 }
 0x220   : > { %3112 = vst [vmem:[%s3785_s12 + $0xf8] sm:$0xff] %v3080_v28  }
 0x221 PF: > { %s14_s17 = sadd.s32 1, %s3443_s17   ;;  %s4109_s15 = smov %s3439_s16 }
 0x222   : > { %p11_p5 = scmp.ge.s32.totalorder %s14_s17, 6   ;;  %s4110_s16 = smov %s4112_s18 }
 0x224   :  { %13 = sbr.rel (!%p11_p5) target bundleno = 2 (0x2), region = 75 }

// kernel: d_mask_forward.7
= control target key start
LH: loop header
LB: loop body
LE: loop exit
PB: predicated region body
PF: predicated region fallthrough
CT: control target
= control target key end

     0   :  { %s2627_s18 = smov 0   ;;  %s2629_s19 = smov 0   ;;  %s3203_s0 = inlined_call_operand.vmem [shape: bf16[2048,72], index: 0, kind: input, shape index: {}]   ;;  %s3204_s1 = inlined_call_operand.vmem [shape: bf16[72,128], index: 1, kind: input, shape index: {}]   ;;  %s3205_s2 = inlined_call_operand.vmem [shape: f32[1,128], index: 2, kind: input, shape index: {}]   ;;  %s3206_s3 = inlined_call_operand.vmem [shape: f32[1,128], index: 3, kind: input, shape index: {}]   ;;  %s3207_s4 = inlined_call_operand.vmem [shape: bf16[2048,128], index: 4, kind: input, shape index: {}]   ;;  %s3208_s5 = inlined_call_operand.vmem [shape: bf16[2048,128], index: 5, kind: output, shape index: {}]  }
   0x1   :  { %s2631_s20 = smov 0  }
   0x2 LB: > { %s27_s21 = sadd.s32 1, %s2591_s19  ;;  %p1831_p0 = scmp.ge.s32.totalorder %s2595_s20, 1  ;;  %s2595_s20 = sphi %s2631_s20, %s15_s20   ;;  %s2591_s19 = sphi %s2629_s19, %s3249_s19   ;;  %s2587_s18 = sphi %s2627_s18, %s3248_s18  }
   0x3   : > { %p29_p1 = scmp.ge.s32.totalorder %s27_s21, 4  ;;  %p243_p2 = scmp.lt.s32.totalorder %s2595_s20, 5 }
   0x5   : > { %s3251_s21 = smov (%p29_p1, %s27_s21), 0  ;;  %p244_p3 = pnand %p1831_p0, %p243_p2 }
   0x6   : > { %v2536_v0 = vld [vmem:[%s3204_s1] sm:$0xff] (!%p244_p3)   ;;  %v2537_v1 = vld [vmem:[%s3204_s1 + $0x8] sm:$0xff] (!%p244_p3)   ;;  %s1832_s26 = sshll.u32 (!%p244_p3), %s2587_s18, 6  ;;  %v2538_v2 = vld [vmem:[%s3204_s1 + $0x10] sm:$0xff] (!%p244_p3)   ;;  %vm587_vm0 = vcmask (!%p244_p3), 588800   ;;  %vm684_vm1 = vcmask (!%p244_p3), 1043456  }
   0x7   : > { %247 = sbr.rel (%p244_p3) target bundleno = 329 (0x149), region = 40  ;;  %2426 = vmatprep.subr.bf16.mxu0 (!%p244_p3), %v2536_v0  ;;  %2500 = vmatprep.subr.bf16.mxu1 (!%p244_p3), %v2536_v0  ;;  %p293_p4 = scmp.lt.s32.totalorder (!%p244_p3), %s1832_s26, 255  ;;  %v2539_v3 = vld [vmem:[%s3204_s1 + $0x18] sm:$0xff] (!%p244_p3)   ;;  %v2540_v6 = vld [vmem:[%s3204_s1 + $0x20] ss:$0 sps:$4 sm:$0xff] (!%p244_p3)  }
   0x8   : > { %2427 = vmatpush3.bf16.msra.mxu0 (!%p244_p3), %v2536_v0  ;;  %2505 = vmatpush3.bf16.msra.mxu1 (!%p244_p3), %v2536_v0  ;;  %v686_v7 = vsel (!%p244_p3), %vm684_vm1, %v2540_v6, 0 }
   0x9   : > { %2428 = vmatprep.subr.bf16.mxu0 (!%p244_p3), %v2537_v1  ;;  %2501 = vmatprep.subr.bf16.mxu1 (!%p244_p3), %v2537_v1 }
   0xc   : > { %2429 = vmatpush3.bf16.msra.mxu0 (!%p244_p3), %v2537_v1  ;;  %2506 = vmatpush3.bf16.msra.mxu1 (!%p244_p3), %v2537_v1 }
   0xd   : > { %2430 = vmatprep.subr.bf16.mxu0 (!%p244_p3), %v2538_v2  ;;  %2502 = vmatprep.subr.bf16.mxu1 (!%p244_p3), %v2538_v2 }
   0xe   : > { %s3253_s26 = smov (!%p293_p4, %s1832_s26), 255 }
   0xf   : > { %s2654_s29 = sshll.u32 %s3253_s26, 2 }
  0x10   : > { %s2663_s9 = scalar_lea.vmem %s3203_s0, %s2654_s29  ;;  %2431 = vmatpush3.bf16.msra.mxu0 %v2538_v2  ;;  %2507 = vmatpush3.bf16.msra.mxu1 %v2538_v2  ;;  %s2736_s14 = scalar_lea.vmem %s3207_s4, %s2654_s29 }
  0x11   : > { %v2541_v4 = vld [vmem:[%s2663_s9] sm:$0xff]   ;;  %2432 = vmatprep.subr.bf16.mxu0 %v2539_v3  ;;  %2503 = vmatprep.subr.bf16.mxu1 %v2539_v3  ;;  %v2543_v8 = vld [vmem:[%s2663_s9 + $0x8] sm:$0xff]   ;;  %v2545_v10 = vld [vmem:[%s2663_s9 + $0x10] sm:$0xff]   ;;  %s2926_s24 = scalar_lea.vmem %s3208_s5, %s2654_s29 }
  0x12   : > { %v2542_v5 = vld [vmem:[%s2663_s9 + $0x80] sm:$0xff]   ;;  %2436 = vmatprep.mubr.msk.bf16.mxu0 %vm587_vm0, %v2541_v4  ;;  %v2544_v9 = vld [vmem:[%s2663_s9 + $0x88] sm:$0xff]   ;;  %v2546_v11 = vld [vmem:[%s2663_s9 + $0x90] sm:$0xff]  }
  0x13   : > { %2468 = vmatprep.mubr.msk.bf16.mxu1 %vm587_vm0, %v2542_v5  ;;  %v2547_v12 = vld [vmem:[%s2663_s9 + $0x18] sm:$0xff]   ;;  %v2549_v14 = vld [vmem:[%s2663_s9 + $0x20] sm:$0xff]   ;;  %v2551_v16 = vld [vmem:[%s2663_s9 + $0x28] sm:$0xff]  }
  0x14   : > { %2433 = vmatpush3.bf16.msra.mxu0 %v2539_v3  ;;  %2508 = vmatpush3.bf16.msra.mxu1 %v2539_v3  ;;  %v2548_v13 = vld [vmem:[%s2663_s9 + $0x98] sm:$0xff]   ;;  %v2550_v15 = vld [vmem:[%s2663_s9 + $0xa0] sm:$0xff]   ;;  %v2552_v17 = vld [vmem:[%s2663_s9 + $0xa8] sm:$0xff]  }
  0x15   : > { %2510 = vmatprep.subr.msk.bf16.mxu0 %vm684_vm1, %v2540_v6  ;;  %2511 = vmatprep.subr.msk.bf16.mxu1 %vm684_vm1, %v2540_v6  ;;  %v2553_v18 = vld [vmem:[%s2663_s9 + $0x30] sm:$0xff]   ;;  %v2555_v20 = vld [vmem:[%s2663_s9 + $0x38] sm:$0xff]   ;;  %v2557_v22 = vld [vmem:[%s2663_s9 + $0x40] sm:$0xff]  }
  0x16   : > { %v2554_v19 = vld [vmem:[%s2663_s9 + $0xb0] sm:$0xff]   ;;  %v2556_v21 = vld [vmem:[%s2663_s9 + $0xb8] sm:$0xff]   ;;  %v2558_v23 = vld [vmem:[%s2663_s9 + $0xc0] sm:$0xff]  }
  0x17   : > { %v2559_v24 = vld [vmem:[%s2663_s9 + $0x48] sm:$0xff]   ;;  %v2561_v26 = vld [vmem:[%s2663_s9 + $0x50] sm:$0xff]   ;;  %v2563_v28 = vld [vmem:[%s2663_s9 + $0x58] sm:$0xff]  }
  0x18   : > { %2435 = vmatpush3.bf16.msra.mxu0 %v686_v7  ;;  %2509 = vmatpush3.bf16.msra.mxu1 %v686_v7  ;;  %v2560_v25 = vld [vmem:[%s2663_s9 + $0xc8] sm:$0xff]   ;;  %v2562_v27 = vld [vmem:[%s2663_s9 + $0xd0] sm:$0xff]   ;;  %v2564_v29 = vld [vmem:[%s2663_s9 + $0xd8] sm:$0xff]  }
  0x19   : > { %v2565_v30 = vld [vmem:[%s2663_s9 + $0x60] sm:$0xff]   ;;  %v2567_v32 = vld [vmem:[%s2663_s9 + $0x68] sm:$0xff]   ;;  %v2569_v34 = vld [vmem:[%s2663_s9 + $0x70] sm:$0xff]  }
  0x1a   : > { %v2566_v31 = vld [vmem:[%s2663_s9 + $0xe0] sm:$0xff]   ;;  %v2568_v33 = vld [vmem:[%s2663_s9 + $0xe8] sm:$0xff]   ;;  %v2570_v35 = vld [vmem:[%s2663_s9 + $0xf0] sm:$0xff]  }
  0x1b   : > { %2437 = vmatmul.mubr.msk.bf16.vlgmr.msra.gmra.mrb[0].mxu0 %vm587_vm0, %v2543_v8  ;;  %2469 = vmatmul.mubr.msk.bf16.vlgmr.msra.gmra.mrb[0].mxu1 %vm587_vm0, %v2544_v9  ;;  %v2571_v36 = vld [vmem:[%s2663_s9 + $0x78] sm:$0xff]   ;;  %v2739_v38 = vld [vmem:[%s2736_s14 + $0x8] sm:$0xff]   ;;  %v2745_v40 = vld [vmem:[%s2736_s14] sm:$0xff]  }
  0x1c   : > { %2440 = vmatprep.mubr.msk.bf16.mxu0 %vm587_vm0, %v2545_v10  ;;  %2472 = vmatprep.mubr.msk.bf16.mxu1 %vm587_vm0, %v2546_v11  ;;  %v2572_v37 = vld [vmem:[%s2663_s9 + $0xf8] sm:$0xff]   ;;  %v2742_v39 = vld [vmem:[%s2736_s14 + $0x88] sm:$0xff]   ;;  %v2748_v41 = vld [vmem:[%s2736_s14 + $0x80] sm:$0xff]   ;;  %v2045_v46 = vunpack.c.l.bf16 %v2739_v38  ;;  %v2041_v48 = vunpack.c.l.bf16 %v2745_v40  ;;  %v2046_v51 = vunpack.c.h.bf16 %v2739_v38  ;;  %v2042_v53 = vunpack.c.h.bf16 %v2745_v40 }
  0x1d   : > { %v2751_v42 = vld [vmem:[%s2736_s14 + $0x18] sm:$0xff]   ;;  %v2757_v44 = vld [vmem:[%s2736_s14 + $0x10] sm:$0xff]   ;;  %v2109_v47 = vunpack.c.l.bf16 %v2742_v39  ;;  %v2105_v49 = vunpack.c.l.bf16 %v2748_v41  ;;  %v2767_v50 = vld [vmem:[%s2736_s14 + $0x28] sm:$0xff]   ;;  %v2110_v52 = vunpack.c.h.bf16 %v2742_v39  ;;  %v2106_v54 = vunpack.c.h.bf16 %v2748_v41 }
  0x1e   : > { %v2754_v43 = vld [vmem:[%s2736_s14 + $0x98] sm:$0xff]   ;;  %v2760_v45 = vld [vmem:[%s2736_s14 + $0x90] sm:$0xff]   ;;  %v2774_v55 = vld [vmem:[%s2736_s14 + $0xa8] sm:$0xff]   ;;  %v2053_v58 = vunpack.c.l.bf16 %v2751_v42  ;;  %v2049_v60 = vunpack.c.l.bf16 %v2757_v44  ;;  %v2054_v63 = vunpack.c.h.bf16 %v2751_v42  ;;  %v2050_v1 = vunpack.c.h.bf16 %v2757_v44 }
  0x1f   : > { %v2777_v56 = vld [vmem:[%s2736_s14 + $0x20] sm:$0xff]   ;;  %v2117_v59 = vunpack.c.l.bf16 %v2754_v43  ;;  %v2113_v61 = vunpack.c.l.bf16 %v2760_v45  ;;  %v2787_v62 = vld [vmem:[%s2736_s14 + $0x38] sm:$0xff]   ;;  %v2118_v0 = vunpack.c.h.bf16 %v2754_v43  ;;  %v2114_v2 = vunpack.c.h.bf16 %v2760_v45  ;;  %v2797_v4 = vld [vmem:[%s2736_s14 + $0x30] sm:$0xff]  }
  0x20   : > { %v2780_v57 = vld [vmem:[%s2736_s14 + $0xa0] sm:$0xff]   ;;  %v2794_v3 = vld [vmem:[%s2736_s14 + $0xb8] sm:$0xff]   ;;  %v2800_v5 = vld [vmem:[%s2736_s14 + $0xb0] sm:$0xff]   ;;  %v2061_v6 = vunpack.c.l.bf16 %v2767_v50 }
  0x21   : > { %v2807_v10 = vld [vmem:[%s2736_s14 + $0x48] sm:$0xff]  }
  0x23   : > { %2441 = vmatmul.mubr.msk.bf16.gmra.mrb[4].mxu0 %vm587_vm0, %v2547_v12  ;;  %2473 = vmatmul.mubr.msk.bf16.gmra.mrb[4].mxu1 %vm587_vm0, %v2548_v13 }
  0x24   : > { %2444 = vmatprep.mubr.msk.bf16.mxu0 %vm587_vm0, %v2549_v14  ;;  %2476 = vmatprep.mubr.msk.bf16.mxu1 %vm587_vm0, %v2550_v15  ;;  %v2814_v15 = vld [vmem:[%s2736_s14 + $0xc8] sm:$0xff]  }
  0x2b   : > { %2445 = vmatmul.mubr.msk.bf16.gmra.mrb[8].mxu0 %vm587_vm0, %v2551_v16  ;;  %2477 = vmatmul.mubr.msk.bf16.gmra.mrb[8].mxu1 %vm587_vm0, %v2552_v17  ;;  %v2817_v16 = vld [vmem:[%s2736_s14 + $0x40] sm:$0xff]  }
  0x2c   : > { %2448 = vmatprep.mubr.msk.bf16.mxu0 %vm587_vm0, %v2553_v18  ;;  %2480 = vmatprep.mubr.msk.bf16.mxu1 %vm587_vm0, %v2554_v19  ;;  %v2820_v17 = vld [vmem:[%s2736_s14 + $0xc0] sm:$0xff]  }
  0x2d   : > { %v2878_v19 = vld [vmem:[%s3206_s3] ss:$0 sm:$0xff] }
  0x33   : > { %2449 = vmatmul.mubr.msk.bf16.gmra.mrb[12].mxu0 %vm587_vm0, %v2555_v20  ;;  %2481 = vmatmul.mubr.msk.bf16.gmra.mrb[12].mxu1 %vm587_vm0, %v2556_v21 }
  0x34   : > { %2452 = vmatprep.mubr.msk.bf16.mxu0 %vm587_vm0, %v2557_v22  ;;  %2484 = vmatprep.mubr.msk.bf16.mxu1 %vm587_vm0, %v2558_v23  ;;  %v2827_v22 = vld [vmem:[%s2736_s14 + $0x58] sm:$0xff]  }
  0x3b   : > { %2453 = vmatmul.mubr.msk.bf16.gmra.mrb[16].mxu0 %vm587_vm0, %v2559_v24  ;;  %2485 = vmatmul.mubr.msk.bf16.gmra.mrb[16].mxu1 %vm587_vm0, %v2560_v25  ;;  %v2854_v25 = vld [vmem:[%s2736_s14 + $0xe8] sm:$0xff]   ;;  %v2857_v24 = vld [vmem:[%s2736_s14 + $0x60] sm:$0xff]  }
  0x3c   : > { %2456 = vmatprep.mubr.msk.bf16.mxu0 %vm587_vm0, %v2561_v26  ;;  %2488 = vmatprep.mubr.msk.bf16.mxu1 %vm587_vm0, %v2562_v27  ;;  %v2834_v27 = vld [vmem:[%s2736_s14 + $0xd8] sm:$0xff]  }
  0x43   : > { %2457 = vmatmul.mubr.msk.bf16.gmra.mrb[20].mxu0 %vm587_vm0, %v2563_v28  ;;  %2489 = vmatmul.mubr.msk.bf16.gmra.mrb[20].mxu1 %vm587_vm0, %v2564_v29  ;;  %v2837_v28 = vld [vmem:[%s2736_s14 + $0x50] sm:$0xff]  }
  0x44   : > { %2460 = vmatprep.mubr.msk.bf16.mxu0 %vm587_vm0, %v2565_v30  ;;  %2492 = vmatprep.mubr.msk.bf16.mxu1 %vm587_vm0, %v2566_v31  ;;  %v2840_v29 = vld [vmem:[%s2736_s14 + $0xd0] sm:$0xff]   ;;  %v2860_v30 = vld [vmem:[%s2736_s14 + $0xe0] sm:$0xff]  }
  0x4b   : > { %2461 = vmatmul.mubr.msk.bf16.gmra.mrb[24].mxu0 %vm587_vm0, %v2567_v32  ;;  %2493 = vmatmul.mubr.msk.bf16.gmra.mrb[24].mxu1 %vm587_vm0, %v2568_v33  ;;  %v2865_v33 = vld [vmem:[%s3205_s2] ss:$0 sm:$0xff] }
  0x4c   : > { %2464 = vmatprep.mubr.msk.bf16.mxu0 %vm587_vm0, %v2569_v34  ;;  %2496 = vmatprep.mubr.msk.bf16.mxu1 %vm587_vm0, %v2570_v35  ;;  %v2847_v34 = vld [vmem:[%s2736_s14 + $0x68] sm:$0xff]  }
  0x53   : > { %2465 = vmatmul.mubr.msk.bf16.gmra.mrb[28].mxu0 %vm587_vm0, %v2571_v36  ;;  %2497 = vmatmul.mubr.msk.bf16.gmra.mrb[28].mxu1 %vm587_vm0, %v2572_v37 }
  0xee   : > { %v2438_v20 = vpop.f32.mrb[0].mxu0  ;;  %v2470_v32 = vpop.f32.mrb[0].mxu1 }
  0xef   : > { %v986_v31 = vmul.f32 %v2438_v20, %v2865_v33  ;;  %v1018_v23 = vmul.f32 %v2470_v32, %v2865_v33  ;;  %v722_v21 = vpop.f32.mrb[1].mxu0  ;;  %v850_v18 = vpop.f32.mrb[1].mxu1 }
  0xf0   : > { %v984_v12 = vmul.f32 %v2865_v33, %v722_v21  ;;  %v1016_v35 = vmul.f32 %v2865_v33, %v850_v18  ;;  %v2439_v11 = vpop.f32.mrb[2].mxu0  ;;  %v2471_v36 = vpop.f32.mrb[2].mxu1 }
  0xf1   : > { %v1057_v20 = vadd.f32 %v2878_v19, %v986_v31  ;;  %v1089_v32 = vadd.f32 %v2878_v19, %v1018_v23  ;;  %v987_v9 = vmul.f32 %v2439_v11, %v2865_v33  ;;  %v1019_v14 = vmul.f32 %v2471_v36, %v2865_v33  ;;  %v725_v8 = vpop.f32.mrb[3].mxu0  ;;  %v853_v13 = vpop.f32.mrb[3].mxu1 }
  0xf2   : > { %v1055_v21 = vadd.f32 %v2878_v19, %v984_v12  ;;  %v1087_v18 = vadd.f32 %v2878_v19, %v1016_v35  ;;  %v985_v7 = vmul.f32 %v2865_v33, %v725_v8  ;;  %v1017_v37 = vmul.f32 %v2865_v33, %v853_v13 }
  0xf3   : > { %v1249_v26 = vadd.f32 %v2045_v46, %v1057_v20  ;;  %v1281_v23 = vadd.f32 %v2109_v47, %v1089_v32  ;;  %v1058_v11 = vadd.f32 %v2878_v19, %v987_v9  ;;  %v1090_v31 = vadd.f32 %v2878_v19, %v1019_v14 }
  0xf4   : > { %v1247_v36 = vadd.f32 %v2041_v48, %v1055_v21  ;;  %v1279_v12 = vadd.f32 %v2105_v49, %v1087_v18  ;;  %v1056_v8 = vadd.f32 %v2878_v19, %v985_v7  ;;  %v1088_v13 = vadd.f32 %v2878_v19, %v1017_v37 }
  0xf5   : > { %v1313_v35 = vmax.f32 %v1249_v26, 0.0  ;;  %v1345_v46 = vmax.f32 %v1281_v23, 0.0  ;;  %v1250_v47 = vadd.f32 %v2046_v51, %v1058_v11  ;;  %v1282_v9 = vadd.f32 %v2110_v52, %v1090_v31 }
  0xf6   : > { %v1311_v14 = vmax.f32 %v1247_v36, 0.0  ;;  %v1343_v20 = vmax.f32 %v1279_v12, 0.0  ;;  %v1248_v48 = vadd.f32 %v2042_v53, %v1056_v8  ;;  %v1280_v49 = vadd.f32 %v2106_v54, %v1088_v13  ;;  %v2442_v7 = vpop.f32.mrb[4].mxu0  ;;  %v2474_v32 = vpop.f32.mrb[4].mxu1 }
  0xf7   : > { %v1314_v37 = vmax.f32 %v1250_v47, 0.0  ;;  %v1346_v26 = vmax.f32 %v1282_v9, 0.0  ;;  %v990_v21 = vmul.f32 %v2442_v7, %v2865_v33  ;;  %v1022_v38 = vmul.f32 %v2474_v32, %v2865_v33  ;;  %v738_v51 = vpop.f32.mrb[5].mxu0  ;;  %v866_v18 = vpop.f32.mrb[5].mxu1 }
  0xf8   : > { %v1312_v39 = vmax.f32 %v1248_v48, 0.0  ;;  %v1344_v40 = vmax.f32 %v1280_v49, 0.0  ;;  %v988_v41 = vmul.f32 %v2865_v33, %v738_v51  ;;  %v1020_v52 = vmul.f32 %v2865_v33, %v866_v18  ;;  %v2443_v53 = vpop.f32.mrb[6].mxu0  ;;  %v2475_v54 = vpop.f32.mrb[6].mxu1 }
  0xf9   : > { %v2175_v23 = vpack.c.bf16 %v1314_v37, %v1313_v35  ;;  %v2255_v11 = vpack.c.bf16 %v1346_v26, %v1345_v46  ;;  %v1061_v31 = vadd.f32 %v2878_v19, %v990_v21  ;;  %v1093_v36 = vadd.f32 %v2878_v19, %v1022_v38  ;;  %v741_v12 = vpop.f32.mrb[7].mxu0  ;;  %v869_v8 = vpop.f32.mrb[7].mxu1 }
  0xfa   : > { %v2170_v13 = vpack.c.bf16 %v1312_v39, %v1311_v14  ;;  %v2250_v47 = vpack.c.bf16 %v1344_v40, %v1343_v20  ;;  %v1059_v9 = vadd.f32 %v2878_v19, %v988_v41  ;;  %v1091_v48 = vadd.f32 %v2878_v19, %v1020_v52 }
  0xfb   : > { %2358 = vst [vmem:[%s2926_s24 + $0x8] sm:$0xff] %v2175_v23   ;;  %2374 = vst [vmem:[%s2926_s24 + $0x88] sm:$0xff] %v2255_v11   ;;  %v1253_v35 = vadd.f32 %v2053_v58, %v1061_v31  ;;  %v1285_v46 = vadd.f32 %v2117_v59, %v1093_v36  ;;  %v991_v49 = vmul.f32 %v2443_v53, %v2865_v33  ;;  %v2967_v36 = vld [vmem:[%s2736_s14 + $0x78] sm:$0xff]  }
  0xfc   : > { %v1023_v7 = vmul.f32 %v2475_v54, %v2865_v33  ;;  %2171 = vst [vmem:[%s2926_s24] sm:$0xff] %v2170_v13   ;;  %2373 = vst [vmem:[%s2926_s24 + $0x80] sm:$0xff] %v2250_v47   ;;  %v1251_v14 = vadd.f32 %v2049_v60, %v1059_v9  ;;  %v1283_v20 = vadd.f32 %v2113_v61, %v1091_v48  ;;  %v2978_v9 = vld [vmem:[%s2736_s14 + $0xf0] sm:$0xff]  }
  0xfd   : > { %v989_v32 = vmul.f32 %v2865_v33, %v741_v12  ;;  %v1021_v37 = vmul.f32 %v2865_v33, %v869_v8  ;;  %v1317_v58 = vmax.f32 %v1253_v35, 0.0  ;;  %v1349_v26 = vmax.f32 %v1285_v46, 0.0  ;;  %v2970_v12 = vld [vmem:[%s2736_s14 + $0xf8] sm:$0xff]  }
  0xfe   : > { %v1062_v59 = vadd.f32 %v2878_v19, %v991_v49  ;;  %v1094_v21 = vadd.f32 %v2878_v19, %v1023_v7  ;;  %v1315_v38 = vmax.f32 %v1251_v14, 0.0  ;;  %v1347_v51 = vmax.f32 %v1283_v20, 0.0  ;;  %v2446_v39 = vpop.f32.mrb[8].mxu0  ;;  %v2478_v61 = vpop.f32.mrb[8].mxu1 }
  0xff   : > { %v1060_v18 = vadd.f32 %v2878_v19, %v989_v32  ;;  %v1092_v60 = vadd.f32 %v2878_v19, %v1021_v37  ;;  %v994_v52 = vmul.f32 %v2446_v39, %v2865_v33  ;;  %v1026_v53 = vmul.f32 %v2478_v61, %v2865_v33  ;;  %v754_v54 = vpop.f32.mrb[9].mxu0  ;;  %v882_v23 = vpop.f32.mrb[9].mxu1 }
 0x100   : > { %v1254_v40 = vadd.f32 %v2054_v63, %v1062_v59  ;;  %v1286_v41 = vadd.f32 %v2118_v0, %v1094_v21  ;;  %v992_v42 = vmul.f32 %v2865_v33, %v754_v54  ;;  %v1024_v63 = vmul.f32 %v2865_v33, %v882_v23  ;;  %v2447_v43 = vpop.f32.mrb[10].mxu0  ;;  %v2479_v0 = vpop.f32.mrb[10].mxu1 }
 0x101   : > { %v1252_v11 = vadd.f32 %v2050_v1, %v1060_v18  ;;  %v1284_v31 = vadd.f32 %v2114_v2, %v1092_v60  ;;  %v1065_v47 = vadd.f32 %v2878_v19, %v994_v52  ;;  %v1097_v44 = vadd.f32 %v2878_v19, %v1026_v53  ;;  %v757_v1 = vpop.f32.mrb[11].mxu0  ;;  %v885_v45 = vpop.f32.mrb[11].mxu1  ;;  %v2975_v2 = vld [vmem:[%s2736_s14 + $0x70] sm:$0xff]  }
 0x102   : > { %v1318_v8 = vmax.f32 %v1254_v40, 0.0  ;;  %v1350_v13 = vmax.f32 %v1286_v41, 0.0  ;;  %v1063_v46 = vadd.f32 %v2878_v19, %v992_v42  ;;  %v1095_v49 = vadd.f32 %v2878_v19, %v1024_v63 }
 0x103   : > { %v1316_v48 = vmax.f32 %v1252_v11, 0.0  ;;  %v1348_v35 = vmax.f32 %v1284_v31, 0.0  ;;  %v2101_v20 = vunpack.c.l.bf16 %v2967_v36  ;;  %v2165_v32 = vunpack.c.l.bf16 %v2970_v12 }
 0x104   : > { %v2185_v7 = vpack.c.bf16 %v1318_v8, %v1317_v58  ;;  %v2265_v14 = vpack.c.bf16 %v1350_v13, %v1349_v26  ;;  %v2097_v21 = vunpack.c.l.bf16 %v2975_v2  ;;  %v2161_v18 = vunpack.c.l.bf16 %v2978_v9 }
 0x105   : > { %v2180_v37 = vpack.c.bf16 %v1316_v48, %v1315_v38  ;;  %v2260_v59 = vpack.c.bf16 %v1348_v35, %v1347_v51  ;;  %v1257_v60 = vadd.f32 %v2061_v6, %v1065_v47  ;;  %v3209_v39 = vunpack.c.l.bf16 %v2774_v55 }
 0x106   : > { %2360 = vst [vmem:[%s2926_s24 + $0x18] sm:$0xff] %v2185_v7   ;;  %2376 = vst [vmem:[%s2926_s24 + $0x98] sm:$0xff] %v2265_v14   ;;  %v995_v58 = vmul.f32 %v2447_v43, %v2865_v33  ;;  %v1027_v26 = vmul.f32 %v2479_v0, %v2865_v33  ;;  %v3210_v38 = vunpack.c.l.bf16 %v2777_v56  ;;  %v3211_v40 = vunpack.c.l.bf16 %v2780_v57  ;;  %v2450_v6 = vpop.f32.mrb[12].mxu0  ;;  %v2482_v54 = vpop.f32.mrb[12].mxu1 }
 0x107   : > { %v1289_v61 = vadd.f32 %v3209_v39, %v1097_v44  ;;  %2359 = vst [vmem:[%s2926_s24 + $0x10] sm:$0xff] %v2180_v37   ;;  %2375 = vst [vmem:[%s2926_s24 + $0x90] sm:$0xff] %v2260_v59   ;;  %v993_v52 = vmul.f32 %v2865_v33, %v757_v1  ;;  %v1025_v53 = vmul.f32 %v2865_v33, %v885_v45  ;;  %v770_v63 = vpop.f32.mrb[13].mxu0  ;;  %v898_v43 = vpop.f32.mrb[13].mxu1  ;;  %v3212_v45 = vunpack.c.h.bf16 %v2767_v50 }
 0x108   : > { %v1255_v51 = vadd.f32 %v3210_v38, %v1063_v46  ;;  %v1287_v41 = vadd.f32 %v3211_v40, %v1095_v49  ;;  %v1066_v23 = vadd.f32 %v2878_v19, %v995_v58  ;;  %v1098_v11 = vadd.f32 %v2878_v19, %v1027_v26  ;;  %v2451_v44 = vpop.f32.mrb[14].mxu0  ;;  %v2483_v1 = vpop.f32.mrb[14].mxu1 }
 0x109   : > { %v998_v31 = vmul.f32 %v2450_v6, %v2865_v33  ;;  %v1030_v42 = vmul.f32 %v2482_v54, %v2865_v33  ;;  %v1064_v0 = vadd.f32 %v2878_v19, %v993_v52  ;;  %v1096_v8 = vadd.f32 %v2878_v19, %v1025_v53  ;;  %v773_v14 = vpop.f32.mrb[15].mxu0  ;;  %v901_v37 = vpop.f32.mrb[15].mxu1 }
 0x10a   : > { %v996_v13 = vmul.f32 %v2865_v33, %v770_v63  ;;  %v1028_v47 = vmul.f32 %v2865_v33, %v898_v43  ;;  %v1258_v48 = vadd.f32 %v3212_v45, %v1066_v23  ;;  %v3213_v35 = vunpack.c.h.bf16 %v2774_v55 }
 0x10b   : > { %v1069_v49 = vadd.f32 %v2878_v19, %v998_v31  ;;  %v1101_v7 = vadd.f32 %v2878_v19, %v1030_v42  ;;  %v3214_v59 = vunpack.c.h.bf16 %v2777_v56  ;;  %v3215_v58 = vunpack.c.h.bf16 %v2780_v57 }
 0x10c   : > { %v1290_v46 = vadd.f32 %v3213_v35, %v1098_v11  ;;  %v1067_v38 = vadd.f32 %v2878_v19, %v996_v13  ;;  %v1099_v50 = vadd.f32 %v2878_v19, %v1028_v47  ;;  %v1321_v40 = vmax.f32 %v1257_v60, 0.0 }
 0x10d   : > { %v1256_v39 = vadd.f32 %v3214_v59, %v1064_v0  ;;  %v1288_v26 = vadd.f32 %v3215_v58, %v1096_v8  ;;  %v1353_v52 = vmax.f32 %v1289_v61, 0.0  ;;  %v1322_v55 = vmax.f32 %v1258_v48, 0.0 }
 0x10e   : > { %v1354_v53 = vmax.f32 %v1290_v46, 0.0  ;;  %v1319_v6 = vmax.f32 %v1255_v51, 0.0  ;;  %v1351_v54 = vmax.f32 %v1287_v41, 0.0  ;;  %v3216_v42 = vunpack.c.l.bf16 %v2787_v62  ;;  %v2454_v13 = vpop.f32.mrb[16].mxu0  ;;  %v2486_v47 = vpop.f32.mrb[16].mxu1 }
 0x10f   : > { %v1320_v23 = vmax.f32 %v1256_v39, 0.0  ;;  %v1352_v11 = vmax.f32 %v1288_v26, 0.0  ;;  %v2195_v31 = vpack.c.bf16 %v1322_v55, %v1321_v40  ;;  %v3217_v63 = vunpack.c.l.bf16 %v2794_v3 }
 0x110   : > { %v2275_v56 = vpack.c.bf16 %v1354_v53, %v1353_v52  ;;  %v1261_v57 = vadd.f32 %v3216_v42, %v1069_v49  ;;  %v3218_v0 = vunpack.c.l.bf16 %v2797_v4  ;;  %v3219_v51 = vunpack.c.l.bf16 %v2800_v5  ;;  %v786_v49 = vpop.f32.mrb[17].mxu0 }
 0x111   : > { %v1293_v43 = vadd.f32 %v3217_v63, %v1101_v7  ;;  %v2190_v60 = vpack.c.bf16 %v1320_v23, %v1319_v6  ;;  %v2270_v61 = vpack.c.bf16 %v1352_v11, %v1351_v54  ;;  %2362 = vst [vmem:[%s2926_s24 + $0x28] sm:$0xff] %v2195_v31   ;;  %v999_v45 = vmul.f32 %v2451_v44, %v2865_v33  ;;  %v914_v7 = vpop.f32.mrb[17].mxu1 }
 0x112   : > { %v1259_v8 = vadd.f32 %v3218_v0, %v1067_v38  ;;  %v1291_v41 = vadd.f32 %v3219_v51, %v1099_v50  ;;  %2378 = vst [vmem:[%s2926_s24 + $0xa8] sm:$0xff] %v2275_v56   ;;  %v1031_v48 = vmul.f32 %v2483_v1, %v2865_v33  ;;  %v997_v35 = vmul.f32 %v2865_v33, %v773_v14  ;;  %v2455_v38 = vpop.f32.mrb[18].mxu0  ;;  %v2487_v44 = vpop.f32.mrb[18].mxu1 }
 0x113   : > { %v1029_v46 = vmul.f32 %v2865_v33, %v901_v37  ;;  %2361 = vst [vmem:[%s2926_s24 + $0x20] sm:$0xff] %v2190_v60   ;;  %2377 = vst [vmem:[%s2926_s24 + $0xa0] sm:$0xff] %v2270_v61   ;;  %v1002_v59 = vmul.f32 %v2454_v13, %v2865_v33  ;;  %v1034_v39 = vmul.f32 %v2486_v47, %v2865_v33  ;;  %v789_v40 = vpop.f32.mrb[19].mxu0  ;;  %v917_v52 = vpop.f32.mrb[19].mxu1  ;;  %v3220_v23 = vunpack.c.h.bf16 %v2787_v62 }
 0x114   : > { %v1000_v58 = vmul.f32 %v2865_v33, %v786_v49  ;;  %v1032_v26 = vmul.f32 %v2865_v33, %v914_v7  ;;  %v1070_v1 = vadd.f32 %v2878_v19, %v999_v45  ;;  %v1102_v14 = vadd.f32 %v2878_v19, %v1031_v48 }
 0x115   : > { %v1068_v37 = vadd.f32 %v2878_v19, %v997_v35  ;;  %v1100_v50 = vadd.f32 %v2878_v19, %v1029_v46  ;;  %v1073_v55 = vadd.f32 %v2878_v19, %v1002_v59  ;;  %v1105_v53 = vadd.f32 %v2878_v19, %v1034_v39 }
 0x116   : > { %v1071_v6 = vadd.f32 %v2878_v19, %v1000_v58  ;;  %v1103_v54 = vadd.f32 %v2878_v19, %v1032_v26  ;;  %v1262_v11 = vadd.f32 %v3220_v23, %v1070_v1  ;;  %v3221_v31 = vunpack.c.h.bf16 %v2794_v3 }
 0x117   : > { %v3222_v42 = vunpack.c.h.bf16 %v2797_v4  ;;  %v3223_v60 = vunpack.c.h.bf16 %v2800_v5  ;;  %v1325_v0 = vmax.f32 %v1261_v57, 0.0  ;;  %v1357_v51 = vmax.f32 %v1293_v43, 0.0  ;;  %v2458_v43 = vpop.f32.mrb[20].mxu0 }
 0x118   : > { %v1294_v56 = vadd.f32 %v3221_v31, %v1102_v14  ;;  %v1323_v13 = vmax.f32 %v1259_v8, 0.0  ;;  %v1355_v47 = vmax.f32 %v1291_v41, 0.0  ;;  %v1326_v45 = vmax.f32 %v1262_v11, 0.0  ;;  %v2490_v8 = vpop.f32.mrb[20].mxu1  ;;  %v802_v1 = vpop.f32.mrb[21].mxu0 }
 0x119   : > { %v1260_v63 = vadd.f32 %v3222_v42, %v1068_v37  ;;  %v1292_v61 = vadd.f32 %v3223_v60, %v1100_v50  ;;  %v3224_v62 = vunpack.c.l.bf16 %v2807_v10  ;;  %v3225_v3 = vunpack.c.l.bf16 %v2814_v15  ;;  %v930_v14 = vpop.f32.mrb[21].mxu1 }
 0x11a   : > { %v1358_v48 = vmax.f32 %v1294_v56, 0.0  ;;  %v3226_v4 = vunpack.c.l.bf16 %v2817_v16  ;;  %v3227_v5 = vunpack.c.l.bf16 %v2820_v17  ;;  %v2205_v41 = vpack.c.bf16 %v1326_v45, %v1325_v0 }
 0x11b   : > { %v1324_v35 = vmax.f32 %v1260_v63, 0.0  ;;  %v1356_v46 = vmax.f32 %v1292_v61, 0.0  ;;  %v1265_v49 = vadd.f32 %v3224_v62, %v1073_v55  ;;  %v1297_v7 = vadd.f32 %v3225_v3, %v1105_v53 }
 0x11c   : > { %v1263_v59 = vadd.f32 %v3226_v4, %v1071_v6  ;;  %v1295_v57 = vadd.f32 %v3227_v5, %v1103_v54  ;;  %v2285_v39 = vpack.c.bf16 %v1358_v48, %v1357_v51  ;;  %v1003_v37 = vmul.f32 %v2455_v38, %v2865_v33  ;;  %v2459_v6 = vpop.f32.mrb[22].mxu0  ;;  %v2491_v54 = vpop.f32.mrb[22].mxu1  ;;  %2364 = vst [vmem:[%s2926_s24 + $0x38] sm:$0xff] %v2205_v41  }
 0x11d   : > { %v2200_v58 = vpack.c.bf16 %v1324_v35, %v1323_v13  ;;  %v2280_v26 = vpack.c.bf16 %v1356_v46, %v1355_v47  ;;  %v1035_v50 = vmul.f32 %v2487_v44, %v2865_v33  ;;  %v1001_v55 = vmul.f32 %v2865_v33, %v789_v40  ;;  %v805_v56 = vpop.f32.mrb[23].mxu0  ;;  %v933_v44 = vpop.f32.mrb[23].mxu1 }
 0x11e   : > { %v1033_v53 = vmul.f32 %v2865_v33, %v917_v52  ;;  %2380 = vst [vmem:[%s2926_s24 + $0xb8] sm:$0xff] %v2285_v39   ;;  %v1006_v23 = vmul.f32 %v2458_v43, %v2865_v33  ;;  %v1038_v11 = vmul.f32 %v2490_v8, %v2865_v33  ;;  %v1004_v31 = vmul.f32 %v2865_v33, %v802_v1  ;;  %v2462_v1 = vpop.f32.mrb[24].mxu0 }
 0x11f   : > { %2363 = vst [vmem:[%s2926_s24 + $0x30] sm:$0xff] %v2200_v58   ;;  %2379 = vst [vmem:[%s2926_s24 + $0xb0] sm:$0xff] %v2280_v26   ;;  %v1036_v38 = vmul.f32 %v2865_v33, %v930_v14  ;;  %v1074_v40 = vadd.f32 %v2878_v19, %v1003_v37  ;;  %v1106_v52 = vadd.f32 %v2878_v19, %v1035_v50  ;;  %v3228_v13 = vunpack.c.h.bf16 %v2807_v10  ;;  %v2494_v10 = vpop.f32.mrb[24].mxu1 }
 0x120   : > { %v1072_v42 = vadd.f32 %v2878_v19, %v1001_v55  ;;  %v1104_v63 = vadd.f32 %v2878_v19, %v1033_v53  ;;  %v1077_v60 = vadd.f32 %v2878_v19, %v1006_v23  ;;  %v1109_v61 = vadd.f32 %v2878_v19, %v1038_v11 }
 0x121   : > { %v1075_v0 = vadd.f32 %v2878_v19, %v1004_v31  ;;  %v1107_v51 = vadd.f32 %v2878_v19, %v1036_v38  ;;  %v1266_v47 = vadd.f32 %v3228_v13, %v1074_v40  ;;  %v3229_v45 = vunpack.c.h.bf16 %v2814_v15 }
 0x122   : > { %v3230_v35 = vunpack.c.h.bf16 %v2817_v16  ;;  %v3231_v62 = vunpack.c.h.bf16 %v2820_v17  ;;  %v1329_v4 = vmax.f32 %v1265_v49, 0.0  ;;  %v1361_v5 = vmax.f32 %v1297_v7, 0.0 }
 0x123   : > { %v1298_v48 = vadd.f32 %v3229_v45, %v1106_v52  ;;  %v1327_v43 = vmax.f32 %v1263_v59, 0.0  ;;  %v1359_v8 = vmax.f32 %v1295_v57, 0.0  ;;  %v1330_v41 = vmax.f32 %v1266_v47, 0.0  ;;  %v818_v59 = vpop.f32.mrb[25].mxu0  ;;  %v946_v57 = vpop.f32.mrb[25].mxu1 }
 0x124   : > { %v1264_v46 = vadd.f32 %v3230_v35, %v1072_v42  ;;  %v1296_v3 = vadd.f32 %v3231_v62, %v1104_v63  ;;  %v3232_v14 = vunpack.c.l.bf16 %v2827_v22  ;;  %v3233_v37 = vunpack.c.l.bf16 %v2834_v27  ;;  %v2463_v31 = vpop.f32.mrb[26].mxu0  ;;  %v2495_v38 = vpop.f32.mrb[26].mxu1 }
 0x125   : > { %v1362_v39 = vmax.f32 %v1298_v48, 0.0  ;;  %v3234_v50 = vunpack.c.l.bf16 %v2837_v28  ;;  %v3235_v49 = vunpack.c.l.bf16 %v2840_v29  ;;  %v2215_v55 = vpack.c.bf16 %v1330_v41, %v1329_v4 }
 0x126   : > { %v1328_v58 = vmax.f32 %v1264_v46, 0.0  ;;  %v1360_v26 = vmax.f32 %v1296_v3, 0.0  ;;  %v1269_v15 = vadd.f32 %v3232_v14, %v1077_v60  ;;  %v1301_v16 = vadd.f32 %v3233_v37, %v1109_v61  ;;  %v821_v60 = vpop.f32.mrb[27].mxu0  ;;  %v949_v61 = vpop.f32.mrb[27].mxu1 }
 0x127   : > { %v1267_v17 = vadd.f32 %v3234_v50, %v1075_v0  ;;  %v1299_v7 = vadd.f32 %v3235_v49, %v1107_v51  ;;  %v2295_v53 = vpack.c.bf16 %v1362_v39, %v1361_v5  ;;  %v1007_v40 = vmul.f32 %v2459_v6, %v2865_v33  ;;  %2366 = vst [vmem:[%s2926_s24 + $0x48] sm:$0xff] %v2215_v55   ;;  %v2466_v14 = vpop.f32.mrb[28].mxu0  ;;  %v2498_v37 = vpop.f32.mrb[28].mxu1 }
 0x128   : > { %v2210_v23 = vpack.c.bf16 %v1328_v58, %v1327_v43  ;;  %v2290_v11 = vpack.c.bf16 %v1360_v26, %v1359_v8  ;;  %v1039_v52 = vmul.f32 %v2491_v54, %v2865_v33  ;;  %v1005_v42 = vmul.f32 %v2865_v33, %v805_v56  ;;  %v962_v55 = vpop.f32.mrb[29].mxu1 }
 0x129   : > { %v1037_v63 = vmul.f32 %v2865_v33, %v933_v44  ;;  %2382 = vst [vmem:[%s2926_s24 + $0xc8] sm:$0xff] %v2295_v53   ;;  %v1010_v0 = vmul.f32 %v2462_v1, %v2865_v33  ;;  %v1042_v51 = vmul.f32 %v2494_v10, %v2865_v33  ;;  %v1008_v13 = vmul.f32 %v2865_v33, %v818_v59 }
 0x12a   : > { %2365 = vst [vmem:[%s2926_s24 + $0x40] sm:$0xff] %v2210_v23   ;;  %2381 = vst [vmem:[%s2926_s24 + $0xc0] sm:$0xff] %v2290_v11   ;;  %v1040_v6 = vmul.f32 %v2865_v33, %v946_v57  ;;  %v1078_v54 = vadd.f32 %v2878_v19, %v1007_v40  ;;  %v1110_v56 = vadd.f32 %v2878_v19, %v1039_v52  ;;  %v3236_v62 = vunpack.c.h.bf16 %v2827_v22  ;;  %v834_v57 = vpop.f32.mrb[29].mxu0  ;;  %v2499_v11 = vpop.f32.mrb[30].mxu1 }
 0x12b   : > { %v1076_v44 = vadd.f32 %v2878_v19, %v1005_v42  ;;  %v1108_v47 = vadd.f32 %v2878_v19, %v1037_v63  ;;  %v1081_v45 = vadd.f32 %v2878_v19, %v1010_v0  ;;  %v1113_v48 = vadd.f32 %v2878_v19, %v1042_v51  ;;  %v2467_v23 = vpop.f32.mrb[30].mxu0  ;;  %v965_v51 = vpop.f32.mrb[31].mxu1 }
 0x12c   : > { %v1079_v35 = vadd.f32 %v2878_v19, %v1008_v13  ;;  %v1111_v46 = vadd.f32 %v2878_v19, %v1040_v6  ;;  %v1270_v3 = vadd.f32 %v3236_v62, %v1078_v54  ;;  %v3237_v4 = vunpack.c.h.bf16 %v2834_v27  ;;  %v837_v0 = vpop.f32.mrb[31].mxu0 }
 0x12d   : > { %v3238_v43 = vunpack.c.h.bf16 %v2837_v28  ;;  %v3239_v41 = vunpack.c.h.bf16 %v2840_v29  ;;  %v1333_v58 = vmax.f32 %v1269_v15, 0.0  ;;  %v1365_v26 = vmax.f32 %v1301_v16, 0.0 }
 0x12e   : > { %v1302_v5 = vadd.f32 %v3237_v4, %v1110_v56  ;;  %v1331_v1 = vmax.f32 %v1267_v17, 0.0  ;;  %v1363_v10 = vmax.f32 %v1299_v7, 0.0  ;;  %v1334_v50 = vmax.f32 %v1270_v3, 0.0 }
 0x12f   : > { %v1268_v8 = vadd.f32 %v3238_v43, %v1076_v44  ;;  %v1300_v39 = vadd.f32 %v3239_v41, %v1108_v47  ;;  %v3240_v27 = vunpack.c.l.bf16 %v2847_v34  ;;  %v3241_v28 = vunpack.c.l.bf16 %v2854_v25 }
 0x130   : > { %v1366_v49 = vmax.f32 %v1302_v5, 0.0  ;;  %v3242_v15 = vunpack.c.l.bf16 %v2857_v24  ;;  %v3243_v17 = vunpack.c.l.bf16 %v2860_v30  ;;  %v2225_v40 = vpack.c.bf16 %v1334_v50, %v1333_v58 }
 0x131   : > { %v1332_v59 = vmax.f32 %v1268_v8, 0.0  ;;  %v1364_v22 = vmax.f32 %v1300_v39, 0.0  ;;  %v1273_v53 = vadd.f32 %v3240_v27, %v1081_v45  ;;  %v1305_v29 = vadd.f32 %v3241_v28, %v1113_v48 }
 0x132   : > { %v1271_v16 = vadd.f32 %v3242_v15, %v1079_v35  ;;  %v1303_v7 = vadd.f32 %v3243_v17, %v1111_v46  ;;  %v2305_v52 = vpack.c.bf16 %v1366_v49, %v1365_v26  ;;  %v1011_v13 = vmul.f32 %v2463_v31, %v2865_v33  ;;  %2368 = vst [vmem:[%s2926_s24 + $0x58] sm:$0xff] %v2225_v40  }
 0x133   : > { %v2220_v42 = vpack.c.bf16 %v1332_v59, %v1331_v1  ;;  %v2300_v63 = vpack.c.bf16 %v1364_v22, %v1363_v10  ;;  %v1043_v6 = vmul.f32 %v2495_v38, %v2865_v33  ;;  %v1009_v54 = vmul.f32 %v2865_v33, %v821_v60 }
 0x134   : > { %v1041_v56 = vmul.f32 %v2865_v33, %v949_v61  ;;  %2384 = vst [vmem:[%s2926_s24 + $0xd8] sm:$0xff] %v2305_v52   ;;  %v1014_v44 = vmul.f32 %v2466_v14, %v2865_v33  ;;  %v1046_v47 = vmul.f32 %v2498_v37, %v2865_v33  ;;  %v1012_v45 = vmul.f32 %v2865_v33, %v834_v57 }
 0x135   : > { %2367 = vst [vmem:[%s2926_s24 + $0x50] sm:$0xff] %v2220_v42   ;;  %2383 = vst [vmem:[%s2926_s24 + $0xd0] sm:$0xff] %v2300_v63   ;;  %v1044_v48 = vmul.f32 %v2865_v33, %v962_v55  ;;  %v1082_v31 = vadd.f32 %v2878_v19, %v1011_v13  ;;  %v1114_v38 = vadd.f32 %v2878_v19, %v1043_v6  ;;  %v1337_v35 = vmax.f32 %v1273_v53, 0.0 }
 0x136   : > { %v1080_v60 = vadd.f32 %v2878_v19, %v1009_v54  ;;  %v1112_v61 = vadd.f32 %v2878_v19, %v1041_v56  ;;  %v1369_v46 = vmax.f32 %v1305_v29, 0.0  ;;  %v1335_v62 = vmax.f32 %v1271_v16, 0.0 }
 0x137   : > { %v1367_v3 = vmax.f32 %v1303_v7, 0.0  ;;  %v3244_v4 = vunpack.c.h.bf16 %v2847_v34  ;;  %v3245_v43 = vunpack.c.h.bf16 %v2854_v25  ;;  %v3246_v41 = vunpack.c.h.bf16 %v2857_v24 }
 0x138   : > { %v3247_v58 = vunpack.c.h.bf16 %v2860_v30  ;;  %v1085_v1 = vadd.f32 %v2878_v19, %v1014_v44  ;;  %v1117_v10 = vadd.f32 %v2878_v19, %v1046_v47  ;;  %v1083_v14 = vadd.f32 %v2878_v19, %v1012_v45 }
 0x139   : > { %v1274_v5 = vadd.f32 %v3244_v4, %v1082_v31  ;;  %v1306_v8 = vadd.f32 %v3245_v43, %v1114_v38  ;;  %v1272_v39 = vadd.f32 %v3246_v41, %v1080_v60  ;;  %v1115_v37 = vadd.f32 %v2878_v19, %v1044_v48 }
 0x13a   : > { %v1304_v26 = vadd.f32 %v3247_v58, %v1112_v61  ;;  %v2102_v24 = vunpack.c.h.bf16 %v2967_v36  ;;  %v2166_v30 = vunpack.c.h.bf16 %v2970_v12  ;;  %v2098_v59 = vunpack.c.h.bf16 %v2975_v2 }
 0x13b   : > { %v1338_v50 = vmax.f32 %v1274_v5, 0.0  ;;  %v1370_v34 = vmax.f32 %v1306_v8, 0.0  ;;  %v1336_v25 = vmax.f32 %v1272_v39, 0.0  ;;  %v2162_v22 = vunpack.c.h.bf16 %v2978_v9 }
 0x13c   : > { %v1368_v49 = vmax.f32 %v1304_v26, 0.0  ;;  %v1015_v28 = vmul.f32 %v2467_v23, %v2865_v33  ;;  %v1047_v29 = vmul.f32 %v2499_v11, %v2865_v33  ;;  %v1013_v15 = vmul.f32 %v2865_v33, %v837_v0 }
 0x13d   : > { %v2235_v57 = vpack.c.bf16 %v1338_v50, %v1337_v35  ;;  %v2315_v55 = vpack.c.bf16 %v1370_v34, %v1369_v46  ;;  %v2230_v27 = vpack.c.bf16 %v1336_v25, %v1335_v62  ;;  %v1045_v16 = vmul.f32 %v2865_v33, %v965_v51 }
 0x13e   : > { %v2310_v53 = vpack.c.bf16 %v1368_v49, %v1367_v3  ;;  %v1277_v17 = vadd.f32 %v2101_v20, %v1085_v1  ;;  %v1309_v7 = vadd.f32 %v2165_v32, %v1117_v10  ;;  %v1275_v40 = vadd.f32 %v2097_v21, %v1083_v14 }
 0x13f   : > { %2370 = vst [vmem:[%s2926_s24 + $0x68] sm:$0xff] %v2235_v57   ;;  %2386 = vst [vmem:[%s2926_s24 + $0xe8] sm:$0xff] %v2315_v55   ;;  %v1307_v23 = vadd.f32 %v2161_v18, %v1115_v37  ;;  %v1086_v11 = vadd.f32 %v2878_v19, %v1015_v28  ;;  %v1118_v33 = vadd.f32 %v2878_v19, %v1047_v29 }
 0x140   : > { %2369 = vst [vmem:[%s2926_s24 + $0x60] sm:$0xff] %v2230_v27   ;;  %2385 = vst [vmem:[%s2926_s24 + $0xe0] sm:$0xff] %v2310_v53   ;;  %v1084_v52 = vadd.f32 %v2878_v19, %v1013_v15  ;;  %v1116_v42 = vadd.f32 %v2878_v19, %v1045_v16  ;;  %v1341_v2 = vmax.f32 %v1277_v17, 0.0  ;;  %v1373_v32 = vmax.f32 %v1309_v7, 0.0 }
 0x141   : > { %v1278_v63 = vadd.f32 %v2102_v24, %v1086_v11  ;;  %v1310_v36 = vadd.f32 %v2166_v30, %v1118_v33  ;;  %v1339_v9 = vmax.f32 %v1275_v40, 0.0  ;;  %v1371_v21 = vmax.f32 %v1307_v23, 0.0 }
 0x142   : > { %v1276_v12 = vadd.f32 %v2098_v59, %v1084_v52  ;;  %v1308_v20 = vadd.f32 %v2162_v22, %v1116_v42 }
 0x143   : > { %v1342_v18 = vmax.f32 %v1278_v63, 0.0  ;;  %v1374_v0 = vmax.f32 %v1310_v36, 0.0 }
 0x144   : > { %v1340_v51 = vmax.f32 %v1276_v12, 0.0  ;;  %v1372_v13 = vmax.f32 %v1308_v20, 0.0 }
 0x145   : > { %v2245_v6 = vpack.c.bf16 %v1342_v18, %v1341_v2  ;;  %v2325_v54 = vpack.c.bf16 %v1374_v0, %v1373_v32 }
 0x146   : > { %v2240_v56 = vpack.c.bf16 %v1340_v51, %v1339_v9  ;;  %v2320_v19 = vpack.c.bf16 %v1372_v13, %v1371_v21 }
 0x147   : > { %2372 = vst [vmem:[%s2926_s24 + $0x78] sm:$0xff] %v2245_v6   ;;  %2388 = vst [vmem:[%s2926_s24 + $0xf8] sm:$0xff] %v2325_v54  }
 0x148   : > { %2371 = vst [vmem:[%s2926_s24 + $0x70] sm:$0xff] %v2240_v56   ;;  %2387 = vst [vmem:[%s2926_s24 + $0xf0] sm:$0xff] %v2320_v19  }
 0x149 PF: > { %s15_s20 = sadd.s32 1, %s2595_s20   ;;  %s3248_s18 = smov %s2591_s19 }
 0x14a   : > { %p12_p5 = scmp.ge.s32.totalorder %s15_s20, 6   ;;  %s3249_s19 = smov %s3251_s21 }
 0x14c   :  { %14 = sbr.rel (!%p12_p5) target bundleno = 2 (0x2), region = 82 }

</bundles_post_ra>
